<compile_context>
chip_gen: v7x
topology: tpu7x:2x2x1
jax: 0.10.0
libtpu: 0.0.40
codegen_flags: <defaults>
</compile_context>

<pallas_src>
import jax
import jax.numpy as jnp
from jax.experimental import pallas as pl
from jax.experimental.pallas import tpu as pltpu

PAD_IDX = 1

_VMEM_CAP = 64 * 1024 * 1024   # conservative cross-chip cap (v7x has 64 MiB per TensorCore)


def _round_up(n, m):
    return -(-n // m) * m


def _pad_to(x, shape):
    pads = [(0, s - d) for d, s in zip(x.shape, shape)]
    if any(p[1] for p in pads):
        return jnp.pad(x, pads)
    return x


def _pad_gru_gates(w, h, hp):
    """Pad a (3H, ...) GRU weight/bias to (3Hp, ...) with per-gate zero padding (r|z|n order)."""
    if hp == h:
        return w
    r, z, n = w[:h], w[h:2 * h], w[2 * h:]
    pad = jnp.zeros((hp - h,) + w.shape[1:], w.dtype)
    return jnp.concatenate([r, pad, z, pad, n, pad], axis=0)


def _vocab_tile(vp, pref=512):
    """Largest 128-multiple tile <= pref that divides the (already 128-padded) vocab."""
    if vp <= pref:
        return vp
    for t in range(pref, 127, -128):
        if vp % t == 0:
            return t
    return vp


def _vmem_limit(est_bytes):
    return int(min(max(2 * est_bytes + (8 << 20), 32 << 20), _VMEM_CAP))


# ----------------------------------------------------------------------------
# GRU kernel (packed-sequence semantics), grid = (batch blocks "parallel",
# time chunks "arbitrary").  Output is emitted batch-major (B, Tp, Hp) in bf16.
# ----------------------------------------------------------------------------
def _gru_kernel(lens_ref, x_ref, hid0_ref, w_ih_ref, w_hh_ref, b_ih_ref, b_hh_ref,
                out_ref, hidn_ref, h_scratch, gx_scratch, out_scratch):
    c = pl.program_id(1)                          # time-chunk index (serial axis)
    tc, bc, e = x_ref.shape
    hp = hid0_ref.shape[-1]                       # padded hidden (multiple of 128)

    @pl.when(c == 0)
    def _():
        h_scratch[...] = hid0_ref[0]              # (bc, Hp) initial hidden for this batch block

    # Hoisted (non-recurrent) input projection: ONE matmul per chunk, staged in VMEM scratch
    # so the unrolled timestep loop only keeps one (bc, 3Hp) row live at a time.
    gx_scratch[...] = (
        jnp.dot(x_ref[...].reshape(tc * bc, e), w_ih_ref[...],
                preferred_element_type=jnp.float32) + b_ih_ref[...]
    ).reshape(tc, bc, 3 * hp)

    lens = lens_ref[...]                          # (bc, 1) int32, loaded once per chunk
    w_hh = w_hh_ref[...]                          # (Hp, 3Hp) bf16, pre-transposed
    b_hh = b_hh_ref[...]                          # (1, 3Hp) f32
    t0 = c * tc
    h = h_scratch[...]                            # (bc, Hp) f32
    pad_val = jnp.float32(PAD_IDX)

    for i in range(tc):                           # fully unrolled; only the recurrent matmul inside
        gx = gx_scratch[i]                        # (bc, 3Hp) leading-axis read
        gh = jnp.dot(h.astype(jnp.bfloat16), w_hh,
                     preferred_element_type=jnp.float32) + b_hh
        r = jax.nn.sigmoid(gx[:, :hp] + gh[:, :hp])
        z = jax.nn.sigmoid(gx[:, hp:2 * hp] + gh[:, hp:2 * hp])
        n = jnp.tanh(gx[:, 2 * hp:] + r * gh[:, 2 * hp:])
        h_new = (1.0 - z) * n + z * h
        valid = lens > (t0 + i)                   # packed-sequence validity
        h = jnp.where(valid, h_new, h)
        # Per-step store to VMEM scratch bounds vreg live ranges (no list + stack).
        out_scratch[:, i, :] = jnp.where(valid, h_new, pad_val)   # pad_packed padding_value

    h_scratch[...] = h
    # One dense, lane-aligned bf16 store of the whole chunk (batch-major).
    out_ref[...] = out_scratch[...].astype(out_ref.dtype)

    @pl.when(c == pl.num_programs(1) - 1)         # final hidden written once, not per step
    def _():
        hidn_ref[0] = h


def gru_forward(y_emb_tbe, hid0, w_ih_t, w_hh_t, b_ih, b_hh, y_lengths, *,
                t_chunk, batch_blocks=1):
    Tp, B, E = y_emb_tbe.shape
    Hp = hid0.shape[-1]
    tc = t_chunk
    assert Tp % tc == 0 and tc % 16 == 0, "t_chunk must divide Tp and be a multiple of 16"
    if B % batch_blocks != 0:
        raise ValueError("batch_blocks must divide B")
    bc = B // batch_blocks
    if batch_blocks > 1 and bc % 16 != 0:
        raise ValueError("with batch_blocks > 1, pad B so B/batch_blocks is a multiple of 16")
    nb, nc = batch_blocks, Tp // tc
    three_hp = 3 * Hp
    lens = y_lengths.astype(jnp.int32).reshape(B, 1)

    est = (2 * (tc * bc * E * 2)                  # x blocks (bf16, double-buffered)
           + 2 * (bc * tc * Hp * 2)               # out blocks (bf16)
           + 2 * 2 * (bc * Hp * 4)                # hid0 / hidn blocks
           + (E + Hp) * three_hp * 2 + 2 * three_hp * 4 + bc * 8   # weights / biases / lens
           + bc * Hp * 4 + tc * bc * three_hp * 4 + bc * tc * Hp * 4)  # scratches
    grid_spec = pltpu.PrefetchScalarGridSpec(
        num_scalar_prefetch=0,
        grid=(nb, nc),
        in_specs=[
            pl.BlockSpec((bc, 1), lambda b, c: (b, 0)),             # lengths
            pl.BlockSpec((tc, bc, E), lambda b, c: (c, b, 0)),      # embedded targets (time-major)
            pl.BlockSpec((1, bc, Hp), lambda b, c: (0, b, 0)),      # initial hidden
            pl.BlockSpec((E, three_hp), lambda b, c: (0, 0)),       # W_ih^T (bf16)
            pl.BlockSpec((Hp, three_hp), lambda b, c: (0, 0)),      # W_hh^T (bf16)
            pl.BlockSpec((1, three_hp), lambda b, c: (0, 0)),       # b_ih
            pl.BlockSpec((1, three_hp), lambda b, c: (0, 0)),       # b_hh
        ],
        out_specs=[
            pl.BlockSpec((bc, tc, Hp), lambda b, c: (b, c, 0)),     # batch-major per-step hiddens (bf16)
            pl.BlockSpec((1, bc, Hp), lambda b, c: (0, b, 0)),      # final hidden (resident across c)
        ],
        scratch_shapes=[pltpu.VMEM((bc, Hp), jnp.float32),          # carried hidden
                        pltpu.VMEM((tc, bc, three_hp), jnp.float32),  # hoisted input projection
                        pltpu.VMEM((bc, tc, Hp), jnp.float32)],     # chunk output staging
    )
    out, hid_n = pl.pallas_call(
        _gru_kernel,
        out_shape=(jax.ShapeDtypeStruct((B, Tp, Hp), jnp.bfloat16),
                   jax.ShapeDtypeStruct((1, B, Hp), jnp.float32)),
        grid_spec=grid_spec,
        compiler_params=pltpu.CompilerParams(
            dimension_semantics=("parallel", "arbitrary"),
            vmem_limit_bytes=_vmem_limit(est)),
    )(lens, y_emb_tbe, hid0, w_ih_t, w_hh_t, b_ih, b_hh)
    return out, hid_n


# ----------------------------------------------------------------------------
# Attention (Luong general) + tanh combine + vocab projection.
# Grid = (batch-row tiles "parallel", vocab tiles "arbitrary").
# ----------------------------------------------------------------------------
def _attn_out_kernel(dec_ref, enc_ref, w_in_ref, w_oc_ref, w_od_ref, b_out_ref,
                     w_v_ref, b_v_ref, logits_ref, attn_ref, attout_sc):
    v = pl.program_id(1)

    @pl.when(v == 0)
    def _():
        bb, t, hp = dec_ref.shape
        _, s, two_e = enc_ref.shape
        dec = dec_ref[...]                                          # (bb, T, Hp) bf16
        enc = enc_ref[...]                                          # (bb, S, 2E) bf16

        # Luong "general" score: dec @ (enc @ W_in^T)^T, batched over the row tile.
        enc1 = jnp.dot(enc.reshape(bb * s, two_e), w_in_ref[...],
                       preferred_element_type=jnp.float32).reshape(bb, s, hp)
        score = jnp.einsum('bth,bsh->bts', dec, enc1.astype(jnp.bfloat16),
                           preferred_element_type=jnp.float32)
        # NOTE: torch's masked_fill here is out-of-place & its result discarded -> no mask.
        score = score - jnp.max(score, axis=-1, keepdims=True)
        p = jnp.exp(score)
        attn = p / jnp.sum(p, axis=-1, keepdims=True)               # exact divide (attn is an output)
        attn_ref[...] = attn

        ct = jnp.einsum('bts,bse->bte', attn.astype(jnp.bfloat16), enc,
                        preferred_element_type=jnp.float32)         # (bb, T, 2E)
        # tanh(concat([ct, dec]) @ W_out^T + b_out), W_out pre-split in the wrapper.
        z = (jnp.dot(ct.reshape(bb * t, two_e).astype(jnp.bfloat16), w_oc_ref[...],
                     preferred_element_type=jnp.float32)
             + jnp.dot(dec.reshape(bb * t, hp), w_od_ref[...],
                       preferred_element_type=jnp.float32)
             + b_out_ref[...])
        attout_sc[...] = jnp.tanh(z).astype(attout_sc.dtype)        # (bb*T, Hp) bf16

    # Vocab projection: one (bb*T, Hp) x (Hp, vt) matmul per vocab tile.
    logits_ref[...] = (jnp.dot(attout_sc[...], w_v_ref[...],
                               preferred_element_type=jnp.float32)
                       + b_v_ref[...]).astype(logits_ref.dtype)


def attn_out_forward(dec_bth, enc_bse, w_in_t, w_out_ct, w_out_dec, b_out, w_v_t, b_v, *,
                     row_blocks=None, logits_dtype=jnp.float32, v_tile_pref=512):
    B, Tp, Hp = dec_bth.shape
    _, S, two_e = enc_bse.shape
    Vp = w_v_t.shape[1]
    vt = _vocab_tile(Vp, v_tile_pref)
    nv = Vp // vt

    if row_blocks is None:
        row_blocks = 2 if B % 2 == 0 else 1       # 2 row tiles -> both v7x TensorCores busy
    if B % row_blocks != 0:
        raise ValueError("row_blocks must divide B")
    bb = B // row_blocks
    nr = row_blocks
    lbytes = jnp.dtype(logits_dtype).itemsize

    est = (2 * (bb * Tp * Hp * 2 + bb * S * two_e * 2)              # dec / enc blocks (bf16)
           + 2 * (bb * Tp * vt * lbytes + bb * Tp * S * 4)          # logits / attn blocks
           + 2 * (two_e * Hp * 2) + Hp * Hp * 2 + Hp * 4            # resident small weights
           + 2 * (Hp * vt * 2 + vt * 4)                             # vocab weight/bias tiles
           + bb * Tp * Hp * 2)                                      # attout scratch
    grid_spec = pltpu.PrefetchScalarGridSpec(
        num_scalar_prefetch=0,
        grid=(nr, nv),
        in_specs=[
            pl.BlockSpec((bb, Tp, Hp), lambda b, v: (b, 0, 0)),     # decoder hiddens (bf16)
            pl.BlockSpec((bb, S, two_e), lambda b, v: (b, 0, 0)),   # encoder outputs (bf16)
            pl.BlockSpec((two_e, Hp), lambda b, v: (0, 0)),         # W_in^T
            pl.BlockSpec((two_e, Hp), lambda b, v: (0, 0)),         # W_out (ct half)^T
            pl.BlockSpec((Hp, Hp), lambda b, v: (0, 0)),            # W_out (dec half)^T
            pl.BlockSpec((1, Hp), lambda b, v: (0, 0)),             # b_out
            pl.BlockSpec((Hp, vt), lambda b, v: (0, v)),            # W_vocab^T tile
            pl.BlockSpec((1, vt), lambda b, v: (0, v)),             # b_vocab tile
        ],
        out_specs=[
            pl.BlockSpec((bb * Tp, vt), lambda b, v: (b, v)),       # logits tile
            pl.BlockSpec((bb, Tp, S), lambda b, v: (b, 0, 0)),      # attention weights (v == 0)
        ],
        scratch_shapes=[pltpu.VMEM((bb * Tp, Hp), jnp.bfloat16)],
    )
    logits2d, attn = pl.pallas_call(
        _attn_out_kernel,
        out_shape=(jax.ShapeDtypeStruct((B * Tp, Vp), logits_dtype),
                   jax.ShapeDtypeStruct((B, Tp, S), jnp.float32)),
        grid_spec=grid_spec,
        compiler_params=pltpu.CompilerParams(
            dimension_semantics=("parallel", "arbitrary"),
            vmem_limit_bytes=_vmem_limit(est)),
    )(dec_bth, enc_bse, w_in_t, w_out_ct, w_out_dec, b_out, w_v_t, b_v)
    return logits2d.reshape(B, Tp, Vp), attn


# ----------------------------------------------------------------------------
# Full LuongDecoder forward (glue in plain JAX, hot paths in Pallas kernels).
# ----------------------------------------------------------------------------
def luong_decoder_forward(params, encoder_out, x, y, y_lengths, hid, *,
                          t_chunk=None, batch_blocks=1, row_blocks=None,
                          logits_dtype=jnp.float32):
    del x  # mask is computed from x/y in torch but has no effect (see notes above)
    B, T = y.shape
    H = params["w_hh"].shape[1]
    V = params["w_vocab"].shape[0]
    S, two_e = encoder_out.shape[1], encoder_out.shape[2]

    Hp = _round_up(H, 128)                         # lane-aligned gate slices / stores
    Vp = _round_up(V, 128)                         # never fall back to a whole-vocab tile

    # Time chunking: multiple of 16 (bf16 output sublane tiling); T padded up to a chunk multiple.
    tc = 32 if t_chunk is None else t_chunk
    tc = max(16, _round_up(tc, 16))
    tc = min(tc, _round_up(T, 16))
    Tp = _round_up(T, tc)

    # Embedding lookup (gather) directly into (Tp, B, E); padded steps use PAD_IDX (invalid anyway).
    y_pad = jnp.pad(y, ((0, 0), (0, Tp - T)), constant_values=PAD_IDX) if Tp != T else y
    y_emb_tbe = jnp.take(params["embedding"], y_pad.T, axis=0).astype(jnp.bfloat16)   # (Tp, B, E)

    # GRU weights: per-gate pad H->Hp (zeros), pre-transpose, bf16 (f32 accumulation in-kernel).
    w_ih_t = _pad_gru_gates(params["w_ih"], H, Hp).T.astype(jnp.bfloat16)              # (E, 3Hp)
    w_hh_t = _pad_to(_pad_gru_gates(params["w_hh"], H, Hp), (3 * Hp, Hp)).T.astype(jnp.bfloat16)
    b_ih = _pad_gru_gates(params["b_ih"], H, Hp).reshape(1, -1).astype(jnp.float32)
    b_hh = _pad_gru_gates(params["b_hh"], H, Hp).reshape(1, -1).astype(jnp.float32)
    hid0 = _pad_to(hid.astype(jnp.float32), (1, B, Hp))                                # zero-padded

    dec_bth, hid_n = gru_forward(y_emb_tbe, hid0, w_ih_t, w_hh_t, b_ih, b_hh,
                                 y_lengths, t_chunk=tc, batch_blocks=batch_blocks)
    # dec_bth: (B, Tp, Hp) bf16, emitted batch-major by the kernel (no wrapper transpose/cast).

    # Attention / output weights: pad H->Hp and V->Vp with zeros, pre-split W_out, bf16 operands.
    enc_bf = encoder_out.astype(jnp.bfloat16)
    w_in_t = _pad_to(params["w_in"], (Hp, two_e)).T.astype(jnp.bfloat16)                # (2E, Hp)
    w_out_ct = _pad_to(params["w_out"][:, :two_e], (Hp, two_e)).T.astype(jnp.bfloat16)  # (2E, Hp)
    w_out_dec = _pad_to(params["w_out"][:, two_e:], (Hp, Hp)).T.astype(jnp.bfloat16)    # (Hp, Hp)
    b_out = _pad_to(params["b_out"], (Hp,)).reshape(1, -1).astype(jnp.float32)
    w_v_t = _pad_to(params["w_vocab"], (Vp, Hp)).T.astype(jnp.bfloat16)                 # (Hp, Vp)
    b_v = _pad_to(params["b_vocab"], (Vp,)).reshape(1, -1).astype(jnp.float32)

    logits, attn = attn_out_forward(dec_bth, enc_bf, w_in_t, w_out_ct, w_out_dec,
                                    b_out, w_v_t, b_v, row_blocks=row_blocks,
                                    logits_dtype=logits_dtype)
    # Strip the T / V / H padding (no-ops when nothing was padded).
    return logits[:, :T, :V], hid_n[:, :, :H], attn[:, :T, :]


# ----------------------------------------------------------------------------
# Pure-JAX f32 reference (for a light numerical check).
# ----------------------------------------------------------------------------
def _reference_forward(params, encoder_out, x, y, y_lengths, hid):
    del x
    B, T = y.shape
    H = params["w_hh"].shape[1]
    y_emb = jnp.take(params["embedding"], y, axis=0)
    h = hid[0]
    outs = []
    for t in range(T):
        x_t = y_emb[:, t]
        gx = x_t @ params["w_ih"].T + params["b_ih"]
        gh = h @ params["w_hh"].T + params["b_hh"]
        r = jax.nn.sigmoid(gx[:, :H] + gh[:, :H])
        z = jax.nn.sigmoid(gx[:, H:2 * H] + gh[:, H:2 * H])
        n = jnp.tanh(gx[:, 2 * H:] + r * gh[:, 2 * H:])
        h_new = (1.0 - z) * n + z * h
        valid = (y_lengths > t)[:, None]
        h = jnp.where(valid, h_new, h)
        outs.append(jnp.where(valid, h_new, float(PAD_IDX)))
    out = jnp.stack(outs, axis=1)
    enc1 = encoder_out @ params["w_in"].T
    score = jnp.einsum("bth,bsh->bts", out, enc1)
    attn = jax.nn.softmax(score, axis=-1)
    ct = jnp.einsum("bts,bse->bte", attn, encoder_out)
    cat = jnp.concatenate([ct, out], axis=-1)
    att_out = jnp.tanh(cat @ params["w_out"].T + params["b_out"])
    logits = att_out @ params["w_vocab"].T + params["b_vocab"]
    return logits, h[None], attn


if __name__ == "__main__":
    VOCAB, EMBED, ENC_H, DEC_H = 64, 32, 16, 32
    B, T, S = 2, 32, 8

    key = jax.random.PRNGKey(0)
    ks = jax.random.split(key, 12)
    scale = 0.1
    params = {
        "embedding": jax.random.normal(ks[0], (VOCAB, EMBED), jnp.float32) * scale,
        "w_ih": jax.random.normal(ks[1], (3 * DEC_H, EMBED), jnp.float32) * scale,
        "w_hh": jax.random.normal(ks[2], (3 * DEC_H, DEC_H), jnp.float32) * scale,
        "b_ih": jax.random.normal(ks[3], (3 * DEC_H,), jnp.float32) * scale,
        "b_hh": jax.random.normal(ks[4], (3 * DEC_H,), jnp.float32) * scale,
        "w_in": jax.random.normal(ks[5], (DEC_H, 2 * ENC_H), jnp.float32) * scale,
        "w_out": jax.random.normal(ks[6], (DEC_H, 2 * ENC_H + DEC_H), jnp.float32) * scale,
        "b_out": jax.random.normal(ks[7], (DEC_H,), jnp.float32) * scale,
        "w_vocab": jax.random.normal(ks[8], (VOCAB, DEC_H), jnp.float32) * scale,
        "b_vocab": jax.random.normal(ks[9], (VOCAB,), jnp.float32) * scale,
    }

    encoder_out = jax.random.normal(ks[10], (B, S, 2 * ENC_H), jnp.float32)
    y_lengths = jnp.array([32, 23], dtype=jnp.int32)
    y = jax.random.randint(ks[11], (B, T), 2, VOCAB, dtype=jnp.int32)
    y = jnp.where(jnp.arange(T)[None, :] < y_lengths[:, None], y, PAD_IDX)
    x = jax.random.randint(jax.random.PRNGKey(1), (B, S), 2, VOCAB, dtype=jnp.int32)
    hid = jax.random.normal(jax.random.PRNGKey(2), (1, B, DEC_H), jnp.float32) * scale

    # t_chunk=16 -> two time chunks, exercising the hidden-state carry across grid steps.
    logits, hid_n, attn = luong_decoder_forward(params, encoder_out, x, y, y_lengths, hid,
                                                t_chunk=16)
    jax.block_until_ready((logits, hid_n, attn))

    ref_logits, ref_hid, ref_attn = _reference_forward(params, encoder_out, x, y, y_lengths, hid)
    assert logits.shape == (B, T, VOCAB) and hid_n.shape == (1, B, DEC_H) and attn.shape == (B, T, S)
    assert jnp.allclose(logits, ref_logits, atol=3e-2, rtol=3e-2)
    assert jnp.allclose(hid_n, ref_hid, atol=3e-2, rtol=3e-2)
    assert jnp.allclose(attn, ref_attn, atol=3e-2, rtol=3e-2)

    print("KERNEL_OK")
</pallas_src>

<mosaic_0001>
module attributes {stable_mosaic.version = 11 : i64} {
  func.func @_gru_kernel(%arg0: i32, %arg1: i32, %arg2: memref<2x1xi32, #tpu.memory_space<vmem>>, %arg3: memref<16x2x32xbf16, #tpu.memory_space<vmem>>, %arg4: memref<1x2x128xf32, #tpu.memory_space<vmem>>, %arg5: memref<32x384xbf16, #tpu.memory_space<vmem>>, %arg6: memref<128x384xbf16, #tpu.memory_space<vmem>>, %arg7: memref<1x384xf32, #tpu.memory_space<vmem>>, %arg8: memref<1x384xf32, #tpu.memory_space<vmem>>, %arg9: memref<2x16x128xbf16, #tpu.memory_space<vmem>>, %arg10: memref<1x2x128xf32, #tpu.memory_space<vmem>>, %arg11: memref<2x128xf32, #tpu.memory_space<vmem>>, %arg12: memref<16x2x384xf32, #tpu.memory_space<vmem>>, %arg13: memref<2x16x128xf32, #tpu.memory_space<vmem>>) attributes {dimension_semantics = [#tpu.dimension_semantics<parallel>, #tpu.dimension_semantics<arbitrary>], iteration_bounds = array<i64: 1, 2>, scalar_prefetch = 0 : i64, scratch_operands = 3 : i64, tpu.core_type = #tpu.core_type<tc>, window_params = [{transform_indices = @transform_0, window_bounds = array<i64: 2, 1>}, {transform_indices = @transform_1, window_bounds = array<i64: 16, 2, 32>}, {transform_indices = @transform_2, window_bounds = array<i64: 1, 2, 128>}, {pipeline_mode = #tpu.pipeline_mode<synchronous>, transform_indices = @transform_3, window_bounds = array<i64: 32, 384>}, {pipeline_mode = #tpu.pipeline_mode<synchronous>, transform_indices = @transform_4, window_bounds = array<i64: 128, 384>}, {pipeline_mode = #tpu.pipeline_mode<synchronous>, transform_indices = @transform_5, window_bounds = array<i64: 1, 384>}, {pipeline_mode = #tpu.pipeline_mode<synchronous>, transform_indices = @transform_6, window_bounds = array<i64: 1, 384>}, {transform_indices = @transform_7, window_bounds = array<i64: 2, 16, 128>}, {transform_indices = @transform_8, window_bounds = array<i64: 1, 2, 128>}]} {
    %c0_i32 = arith.constant 0 : i32
    %0 = arith.cmpi eq, %arg1, %c0_i32 : i32
    %1 = arith.extui %0 : i1 to i32
    %c0_i32_0 = arith.constant 0 : i32
    %2 = arith.cmpi ne, %1, %c0_i32_0 : i32
    scf.if %2 {
      %c0_190 = arith.constant 0 : index
      %c0_191 = arith.constant 0 : index
      %c0_192 = arith.constant 0 : index
      %744 = vector.load %arg4[%c0_190, %c0_191, %c0_192] : memref<1x2x128xf32, #tpu.memory_space<vmem>>, vector<1x2x128xf32>
      %745 = vector.shape_cast %744 : vector<1x2x128xf32> to vector<2x128xf32>
      %c0_193 = arith.constant 0 : index
      %c0_194 = arith.constant 0 : index
      %746 = vector.load %arg11[%c0_193, %c0_194] : memref<2x128xf32, #tpu.memory_space<vmem>>, vector<2x128xf32>
      tpu.vector_store %arg11[%c0_193, %c0_194], %745 {strides = array<i32>} : memref<2x128xf32, #tpu.memory_space<vmem>>, vector<2x128xf32>,
    } else {
    }
    %c0 = arith.constant 0 : index
    %c0_1 = arith.constant 0 : index
    %c0_2 = arith.constant 0 : index
    %3 = vector.load %arg3[%c0, %c0_1, %c0_2] : memref<16x2x32xbf16, #tpu.memory_space<vmem>>, vector<16x2x32xbf16>
    %4 = vector.shape_cast %3 : vector<16x2x32xbf16> to vector<32x32xbf16>
    %c0_3 = arith.constant 0 : index
    %c0_4 = arith.constant 0 : index
    %5 = vector.load %arg5[%c0_3, %c0_4] : memref<32x384xbf16, #tpu.memory_space<vmem>>, vector<32x384xbf16>
    %cst = arith.constant dense<0.000000e+00> : vector<32x384xf32>
    %6 = tpu.matmul %4, %5, %cst {dimension_numbers = #tpu.dot_dimension_numbers<[1], [0], [0], [1], [0, 0, 1, 1], [], []>} : vector<32x32xbf16>, vector<32x384xbf16>, vector<32x384xf32> -> vector<32x384xf32>
    %c0_5 = arith.constant 0 : index
    %c0_6 = arith.constant 0 : index
    %7 = vector.load %arg7[%c0_5, %c0_6] : memref<1x384xf32, #tpu.memory_space<vmem>>, vector<1x384xf32>
    %8 = vector.broadcast %7 : vector<1x384xf32> to vector<32x384xf32>
    %9 = arith.addf %6, %8 : vector<32x384xf32>
    %10 = vector.shape_cast %9 : vector<32x384xf32> to vector<16x2x384xf32>
    %c0_7 = arith.constant 0 : index
    %c0_8 = arith.constant 0 : index
    %c0_9 = arith.constant 0 : index
    %11 = vector.load %arg12[%c0_7, %c0_8, %c0_9] : memref<16x2x384xf32, #tpu.memory_space<vmem>>, vector<16x2x384xf32>
    tpu.vector_store %arg12[%c0_7, %c0_8, %c0_9], %10 {strides = array<i32>} : memref<16x2x384xf32, #tpu.memory_space<vmem>>, vector<16x2x384xf32>,
    %c0_10 = arith.constant 0 : index
    %c0_11 = arith.constant 0 : index
    %12 = vector.load %arg2[%c0_10, %c0_11] : memref<2x1xi32, #tpu.memory_space<vmem>>, vector<2x1xi32>
    %c0_12 = arith.constant 0 : index
    %c0_13 = arith.constant 0 : index
    %13 = vector.load %arg6[%c0_12, %c0_13] : memref<128x384xbf16, #tpu.memory_space<vmem>>, vector<128x384xbf16>
    %c0_14 = arith.constant 0 : index
    %c0_15 = arith.constant 0 : index
    %14 = vector.load %arg8[%c0_14, %c0_15] : memref<1x384xf32, #tpu.memory_space<vmem>>, vector<1x384xf32>
    %c16_i32 = arith.constant 16 : i32
    %15 = arith.muli %arg1, %c16_i32 : i32
    %c0_16 = arith.constant 0 : index
    %c0_17 = arith.constant 0 : index
    %16 = vector.load %arg11[%c0_16, %c0_17] : memref<2x128xf32, #tpu.memory_space<vmem>>, vector<2x128xf32>
    %c0_18 = arith.constant 0 : index
    %c0_19 = arith.constant 0 : index
    %c0_20 = arith.constant 0 : index
    %17 = vector.load %arg12[%c0_18, %c0_19, %c0_20] : memref<16x2x384xf32, #tpu.memory_space<vmem>>, vector<1x2x384xf32>
    %18 = vector.shape_cast %17 : vector<1x2x384xf32> to vector<2x384xf32>
    %19 = arith.truncf %16 : vector<2x128xf32> to vector<2x128xbf16>
    %cst_21 = arith.constant dense<0.000000e+00> : vector<2x384xf32>
    %20 = tpu.matmul %19, %13, %cst_21 {dimension_numbers = #tpu.dot_dimension_numbers<[1], [0], [0], [1], [0, 0, 1, 1], [], []>} : vector<2x128xbf16>, vector<128x384xbf16>, vector<2x384xf32> -> vector<2x384xf32>
    %21 = vector.broadcast %14 : vector<1x384xf32> to vector<2x384xf32>
    %22 = arith.addf %20, %21 : vector<2x384xf32>
    %23 = vector.extract_strided_slice %18 {offsets = [0, 0], sizes = [2, 128], strides = [1, 1]} : vector<2x384xf32> to vector<2x128xf32>
    %24 = vector.extract_strided_slice %22 {offsets = [0, 0], sizes = [2, 128], strides = [1, 1]} : vector<2x384xf32> to vector<2x128xf32>
    %25 = arith.addf %23, %24 : vector<2x128xf32>
    %26 = arith.negf %25 : vector<2x128xf32>
    %27 = math.exp %26 : vector<2x128xf32>
    %cst_22 = arith.constant 1.000000e+00 : f32
    %28 = vector.broadcast %cst_22 : f32 to vector<2x128xf32>
    %29 = arith.addf %28, %27 : vector<2x128xf32>
    %30 = arith.divf %28, %29 : vector<2x128xf32>
    %31 = vector.extract_strided_slice %18 {offsets = [0, 128], sizes = [2, 128], strides = [1, 1]} : vector<2x384xf32> to vector<2x128xf32>
    %32 = vector.extract_strided_slice %22 {offsets = [0, 128], sizes = [2, 128], strides = [1, 1]} : vector<2x384xf32> to vector<2x128xf32>
    %33 = arith.addf %31, %32 : vector<2x128xf32>
    %34 = arith.negf %33 : vector<2x128xf32>
    %35 = math.exp %34 : vector<2x128xf32>
    %cst_23 = arith.constant 1.000000e+00 : f32
    %36 = vector.broadcast %cst_23 : f32 to vector<2x128xf32>
    %37 = arith.addf %36, %35 : vector<2x128xf32>
    %38 = arith.divf %36, %37 : vector<2x128xf32>
    %39 = vector.extract_strided_slice %18 {offsets = [0, 256], sizes = [2, 128], strides = [1, 1]} : vector<2x384xf32> to vector<2x128xf32>
    %40 = vector.extract_strided_slice %22 {offsets = [0, 256], sizes = [2, 128], strides = [1, 1]} : vector<2x384xf32> to vector<2x128xf32>
    %41 = arith.mulf %30, %40 : vector<2x128xf32>
    %42 = arith.addf %39, %41 : vector<2x128xf32>
    %43 = math.tanh %42 : vector<2x128xf32>
    %cst_24 = arith.constant 1.000000e+00 : f32
    %44 = vector.broadcast %cst_24 : f32 to vector<2x128xf32>
    %45 = arith.subf %44, %38 : vector<2x128xf32>
    %46 = arith.mulf %45, %43 : vector<2x128xf32>
    %47 = arith.mulf %38, %16 : vector<2x128xf32>
    %48 = arith.addf %46, %47 : vector<2x128xf32>
    %c0_i32_25 = arith.constant 0 : i32
    %49 = arith.addi %15, %c0_i32_25 : i32
    %50 = vector.broadcast %49 : i32 to vector<2x1xi32>
    %51 = arith.cmpi sgt, %12, %50 : vector<2x1xi32>
    %52 = vector.shape_cast %51 : vector<2x1xi1> to vector<2x1xi1>
    %53 = vector.broadcast %52 : vector<2x1xi1> to vector<2x128xi1>
    %54 = arith.select %53, %48, %16 : vector<2x128xi1>, vector<2x128xf32>
    %cst_26 = arith.constant 1.000000e+00 : f32
    %55 = vector.shape_cast %51 : vector<2x1xi1> to vector<2x1xi1>
    %56 = vector.broadcast %55 : vector<2x1xi1> to vector<2x128xi1>
    %57 = vector.broadcast %cst_26 : f32 to vector<2x128xf32>
    %58 = arith.select %56, %48, %57 : vector<2x128xi1>, vector<2x128xf32>
    %c0_27 = arith.constant 0 : index
    %c0_28 = arith.constant 0 : index
    %c0_29 = arith.constant 0 : index
    %59 = vector.load %arg13[%c0_27, %c0_28, %c0_29] : memref<2x16x128xf32, #tpu.memory_space<vmem>>, vector<2x1x128xf32>
    %60 = vector.shape_cast %59 : vector<2x1x128xf32> to vector<2x128xf32>
    %61 = vector.shape_cast %58 : vector<2x128xf32> to vector<2x1x128xf32>
    tpu.vector_store %arg13[%c0_27, %c0_28, %c0_29], %61 {strides = array<i32>} : memref<2x16x128xf32, #tpu.memory_space<vmem>>, vector<2x1x128xf32>,
    %c1 = arith.constant 1 : index
    %c0_30 = arith.constant 0 : index
    %c0_31 = arith.constant 0 : index
    %62 = vector.load %arg12[%c1, %c0_30, %c0_31] : memref<16x2x384xf32, #tpu.memory_space<vmem>>, vector<1x2x384xf32>
    %63 = vector.shape_cast %62 : vector<1x2x384xf32> to vector<2x384xf32>
    %64 = arith.truncf %54 : vector<2x128xf32> to vector<2x128xbf16>
    %cst_32 = arith.constant dense<0.000000e+00> : vector<2x384xf32>
    %65 = tpu.matmul %64, %13, %cst_32 {dimension_numbers = #tpu.dot_dimension_numbers<[1], [0], [0], [1], [0, 0, 1, 1], [], []>} : vector<2x128xbf16>, vector<128x384xbf16>, vector<2x384xf32> -> vector<2x384xf32>
    %66 = vector.broadcast %14 : vector<1x384xf32> to vector<2x384xf32>
    %67 = arith.addf %65, %66 : vector<2x384xf32>
    %68 = vector.extract_strided_slice %63 {offsets = [0, 0], sizes = [2, 128], strides = [1, 1]} : vector<2x384xf32> to vector<2x128xf32>
    %69 = vector.extract_strided_slice %67 {offsets = [0, 0], sizes = [2, 128], strides = [1, 1]} : vector<2x384xf32> to vector<2x128xf32>
    %70 = arith.addf %68, %69 : vector<2x128xf32>
    %71 = arith.negf %70 : vector<2x128xf32>
    %72 = math.exp %71 : vector<2x128xf32>
    %cst_33 = arith.constant 1.000000e+00 : f32
    %73 = vector.broadcast %cst_33 : f32 to vector<2x128xf32>
    %74 = arith.addf %73, %72 : vector<2x128xf32>
    %75 = arith.divf %73, %74 : vector<2x128xf32>
    %76 = vector.extract_strided_slice %63 {offsets = [0, 128], sizes = [2, 128], strides = [1, 1]} : vector<2x384xf32> to vector<2x128xf32>
    %77 = vector.extract_strided_slice %67 {offsets = [0, 128], sizes = [2, 128], strides = [1, 1]} : vector<2x384xf32> to vector<2x128xf32>
    %78 = arith.addf %76, %77 : vector<2x128xf32>
    %79 = arith.negf %78 : vector<2x128xf32>
    %80 = math.exp %79 : vector<2x128xf32>
    %cst_34 = arith.constant 1.000000e+00 : f32
    %81 = vector.broadcast %cst_34 : f32 to vector<2x128xf32>
    %82 = arith.addf %81, %80 : vector<2x128xf32>
    %83 = arith.divf %81, %82 : vector<2x128xf32>
    %84 = vector.extract_strided_slice %63 {offsets = [0, 256], sizes = [2, 128], strides = [1, 1]} : vector<2x384xf32> to vector<2x128xf32>
    %85 = vector.extract_strided_slice %67 {offsets = [0, 256], sizes = [2, 128], strides = [1, 1]} : vector<2x384xf32> to vector<2x128xf32>
    %86 = arith.mulf %75, %85 : vector<2x128xf32>
    %87 = arith.addf %84, %86 : vector<2x128xf32>
    %88 = math.tanh %87 : vector<2x128xf32>
    %cst_35 = arith.constant 1.000000e+00 : f32
    %89 = vector.broadcast %cst_35 : f32 to vector<2x128xf32>
    %90 = arith.subf %89, %83 : vector<2x128xf32>
    %91 = arith.mulf %90, %88 : vector<2x128xf32>
    %92 = arith.mulf %83, %54 : vector<2x128xf32>
    %93 = arith.addf %91, %92 : vector<2x128xf32>
    %c1_i32 = arith.constant 1 : i32
    %94 = arith.addi %15, %c1_i32 : i32
    %95 = vector.broadcast %94 : i32 to vector<2x1xi32>
    %96 = arith.cmpi sgt, %12, %95 : vector<2x1xi32>
    %97 = vector.shape_cast %96 : vector<2x1xi1> to vector<2x1xi1>
    %98 = vector.broadcast %97 : vector<2x1xi1> to vector<2x128xi1>
    %99 = arith.select %98, %93, %54 : vector<2x128xi1>, vector<2x128xf32>
    %cst_36 = arith.constant 1.000000e+00 : f32
    %100 = vector.shape_cast %96 : vector<2x1xi1> to vector<2x1xi1>
    %101 = vector.broadcast %100 : vector<2x1xi1> to vector<2x128xi1>
    %102 = vector.broadcast %cst_36 : f32 to vector<2x128xf32>
    %103 = arith.select %101, %93, %102 : vector<2x128xi1>, vector<2x128xf32>
    %c0_37 = arith.constant 0 : index
    %c1_38 = arith.constant 1 : index
    %c0_39 = arith.constant 0 : index
    %104 = vector.load %arg13[%c0_37, %c1_38, %c0_39] : memref<2x16x128xf32, #tpu.memory_space<vmem>>, vector<2x1x128xf32>
    %105 = vector.shape_cast %104 : vector<2x1x128xf32> to vector<2x128xf32>
    %106 = vector.shape_cast %103 : vector<2x128xf32> to vector<2x1x128xf32>
    tpu.vector_store %arg13[%c0_37, %c1_38, %c0_39], %106 {strides = array<i32>} : memref<2x16x128xf32, #tpu.memory_space<vmem>>, vector<2x1x128xf32>,
    %c2 = arith.constant 2 : index
    %c0_40 = arith.constant 0 : index
    %c0_41 = arith.constant 0 : index
    %107 = vector.load %arg12[%c2, %c0_40, %c0_41] : memref<16x2x384xf32, #tpu.memory_space<vmem>>, vector<1x2x384xf32>
    %108 = vector.shape_cast %107 : vector<1x2x384xf32> to vector<2x384xf32>
    %109 = arith.truncf %99 : vector<2x128xf32> to vector<2x128xbf16>
    %cst_42 = arith.constant dense<0.000000e+00> : vector<2x384xf32>
    %110 = tpu.matmul %109, %13, %cst_42 {dimension_numbers = #tpu.dot_dimension_numbers<[1], [0], [0], [1], [0, 0, 1, 1], [], []>} : vector<2x128xbf16>, vector<128x384xbf16>, vector<2x384xf32> -> vector<2x384xf32>
    %111 = vector.broadcast %14 : vector<1x384xf32> to vector<2x384xf32>
    %112 = arith.addf %110, %111 : vector<2x384xf32>
    %113 = vector.extract_strided_slice %108 {offsets = [0, 0], sizes = [2, 128], strides = [1, 1]} : vector<2x384xf32> to vector<2x128xf32>
    %114 = vector.extract_strided_slice %112 {offsets = [0, 0], sizes = [2, 128], strides = [1, 1]} : vector<2x384xf32> to vector<2x128xf32>
    %115 = arith.addf %113, %114 : vector<2x128xf32>
    %116 = arith.negf %115 : vector<2x128xf32>
    %117 = math.exp %116 : vector<2x128xf32>
    %cst_43 = arith.constant 1.000000e+00 : f32
    %118 = vector.broadcast %cst_43 : f32 to vector<2x128xf32>
    %119 = arith.addf %118, %117 : vector<2x128xf32>
    %120 = arith.divf %118, %119 : vector<2x128xf32>
    %121 = vector.extract_strided_slice %108 {offsets = [0, 128], sizes = [2, 128], strides = [1, 1]} : vector<2x384xf32> to vector<2x128xf32>
    %122 = vector.extract_strided_slice %112 {offsets = [0, 128], sizes = [2, 128], strides = [1, 1]} : vector<2x384xf32> to vector<2x128xf32>
    %123 = arith.addf %121, %122 : vector<2x128xf32>
    %124 = arith.negf %123 : vector<2x128xf32>
    %125 = math.exp %124 : vector<2x128xf32>
    %cst_44 = arith.constant 1.000000e+00 : f32
    %126 = vector.broadcast %cst_44 : f32 to vector<2x128xf32>
    %127 = arith.addf %126, %125 : vector<2x128xf32>
    %128 = arith.divf %126, %127 : vector<2x128xf32>
    %129 = vector.extract_strided_slice %108 {offsets = [0, 256], sizes = [2, 128], strides = [1, 1]} : vector<2x384xf32> to vector<2x128xf32>
    %130 = vector.extract_strided_slice %112 {offsets = [0, 256], sizes = [2, 128], strides = [1, 1]} : vector<2x384xf32> to vector<2x128xf32>
    %131 = arith.mulf %120, %130 : vector<2x128xf32>
    %132 = arith.addf %129, %131 : vector<2x128xf32>
    %133 = math.tanh %132 : vector<2x128xf32>
    %cst_45 = arith.constant 1.000000e+00 : f32
    %134 = vector.broadcast %cst_45 : f32 to vector<2x128xf32>
    %135 = arith.subf %134, %128 : vector<2x128xf32>
    %136 = arith.mulf %135, %133 : vector<2x128xf32>
    %137 = arith.mulf %128, %99 : vector<2x128xf32>
    %138 = arith.addf %136, %137 : vector<2x128xf32>
    %c2_i32 = arith.constant 2 : i32
    %139 = arith.addi %15, %c2_i32 : i32
    %140 = vector.broadcast %139 : i32 to vector<2x1xi32>
    %141 = arith.cmpi sgt, %12, %140 : vector<2x1xi32>
    %142 = vector.shape_cast %141 : vector<2x1xi1> to vector<2x1xi1>
    %143 = vector.broadcast %142 : vector<2x1xi1> to vector<2x128xi1>
    %144 = arith.select %143, %138, %99 : vector<2x128xi1>, vector<2x128xf32>
    %cst_46 = arith.constant 1.000000e+00 : f32
    %145 = vector.shape_cast %141 : vector<2x1xi1> to vector<2x1xi1>
    %146 = vector.broadcast %145 : vector<2x1xi1> to vector<2x128xi1>
    %147 = vector.broadcast %cst_46 : f32 to vector<2x128xf32>
    %148 = arith.select %146, %138, %147 : vector<2x128xi1>, vector<2x128xf32>
    %c0_47 = arith.constant 0 : index
    %c2_48 = arith.constant 2 : index
    %c0_49 = arith.constant 0 : index
    %149 = vector.load %arg13[%c0_47, %c2_48, %c0_49] : memref<2x16x128xf32, #tpu.memory_space<vmem>>, vector<2x1x128xf32>
    %150 = vector.shape_cast %149 : vector<2x1x128xf32> to vector<2x128xf32>
    %151 = vector.shape_cast %148 : vector<2x128xf32> to vector<2x1x128xf32>
    tpu.vector_store %arg13[%c0_47, %c2_48, %c0_49], %151 {strides = array<i32>} : memref<2x16x128xf32, #tpu.memory_space<vmem>>, vector<2x1x128xf32>,
    %c3 = arith.constant 3 : index
    %c0_50 = arith.constant 0 : index
    %c0_51 = arith.constant 0 : index
    %152 = vector.load %arg12[%c3, %c0_50, %c0_51] : memref<16x2x384xf32, #tpu.memory_space<vmem>>, vector<1x2x384xf32>
    %153 = vector.shape_cast %152 : vector<1x2x384xf32> to vector<2x384xf32>
    %154 = arith.truncf %144 : vector<2x128xf32> to vector<2x128xbf16>
    %cst_52 = arith.constant dense<0.000000e+00> : vector<2x384xf32>
    %155 = tpu.matmul %154, %13, %cst_52 {dimension_numbers = #tpu.dot_dimension_numbers<[1], [0], [0], [1], [0, 0, 1, 1], [], []>} : vector<2x128xbf16>, vector<128x384xbf16>, vector<2x384xf32> -> vector<2x384xf32>
    %156 = vector.broadcast %14 : vector<1x384xf32> to vector<2x384xf32>
    %157 = arith.addf %155, %156 : vector<2x384xf32>
    %158 = vector.extract_strided_slice %153 {offsets = [0, 0], sizes = [2, 128], strides = [1, 1]} : vector<2x384xf32> to vector<2x128xf32>
    %159 = vector.extract_strided_slice %157 {offsets = [0, 0], sizes = [2, 128], strides = [1, 1]} : vector<2x384xf32> to vector<2x128xf32>
    %160 = arith.addf %158, %159 : vector<2x128xf32>
    %161 = arith.negf %160 : vector<2x128xf32>
    %162 = math.exp %161 : vector<2x128xf32>
    %cst_53 = arith.constant 1.000000e+00 : f32
    %163 = vector.broadcast %cst_53 : f32 to vector<2x128xf32>
    %164 = arith.addf %163, %162 : vector<2x128xf32>
    %165 = arith.divf %163, %164 : vector<2x128xf32>
    %166 = vector.extract_strided_slice %153 {offsets = [0, 128], sizes = [2, 128], strides = [1, 1]} : vector<2x384xf32> to vector<2x128xf32>
    %167 = vector.extract_strided_slice %157 {offsets = [0, 128], sizes = [2, 128], strides = [1, 1]} : vector<2x384xf32> to vector<2x128xf32>
    %168 = arith.addf %166, %167 : vector<2x128xf32>
    %169 = arith.negf %168 : vector<2x128xf32>
    %170 = math.exp %169 : vector<2x128xf32>
    %cst_54 = arith.constant 1.000000e+00 : f32
    %171 = vector.broadcast %cst_54 : f32 to vector<2x128xf32>
    %172 = arith.addf %171, %170 : vector<2x128xf32>
    %173 = arith.divf %171, %172 : vector<2x128xf32>
    %174 = vector.extract_strided_slice %153 {offsets = [0, 256], sizes = [2, 128], strides = [1, 1]} : vector<2x384xf32> to vector<2x128xf32>
    %175 = vector.extract_strided_slice %157 {offsets = [0, 256], sizes = [2, 128], strides = [1, 1]} : vector<2x384xf32> to vector<2x128xf32>
    %176 = arith.mulf %165, %175 : vector<2x128xf32>
    %177 = arith.addf %174, %176 : vector<2x128xf32>
    %178 = math.tanh %177 : vector<2x128xf32>
    %cst_55 = arith.constant 1.000000e+00 : f32
    %179 = vector.broadcast %cst_55 : f32 to vector<2x128xf32>
    %180 = arith.subf %179, %173 : vector<2x128xf32>
    %181 = arith.mulf %180, %178 : vector<2x128xf32>
    %182 = arith.mulf %173, %144 : vector<2x128xf32>
    %183 = arith.addf %181, %182 : vector<2x128xf32>
    %c3_i32 = arith.constant 3 : i32
    %184 = arith.addi %15, %c3_i32 : i32
    %185 = vector.broadcast %184 : i32 to vector<2x1xi32>
    %186 = arith.cmpi sgt, %12, %185 : vector<2x1xi32>
    %187 = vector.shape_cast %186 : vector<2x1xi1> to vector<2x1xi1>
    %188 = vector.broadcast %187 : vector<2x1xi1> to vector<2x128xi1>
    %189 = arith.select %188, %183, %144 : vector<2x128xi1>, vector<2x128xf32>
    %cst_56 = arith.constant 1.000000e+00 : f32
    %190 = vector.shape_cast %186 : vector<2x1xi1> to vector<2x1xi1>
    %191 = vector.broadcast %190 : vector<2x1xi1> to vector<2x128xi1>
    %192 = vector.broadcast %cst_56 : f32 to vector<2x128xf32>
    %193 = arith.select %191, %183, %192 : vector<2x128xi1>, vector<2x128xf32>
    %c0_57 = arith.constant 0 : index
    %c3_58 = arith.constant 3 : index
    %c0_59 = arith.constant 0 : index
    %194 = vector.load %arg13[%c0_57, %c3_58, %c0_59] : memref<2x16x128xf32, #tpu.memory_space<vmem>>, vector<2x1x128xf32>
    %195 = vector.shape_cast %194 : vector<2x1x128xf32> to vector<2x128xf32>
    %196 = vector.shape_cast %193 : vector<2x128xf32> to vector<2x1x128xf32>
    tpu.vector_store %arg13[%c0_57, %c3_58, %c0_59], %196 {strides = array<i32>} : memref<2x16x128xf32, #tpu.memory_space<vmem>>, vector<2x1x128xf32>,
    %c4 = arith.constant 4 : index
    %c0_60 = arith.constant 0 : index
    %c0_61 = arith.constant 0 : index
    %197 = vector.load %arg12[%c4, %c0_60, %c0_61] : memref<16x2x384xf32, #tpu.memory_space<vmem>>, vector<1x2x384xf32>
    %198 = vector.shape_cast %197 : vector<1x2x384xf32> to vector<2x384xf32>
    %199 = arith.truncf %189 : vector<2x128xf32> to vector<2x128xbf16>
    %cst_62 = arith.constant dense<0.000000e+00> : vector<2x384xf32>
    %200 = tpu.matmul %199, %13, %cst_62 {dimension_numbers = #tpu.dot_dimension_numbers<[1], [0], [0], [1], [0, 0, 1, 1], [], []>} : vector<2x128xbf16>, vector<128x384xbf16>, vector<2x384xf32> -> vector<2x384xf32>
    %201 = vector.broadcast %14 : vector<1x384xf32> to vector<2x384xf32>
    %202 = arith.addf %200, %201 : vector<2x384xf32>
    %203 = vector.extract_strided_slice %198 {offsets = [0, 0], sizes = [2, 128], strides = [1, 1]} : vector<2x384xf32> to vector<2x128xf32>
    %204 = vector.extract_strided_slice %202 {offsets = [0, 0], sizes = [2, 128], strides = [1, 1]} : vector<2x384xf32> to vector<2x128xf32>
    %205 = arith.addf %203, %204 : vector<2x128xf32>
    %206 = arith.negf %205 : vector<2x128xf32>
    %207 = math.exp %206 : vector<2x128xf32>
    %cst_63 = arith.constant 1.000000e+00 : f32
    %208 = vector.broadcast %cst_63 : f32 to vector<2x128xf32>
    %209 = arith.addf %208, %207 : vector<2x128xf32>
    %210 = arith.divf %208, %209 : vector<2x128xf32>
    %211 = vector.extract_strided_slice %198 {offsets = [0, 128], sizes = [2, 128], strides = [1, 1]} : vector<2x384xf32> to vector<2x128xf32>
    %212 = vector.extract_strided_slice %202 {offsets = [0, 128], sizes = [2, 128], strides = [1, 1]} : vector<2x384xf32> to vector<2x128xf32>
    %213 = arith.addf %211, %212 : vector<2x128xf32>
    %214 = arith.negf %213 : vector<2x128xf32>
    %215 = math.exp %214 : vector<2x128xf32>
    %cst_64 = arith.constant 1.000000e+00 : f32
    %216 = vector.broadcast %cst_64 : f32 to vector<2x128xf32>
    %217 = arith.addf %216, %215 : vector<2x128xf32>
    %218 = arith.divf %216, %217 : vector<2x128xf32>
    %219 = vector.extract_strided_slice %198 {offsets = [0, 256], sizes = [2, 128], strides = [1, 1]} : vector<2x384xf32> to vector<2x128xf32>
    %220 = vector.extract_strided_slice %202 {offsets = [0, 256], sizes = [2, 128], strides = [1, 1]} : vector<2x384xf32> to vector<2x128xf32>
    %221 = arith.mulf %210, %220 : vector<2x128xf32>
    %222 = arith.addf %219, %221 : vector<2x128xf32>
    %223 = math.tanh %222 : vector<2x128xf32>
    %cst_65 = arith.constant 1.000000e+00 : f32
    %224 = vector.broadcast %cst_65 : f32 to vector<2x128xf32>
    %225 = arith.subf %224, %218 : vector<2x128xf32>
    %226 = arith.mulf %225, %223 : vector<2x128xf32>
    %227 = arith.mulf %218, %189 : vector<2x128xf32>
    %228 = arith.addf %226, %227 : vector<2x128xf32>
    %c4_i32 = arith.constant 4 : i32
    %229 = arith.addi %15, %c4_i32 : i32
    %230 = vector.broadcast %229 : i32 to vector<2x1xi32>
    %231 = arith.cmpi sgt, %12, %230 : vector<2x1xi32>
    %232 = vector.shape_cast %231 : vector<2x1xi1> to vector<2x1xi1>
    %233 = vector.broadcast %232 : vector<2x1xi1> to vector<2x128xi1>
    %234 = arith.select %233, %228, %189 : vector<2x128xi1>, vector<2x128xf32>
    %cst_66 = arith.constant 1.000000e+00 : f32
    %235 = vector.shape_cast %231 : vector<2x1xi1> to vector<2x1xi1>
    %236 = vector.broadcast %235 : vector<2x1xi1> to vector<2x128xi1>
    %237 = vector.broadcast %cst_66 : f32 to vector<2x128xf32>
    %238 = arith.select %236, %228, %237 : vector<2x128xi1>, vector<2x128xf32>
    %c0_67 = arith.constant 0 : index
    %c4_68 = arith.constant 4 : index
    %c0_69 = arith.constant 0 : index
    %239 = vector.load %arg13[%c0_67, %c4_68, %c0_69] : memref<2x16x128xf32, #tpu.memory_space<vmem>>, vector<2x1x128xf32>
    %240 = vector.shape_cast %239 : vector<2x1x128xf32> to vector<2x128xf32>
    %241 = vector.shape_cast %238 : vector<2x128xf32> to vector<2x1x128xf32>
    tpu.vector_store %arg13[%c0_67, %c4_68, %c0_69], %241 {strides = array<i32>} : memref<2x16x128xf32, #tpu.memory_space<vmem>>, vector<2x1x128xf32>,
    %c5 = arith.constant 5 : index
    %c0_70 = arith.constant 0 : index
    %c0_71 = arith.constant 0 : index
    %242 = vector.load %arg12[%c5, %c0_70, %c0_71] : memref<16x2x384xf32, #tpu.memory_space<vmem>>, vector<1x2x384xf32>
    %243 = vector.shape_cast %242 : vector<1x2x384xf32> to vector<2x384xf32>
    %244 = arith.truncf %234 : vector<2x128xf32> to vector<2x128xbf16>
    %cst_72 = arith.constant dense<0.000000e+00> : vector<2x384xf32>
    %245 = tpu.matmul %244, %13, %cst_72 {dimension_numbers = #tpu.dot_dimension_numbers<[1], [0], [0], [1], [0, 0, 1, 1], [], []>} : vector<2x128xbf16>, vector<128x384xbf16>, vector<2x384xf32> -> vector<2x384xf32>
    %246 = vector.broadcast %14 : vector<1x384xf32> to vector<2x384xf32>
    %247 = arith.addf %245, %246 : vector<2x384xf32>
    %248 = vector.extract_strided_slice %243 {offsets = [0, 0], sizes = [2, 128], strides = [1, 1]} : vector<2x384xf32> to vector<2x128xf32>
    %249 = vector.extract_strided_slice %247 {offsets = [0, 0], sizes = [2, 128], strides = [1, 1]} : vector<2x384xf32> to vector<2x128xf32>
    %250 = arith.addf %248, %249 : vector<2x128xf32>
    %251 = arith.negf %250 : vector<2x128xf32>
    %252 = math.exp %251 : vector<2x128xf32>
    %cst_73 = arith.constant 1.000000e+00 : f32
    %253 = vector.broadcast %cst_73 : f32 to vector<2x128xf32>
    %254 = arith.addf %253, %252 : vector<2x128xf32>
    %255 = arith.divf %253, %254 : vector<2x128xf32>
    %256 = vector.extract_strided_slice %243 {offsets = [0, 128], sizes = [2, 128], strides = [1, 1]} : vector<2x384xf32> to vector<2x128xf32>
    %257 = vector.extract_strided_slice %247 {offsets = [0, 128], sizes = [2, 128], strides = [1, 1]} : vector<2x384xf32> to vector<2x128xf32>
    %258 = arith.addf %256, %257 : vector<2x128xf32>
    %259 = arith.negf %258 : vector<2x128xf32>
    %260 = math.exp %259 : vector<2x128xf32>
    %cst_74 = arith.constant 1.000000e+00 : f32
    %261 = vector.broadcast %cst_74 : f32 to vector<2x128xf32>
    %262 = arith.addf %261, %260 : vector<2x128xf32>
    %263 = arith.divf %261, %262 : vector<2x128xf32>
    %264 = vector.extract_strided_slice %243 {offsets = [0, 256], sizes = [2, 128], strides = [1, 1]} : vector<2x384xf32> to vector<2x128xf32>
    %265 = vector.extract_strided_slice %247 {offsets = [0, 256], sizes = [2, 128], strides = [1, 1]} : vector<2x384xf32> to vector<2x128xf32>
    %266 = arith.mulf %255, %265 : vector<2x128xf32>
    %267 = arith.addf %264, %266 : vector<2x128xf32>
    %268 = math.tanh %267 : vector<2x128xf32>
    %cst_75 = arith.constant 1.000000e+00 : f32
    %269 = vector.broadcast %cst_75 : f32 to vector<2x128xf32>
    %270 = arith.subf %269, %263 : vector<2x128xf32>
    %271 = arith.mulf %270, %268 : vector<2x128xf32>
    %272 = arith.mulf %263, %234 : vector<2x128xf32>
    %273 = arith.addf %271, %272 : vector<2x128xf32>
    %c5_i32 = arith.constant 5 : i32
    %274 = arith.addi %15, %c5_i32 : i32
    %275 = vector.broadcast %274 : i32 to vector<2x1xi32>
    %276 = arith.cmpi sgt, %12, %275 : vector<2x1xi32>
    %277 = vector.shape_cast %276 : vector<2x1xi1> to vector<2x1xi1>
    %278 = vector.broadcast %277 : vector<2x1xi1> to vector<2x128xi1>
    %279 = arith.select %278, %273, %234 : vector<2x128xi1>, vector<2x128xf32>
    %cst_76 = arith.constant 1.000000e+00 : f32
    %280 = vector.shape_cast %276 : vector<2x1xi1> to vector<2x1xi1>
    %281 = vector.broadcast %280 : vector<2x1xi1> to vector<2x128xi1>
    %282 = vector.broadcast %cst_76 : f32 to vector<2x128xf32>
    %283 = arith.select %281, %273, %282 : vector<2x128xi1>, vector<2x128xf32>
    %c0_77 = arith.constant 0 : index
    %c5_78 = arith.constant 5 : index
    %c0_79 = arith.constant 0 : index
    %284 = vector.load %arg13[%c0_77, %c5_78, %c0_79] : memref<2x16x128xf32, #tpu.memory_space<vmem>>, vector<2x1x128xf32>
    %285 = vector.shape_cast %284 : vector<2x1x128xf32> to vector<2x128xf32>
    %286 = vector.shape_cast %283 : vector<2x128xf32> to vector<2x1x128xf32>
    tpu.vector_store %arg13[%c0_77, %c5_78, %c0_79], %286 {strides = array<i32>} : memref<2x16x128xf32, #tpu.memory_space<vmem>>, vector<2x1x128xf32>,
    %c6 = arith.constant 6 : index
    %c0_80 = arith.constant 0 : index
    %c0_81 = arith.constant 0 : index
    %287 = vector.load %arg12[%c6, %c0_80, %c0_81] : memref<16x2x384xf32, #tpu.memory_space<vmem>>, vector<1x2x384xf32>
    %288 = vector.shape_cast %287 : vector<1x2x384xf32> to vector<2x384xf32>
    %289 = arith.truncf %279 : vector<2x128xf32> to vector<2x128xbf16>
    %cst_82 = arith.constant dense<0.000000e+00> : vector<2x384xf32>
    %290 = tpu.matmul %289, %13, %cst_82 {dimension_numbers = #tpu.dot_dimension_numbers<[1], [0], [0], [1], [0, 0, 1, 1], [], []>} : vector<2x128xbf16>, vector<128x384xbf16>, vector<2x384xf32> -> vector<2x384xf32>
    %291 = vector.broadcast %14 : vector<1x384xf32> to vector<2x384xf32>
    %292 = arith.addf %290, %291 : vector<2x384xf32>
    %293 = vector.extract_strided_slice %288 {offsets = [0, 0], sizes = [2, 128], strides = [1, 1]} : vector<2x384xf32> to vector<2x128xf32>
    %294 = vector.extract_strided_slice %292 {offsets = [0, 0], sizes = [2, 128], strides = [1, 1]} : vector<2x384xf32> to vector<2x128xf32>
    %295 = arith.addf %293, %294 : vector<2x128xf32>
    %296 = arith.negf %295 : vector<2x128xf32>
    %297 = math.exp %296 : vector<2x128xf32>
    %cst_83 = arith.constant 1.000000e+00 : f32
    %298 = vector.broadcast %cst_83 : f32 to vector<2x128xf32>
    %299 = arith.addf %298, %297 : vector<2x128xf32>
    %300 = arith.divf %298, %299 : vector<2x128xf32>
    %301 = vector.extract_strided_slice %288 {offsets = [0, 128], sizes = [2, 128], strides = [1, 1]} : vector<2x384xf32> to vector<2x128xf32>
    %302 = vector.extract_strided_slice %292 {offsets = [0, 128], sizes = [2, 128], strides = [1, 1]} : vector<2x384xf32> to vector<2x128xf32>
    %303 = arith.addf %301, %302 : vector<2x128xf32>
    %304 = arith.negf %303 : vector<2x128xf32>
    %305 = math.exp %304 : vector<2x128xf32>
    %cst_84 = arith.constant 1.000000e+00 : f32
    %306 = vector.broadcast %cst_84 : f32 to vector<2x128xf32>
    %307 = arith.addf %306, %305 : vector<2x128xf32>
    %308 = arith.divf %306, %307 : vector<2x128xf32>
    %309 = vector.extract_strided_slice %288 {offsets = [0, 256], sizes = [2, 128], strides = [1, 1]} : vector<2x384xf32> to vector<2x128xf32>
    %310 = vector.extract_strided_slice %292 {offsets = [0, 256], sizes = [2, 128], strides = [1, 1]} : vector<2x384xf32> to vector<2x128xf32>
    %311 = arith.mulf %300, %310 : vector<2x128xf32>
    %312 = arith.addf %309, %311 : vector<2x128xf32>
    %313 = math.tanh %312 : vector<2x128xf32>
    %cst_85 = arith.constant 1.000000e+00 : f32
    %314 = vector.broadcast %cst_85 : f32 to vector<2x128xf32>
    %315 = arith.subf %314, %308 : vector<2x128xf32>
    %316 = arith.mulf %315, %313 : vector<2x128xf32>
    %317 = arith.mulf %308, %279 : vector<2x128xf32>
    %318 = arith.addf %316, %317 : vector<2x128xf32>
    %c6_i32 = arith.constant 6 : i32
    %319 = arith.addi %15, %c6_i32 : i32
    %320 = vector.broadcast %319 : i32 to vector<2x1xi32>
    %321 = arith.cmpi sgt, %12, %320 : vector<2x1xi32>
    %322 = vector.shape_cast %321 : vector<2x1xi1> to vector<2x1xi1>
    %323 = vector.broadcast %322 : vector<2x1xi1> to vector<2x128xi1>
    %324 = arith.select %323, %318, %279 : vector<2x128xi1>, vector<2x128xf32>
    %cst_86 = arith.constant 1.000000e+00 : f32
    %325 = vector.shape_cast %321 : vector<2x1xi1> to vector<2x1xi1>
    %326 = vector.broadcast %325 : vector<2x1xi1> to vector<2x128xi1>
    %327 = vector.broadcast %cst_86 : f32 to vector<2x128xf32>
    %328 = arith.select %326, %318, %327 : vector<2x128xi1>, vector<2x128xf32>
    %c0_87 = arith.constant 0 : index
    %c6_88 = arith.constant 6 : index
    %c0_89 = arith.constant 0 : index
    %329 = vector.load %arg13[%c0_87, %c6_88, %c0_89] : memref<2x16x128xf32, #tpu.memory_space<vmem>>, vector<2x1x128xf32>
    %330 = vector.shape_cast %329 : vector<2x1x128xf32> to vector<2x128xf32>
    %331 = vector.shape_cast %328 : vector<2x128xf32> to vector<2x1x128xf32>
    tpu.vector_store %arg13[%c0_87, %c6_88, %c0_89], %331 {strides = array<i32>} : memref<2x16x128xf32, #tpu.memory_space<vmem>>, vector<2x1x128xf32>,
    %c7 = arith.constant 7 : index
    %c0_90 = arith.constant 0 : index
    %c0_91 = arith.constant 0 : index
    %332 = vector.load %arg12[%c7, %c0_90, %c0_91] : memref<16x2x384xf32, #tpu.memory_space<vmem>>, vector<1x2x384xf32>
    %333 = vector.shape_cast %332 : vector<1x2x384xf32> to vector<2x384xf32>
    %334 = arith.truncf %324 : vector<2x128xf32> to vector<2x128xbf16>
    %cst_92 = arith.constant dense<0.000000e+00> : vector<2x384xf32>
    %335 = tpu.matmul %334, %13, %cst_92 {dimension_numbers = #tpu.dot_dimension_numbers<[1], [0], [0], [1], [0, 0, 1, 1], [], []>} : vector<2x128xbf16>, vector<128x384xbf16>, vector<2x384xf32> -> vector<2x384xf32>
    %336 = vector.broadcast %14 : vector<1x384xf32> to vector<2x384xf32>
    %337 = arith.addf %335, %336 : vector<2x384xf32>
    %338 = vector.extract_strided_slice %333 {offsets = [0, 0], sizes = [2, 128], strides = [1, 1]} : vector<2x384xf32> to vector<2x128xf32>
    %339 = vector.extract_strided_slice %337 {offsets = [0, 0], sizes = [2, 128], strides = [1, 1]} : vector<2x384xf32> to vector<2x128xf32>
    %340 = arith.addf %338, %339 : vector<2x128xf32>
    %341 = arith.negf %340 : vector<2x128xf32>
    %342 = math.exp %341 : vector<2x128xf32>
    %cst_93 = arith.constant 1.000000e+00 : f32
    %343 = vector.broadcast %cst_93 : f32 to vector<2x128xf32>
    %344 = arith.addf %343, %342 : vector<2x128xf32>
    %345 = arith.divf %343, %344 : vector<2x128xf32>
    %346 = vector.extract_strided_slice %333 {offsets = [0, 128], sizes = [2, 128], strides = [1, 1]} : vector<2x384xf32> to vector<2x128xf32>
    %347 = vector.extract_strided_slice %337 {offsets = [0, 128], sizes = [2, 128], strides = [1, 1]} : vector<2x384xf32> to vector<2x128xf32>
    %348 = arith.addf %346, %347 : vector<2x128xf32>
    %349 = arith.negf %348 : vector<2x128xf32>
    %350 = math.exp %349 : vector<2x128xf32>
    %cst_94 = arith.constant 1.000000e+00 : f32
    %351 = vector.broadcast %cst_94 : f32 to vector<2x128xf32>
    %352 = arith.addf %351, %350 : vector<2x128xf32>
    %353 = arith.divf %351, %352 : vector<2x128xf32>
    %354 = vector.extract_strided_slice %333 {offsets = [0, 256], sizes = [2, 128], strides = [1, 1]} : vector<2x384xf32> to vector<2x128xf32>
    %355 = vector.extract_strided_slice %337 {offsets = [0, 256], sizes = [2, 128], strides = [1, 1]} : vector<2x384xf32> to vector<2x128xf32>
    %356 = arith.mulf %345, %355 : vector<2x128xf32>
    %357 = arith.addf %354, %356 : vector<2x128xf32>
    %358 = math.tanh %357 : vector<2x128xf32>
    %cst_95 = arith.constant 1.000000e+00 : f32
    %359 = vector.broadcast %cst_95 : f32 to vector<2x128xf32>
    %360 = arith.subf %359, %353 : vector<2x128xf32>
    %361 = arith.mulf %360, %358 : vector<2x128xf32>
    %362 = arith.mulf %353, %324 : vector<2x128xf32>
    %363 = arith.addf %361, %362 : vector<2x128xf32>
    %c7_i32 = arith.constant 7 : i32
    %364 = arith.addi %15, %c7_i32 : i32
    %365 = vector.broadcast %364 : i32 to vector<2x1xi32>
    %366 = arith.cmpi sgt, %12, %365 : vector<2x1xi32>
    %367 = vector.shape_cast %366 : vector<2x1xi1> to vector<2x1xi1>
    %368 = vector.broadcast %367 : vector<2x1xi1> to vector<2x128xi1>
    %369 = arith.select %368, %363, %324 : vector<2x128xi1>, vector<2x128xf32>
    %cst_96 = arith.constant 1.000000e+00 : f32
    %370 = vector.shape_cast %366 : vector<2x1xi1> to vector<2x1xi1>
    %371 = vector.broadcast %370 : vector<2x1xi1> to vector<2x128xi1>
    %372 = vector.broadcast %cst_96 : f32 to vector<2x128xf32>
    %373 = arith.select %371, %363, %372 : vector<2x128xi1>, vector<2x128xf32>
    %c0_97 = arith.constant 0 : index
    %c7_98 = arith.constant 7 : index
    %c0_99 = arith.constant 0 : index
    %374 = vector.load %arg13[%c0_97, %c7_98, %c0_99] : memref<2x16x128xf32, #tpu.memory_space<vmem>>, vector<2x1x128xf32>
    %375 = vector.shape_cast %374 : vector<2x1x128xf32> to vector<2x128xf32>
    %376 = vector.shape_cast %373 : vector<2x128xf32> to vector<2x1x128xf32>
    tpu.vector_store %arg13[%c0_97, %c7_98, %c0_99], %376 {strides = array<i32>} : memref<2x16x128xf32, #tpu.memory_space<vmem>>, vector<2x1x128xf32>,
    %c8 = arith.constant 8 : index
    %c0_100 = arith.constant 0 : index
    %c0_101 = arith.constant 0 : index
    %377 = vector.load %arg12[%c8, %c0_100, %c0_101] : memref<16x2x384xf32, #tpu.memory_space<vmem>>, vector<1x2x384xf32>
    %378 = vector.shape_cast %377 : vector<1x2x384xf32> to vector<2x384xf32>
    %379 = arith.truncf %369 : vector<2x128xf32> to vector<2x128xbf16>
    %cst_102 = arith.constant dense<0.000000e+00> : vector<2x384xf32>
    %380 = tpu.matmul %379, %13, %cst_102 {dimension_numbers = #tpu.dot_dimension_numbers<[1], [0], [0], [1], [0, 0, 1, 1], [], []>} : vector<2x128xbf16>, vector<128x384xbf16>, vector<2x384xf32> -> vector<2x384xf32>
    %381 = vector.broadcast %14 : vector<1x384xf32> to vector<2x384xf32>
    %382 = arith.addf %380, %381 : vector<2x384xf32>
    %383 = vector.extract_strided_slice %378 {offsets = [0, 0], sizes = [2, 128], strides = [1, 1]} : vector<2x384xf32> to vector<2x128xf32>
    %384 = vector.extract_strided_slice %382 {offsets = [0, 0], sizes = [2, 128], strides = [1, 1]} : vector<2x384xf32> to vector<2x128xf32>
    %385 = arith.addf %383, %384 : vector<2x128xf32>
    %386 = arith.negf %385 : vector<2x128xf32>
    %387 = math.exp %386 : vector<2x128xf32>
    %cst_103 = arith.constant 1.000000e+00 : f32
    %388 = vector.broadcast %cst_103 : f32 to vector<2x128xf32>
    %389 = arith.addf %388, %387 : vector<2x128xf32>
    %390 = arith.divf %388, %389 : vector<2x128xf32>
    %391 = vector.extract_strided_slice %378 {offsets = [0, 128], sizes = [2, 128], strides = [1, 1]} : vector<2x384xf32> to vector<2x128xf32>
    %392 = vector.extract_strided_slice %382 {offsets = [0, 128], sizes = [2, 128], strides = [1, 1]} : vector<2x384xf32> to vector<2x128xf32>
    %393 = arith.addf %391, %392 : vector<2x128xf32>
    %394 = arith.negf %393 : vector<2x128xf32>
    %395 = math.exp %394 : vector<2x128xf32>
    %cst_104 = arith.constant 1.000000e+00 : f32
    %396 = vector.broadcast %cst_104 : f32 to vector<2x128xf32>
    %397 = arith.addf %396, %395 : vector<2x128xf32>
    %398 = arith.divf %396, %397 : vector<2x128xf32>
    %399 = vector.extract_strided_slice %378 {offsets = [0, 256], sizes = [2, 128], strides = [1, 1]} : vector<2x384xf32> to vector<2x128xf32>
    %400 = vector.extract_strided_slice %382 {offsets = [0, 256], sizes = [2, 128], strides = [1, 1]} : vector<2x384xf32> to vector<2x128xf32>
    %401 = arith.mulf %390, %400 : vector<2x128xf32>
    %402 = arith.addf %399, %401 : vector<2x128xf32>
    %403 = math.tanh %402 : vector<2x128xf32>
    %cst_105 = arith.constant 1.000000e+00 : f32
    %404 = vector.broadcast %cst_105 : f32 to vector<2x128xf32>
    %405 = arith.subf %404, %398 : vector<2x128xf32>
    %406 = arith.mulf %405, %403 : vector<2x128xf32>
    %407 = arith.mulf %398, %369 : vector<2x128xf32>
    %408 = arith.addf %406, %407 : vector<2x128xf32>
    %c8_i32 = arith.constant 8 : i32
    %409 = arith.addi %15, %c8_i32 : i32
    %410 = vector.broadcast %409 : i32 to vector<2x1xi32>
    %411 = arith.cmpi sgt, %12, %410 : vector<2x1xi32>
    %412 = vector.shape_cast %411 : vector<2x1xi1> to vector<2x1xi1>
    %413 = vector.broadcast %412 : vector<2x1xi1> to vector<2x128xi1>
    %414 = arith.select %413, %408, %369 : vector<2x128xi1>, vector<2x128xf32>
    %cst_106 = arith.constant 1.000000e+00 : f32
    %415 = vector.shape_cast %411 : vector<2x1xi1> to vector<2x1xi1>
    %416 = vector.broadcast %415 : vector<2x1xi1> to vector<2x128xi1>
    %417 = vector.broadcast %cst_106 : f32 to vector<2x128xf32>
    %418 = arith.select %416, %408, %417 : vector<2x128xi1>, vector<2x128xf32>
    %c0_107 = arith.constant 0 : index
    %c8_108 = arith.constant 8 : index
    %c0_109 = arith.constant 0 : index
    %419 = vector.load %arg13[%c0_107, %c8_108, %c0_109] : memref<2x16x128xf32, #tpu.memory_space<vmem>>, vector<2x1x128xf32>
    %420 = vector.shape_cast %419 : vector<2x1x128xf32> to vector<2x128xf32>
    %421 = vector.shape_cast %418 : vector<2x128xf32> to vector<2x1x128xf32>
    tpu.vector_store %arg13[%c0_107, %c8_108, %c0_109], %421 {strides = array<i32>} : memref<2x16x128xf32, #tpu.memory_space<vmem>>, vector<2x1x128xf32>,
    %c9 = arith.constant 9 : index
    %c0_110 = arith.constant 0 : index
    %c0_111 = arith.constant 0 : index
    %422 = vector.load %arg12[%c9, %c0_110, %c0_111] : memref<16x2x384xf32, #tpu.memory_space<vmem>>, vector<1x2x384xf32>
    %423 = vector.shape_cast %422 : vector<1x2x384xf32> to vector<2x384xf32>
    %424 = arith.truncf %414 : vector<2x128xf32> to vector<2x128xbf16>
    %cst_112 = arith.constant dense<0.000000e+00> : vector<2x384xf32>
    %425 = tpu.matmul %424, %13, %cst_112 {dimension_numbers = #tpu.dot_dimension_numbers<[1], [0], [0], [1], [0, 0, 1, 1], [], []>} : vector<2x128xbf16>, vector<128x384xbf16>, vector<2x384xf32> -> vector<2x384xf32>
    %426 = vector.broadcast %14 : vector<1x384xf32> to vector<2x384xf32>
    %427 = arith.addf %425, %426 : vector<2x384xf32>
    %428 = vector.extract_strided_slice %423 {offsets = [0, 0], sizes = [2, 128], strides = [1, 1]} : vector<2x384xf32> to vector<2x128xf32>
    %429 = vector.extract_strided_slice %427 {offsets = [0, 0], sizes = [2, 128], strides = [1, 1]} : vector<2x384xf32> to vector<2x128xf32>
    %430 = arith.addf %428, %429 : vector<2x128xf32>
    %431 = arith.negf %430 : vector<2x128xf32>
    %432 = math.exp %431 : vector<2x128xf32>
    %cst_113 = arith.constant 1.000000e+00 : f32
    %433 = vector.broadcast %cst_113 : f32 to vector<2x128xf32>
    %434 = arith.addf %433, %432 : vector<2x128xf32>
    %435 = arith.divf %433, %434 : vector<2x128xf32>
    %436 = vector.extract_strided_slice %423 {offsets = [0, 128], sizes = [2, 128], strides = [1, 1]} : vector<2x384xf32> to vector<2x128xf32>
    %437 = vector.extract_strided_slice %427 {offsets = [0, 128], sizes = [2, 128], strides = [1, 1]} : vector<2x384xf32> to vector<2x128xf32>
    %438 = arith.addf %436, %437 : vector<2x128xf32>
    %439 = arith.negf %438 : vector<2x128xf32>
    %440 = math.exp %439 : vector<2x128xf32>
    %cst_114 = arith.constant 1.000000e+00 : f32
    %441 = vector.broadcast %cst_114 : f32 to vector<2x128xf32>
    %442 = arith.addf %441, %440 : vector<2x128xf32>
    %443 = arith.divf %441, %442 : vector<2x128xf32>
    %444 = vector.extract_strided_slice %423 {offsets = [0, 256], sizes = [2, 128], strides = [1, 1]} : vector<2x384xf32> to vector<2x128xf32>
    %445 = vector.extract_strided_slice %427 {offsets = [0, 256], sizes = [2, 128], strides = [1, 1]} : vector<2x384xf32> to vector<2x128xf32>
    %446 = arith.mulf %435, %445 : vector<2x128xf32>
    %447 = arith.addf %444, %446 : vector<2x128xf32>
    %448 = math.tanh %447 : vector<2x128xf32>
    %cst_115 = arith.constant 1.000000e+00 : f32
    %449 = vector.broadcast %cst_115 : f32 to vector<2x128xf32>
    %450 = arith.subf %449, %443 : vector<2x128xf32>
    %451 = arith.mulf %450, %448 : vector<2x128xf32>
    %452 = arith.mulf %443, %414 : vector<2x128xf32>
    %453 = arith.addf %451, %452 : vector<2x128xf32>
    %c9_i32 = arith.constant 9 : i32
    %454 = arith.addi %15, %c9_i32 : i32
    %455 = vector.broadcast %454 : i32 to vector<2x1xi32>
    %456 = arith.cmpi sgt, %12, %455 : vector<2x1xi32>
    %457 = vector.shape_cast %456 : vector<2x1xi1> to vector<2x1xi1>
    %458 = vector.broadcast %457 : vector<2x1xi1> to vector<2x128xi1>
    %459 = arith.select %458, %453, %414 : vector<2x128xi1>, vector<2x128xf32>
    %cst_116 = arith.constant 1.000000e+00 : f32
    %460 = vector.shape_cast %456 : vector<2x1xi1> to vector<2x1xi1>
    %461 = vector.broadcast %460 : vector<2x1xi1> to vector<2x128xi1>
    %462 = vector.broadcast %cst_116 : f32 to vector<2x128xf32>
    %463 = arith.select %461, %453, %462 : vector<2x128xi1>, vector<2x128xf32>
    %c0_117 = arith.constant 0 : index
    %c9_118 = arith.constant 9 : index
    %c0_119 = arith.constant 0 : index
    %464 = vector.load %arg13[%c0_117, %c9_118, %c0_119] : memref<2x16x128xf32, #tpu.memory_space<vmem>>, vector<2x1x128xf32>
    %465 = vector.shape_cast %464 : vector<2x1x128xf32> to vector<2x128xf32>
    %466 = vector.shape_cast %463 : vector<2x128xf32> to vector<2x1x128xf32>
    tpu.vector_store %arg13[%c0_117, %c9_118, %c0_119], %466 {strides = array<i32>} : memref<2x16x128xf32, #tpu.memory_space<vmem>>, vector<2x1x128xf32>,
    %c10 = arith.constant 10 : index
    %c0_120 = arith.constant 0 : index
    %c0_121 = arith.constant 0 : index
    %467 = vector.load %arg12[%c10, %c0_120, %c0_121] : memref<16x2x384xf32, #tpu.memory_space<vmem>>, vector<1x2x384xf32>
    %468 = vector.shape_cast %467 : vector<1x2x384xf32> to vector<2x384xf32>
    %469 = arith.truncf %459 : vector<2x128xf32> to vector<2x128xbf16>
    %cst_122 = arith.constant dense<0.000000e+00> : vector<2x384xf32>
    %470 = tpu.matmul %469, %13, %cst_122 {dimension_numbers = #tpu.dot_dimension_numbers<[1], [0], [0], [1], [0, 0, 1, 1], [], []>} : vector<2x128xbf16>, vector<128x384xbf16>, vector<2x384xf32> -> vector<2x384xf32>
    %471 = vector.broadcast %14 : vector<1x384xf32> to vector<2x384xf32>
    %472 = arith.addf %470, %471 : vector<2x384xf32>
    %473 = vector.extract_strided_slice %468 {offsets = [0, 0], sizes = [2, 128], strides = [1, 1]} : vector<2x384xf32> to vector<2x128xf32>
    %474 = vector.extract_strided_slice %472 {offsets = [0, 0], sizes = [2, 128], strides = [1, 1]} : vector<2x384xf32> to vector<2x128xf32>
    %475 = arith.addf %473, %474 : vector<2x128xf32>
    %476 = arith.negf %475 : vector<2x128xf32>
    %477 = math.exp %476 : vector<2x128xf32>
    %cst_123 = arith.constant 1.000000e+00 : f32
    %478 = vector.broadcast %cst_123 : f32 to vector<2x128xf32>
    %479 = arith.addf %478, %477 : vector<2x128xf32>
    %480 = arith.divf %478, %479 : vector<2x128xf32>
    %481 = vector.extract_strided_slice %468 {offsets = [0, 128], sizes = [2, 128], strides = [1, 1]} : vector<2x384xf32> to vector<2x128xf32>
    %482 = vector.extract_strided_slice %472 {offsets = [0, 128], sizes = [2, 128], strides = [1, 1]} : vector<2x384xf32> to vector<2x128xf32>
    %483 = arith.addf %481, %482 : vector<2x128xf32>
    %484 = arith.negf %483 : vector<2x128xf32>
    %485 = math.exp %484 : vector<2x128xf32>
    %cst_124 = arith.constant 1.000000e+00 : f32
    %486 = vector.broadcast %cst_124 : f32 to vector<2x128xf32>
    %487 = arith.addf %486, %485 : vector<2x128xf32>
    %488 = arith.divf %486, %487 : vector<2x128xf32>
    %489 = vector.extract_strided_slice %468 {offsets = [0, 256], sizes = [2, 128], strides = [1, 1]} : vector<2x384xf32> to vector<2x128xf32>
    %490 = vector.extract_strided_slice %472 {offsets = [0, 256], sizes = [2, 128], strides = [1, 1]} : vector<2x384xf32> to vector<2x128xf32>
    %491 = arith.mulf %480, %490 : vector<2x128xf32>
    %492 = arith.addf %489, %491 : vector<2x128xf32>
    %493 = math.tanh %492 : vector<2x128xf32>
    %cst_125 = arith.constant 1.000000e+00 : f32
    %494 = vector.broadcast %cst_125 : f32 to vector<2x128xf32>
    %495 = arith.subf %494, %488 : vector<2x128xf32>
    %496 = arith.mulf %495, %493 : vector<2x128xf32>
    %497 = arith.mulf %488, %459 : vector<2x128xf32>
    %498 = arith.addf %496, %497 : vector<2x128xf32>
    %c10_i32 = arith.constant 10 : i32
    %499 = arith.addi %15, %c10_i32 : i32
    %500 = vector.broadcast %499 : i32 to vector<2x1xi32>
    %501 = arith.cmpi sgt, %12, %500 : vector<2x1xi32>
    %502 = vector.shape_cast %501 : vector<2x1xi1> to vector<2x1xi1>
    %503 = vector.broadcast %502 : vector<2x1xi1> to vector<2x128xi1>
    %504 = arith.select %503, %498, %459 : vector<2x128xi1>, vector<2x128xf32>
    %cst_126 = arith.constant 1.000000e+00 : f32
    %505 = vector.shape_cast %501 : vector<2x1xi1> to vector<2x1xi1>
    %506 = vector.broadcast %505 : vector<2x1xi1> to vector<2x128xi1>
    %507 = vector.broadcast %cst_126 : f32 to vector<2x128xf32>
    %508 = arith.select %506, %498, %507 : vector<2x128xi1>, vector<2x128xf32>
    %c0_127 = arith.constant 0 : index
    %c10_128 = arith.constant 10 : index
    %c0_129 = arith.constant 0 : index
    %509 = vector.load %arg13[%c0_127, %c10_128, %c0_129] : memref<2x16x128xf32, #tpu.memory_space<vmem>>, vector<2x1x128xf32>
    %510 = vector.shape_cast %509 : vector<2x1x128xf32> to vector<2x128xf32>
    %511 = vector.shape_cast %508 : vector<2x128xf32> to vector<2x1x128xf32>
    tpu.vector_store %arg13[%c0_127, %c10_128, %c0_129], %511 {strides = array<i32>} : memref<2x16x128xf32, #tpu.memory_space<vmem>>, vector<2x1x128xf32>,
    %c11 = arith.constant 11 : index
    %c0_130 = arith.constant 0 : index
    %c0_131 = arith.constant 0 : index
    %512 = vector.load %arg12[%c11, %c0_130, %c0_131] : memref<16x2x384xf32, #tpu.memory_space<vmem>>, vector<1x2x384xf32>
    %513 = vector.shape_cast %512 : vector<1x2x384xf32> to vector<2x384xf32>
    %514 = arith.truncf %504 : vector<2x128xf32> to vector<2x128xbf16>
    %cst_132 = arith.constant dense<0.000000e+00> : vector<2x384xf32>
    %515 = tpu.matmul %514, %13, %cst_132 {dimension_numbers = #tpu.dot_dimension_numbers<[1], [0], [0], [1], [0, 0, 1, 1], [], []>} : vector<2x128xbf16>, vector<128x384xbf16>, vector<2x384xf32> -> vector<2x384xf32>
    %516 = vector.broadcast %14 : vector<1x384xf32> to vector<2x384xf32>
    %517 = arith.addf %515, %516 : vector<2x384xf32>
    %518 = vector.extract_strided_slice %513 {offsets = [0, 0], sizes = [2, 128], strides = [1, 1]} : vector<2x384xf32> to vector<2x128xf32>
    %519 = vector.extract_strided_slice %517 {offsets = [0, 0], sizes = [2, 128], strides = [1, 1]} : vector<2x384xf32> to vector<2x128xf32>
    %520 = arith.addf %518, %519 : vector<2x128xf32>
    %521 = arith.negf %520 : vector<2x128xf32>
    %522 = math.exp %521 : vector<2x128xf32>
    %cst_133 = arith.constant 1.000000e+00 : f32
    %523 = vector.broadcast %cst_133 : f32 to vector<2x128xf32>
    %524 = arith.addf %523, %522 : vector<2x128xf32>
    %525 = arith.divf %523, %524 : vector<2x128xf32>
    %526 = vector.extract_strided_slice %513 {offsets = [0, 128], sizes = [2, 128], strides = [1, 1]} : vector<2x384xf32> to vector<2x128xf32>
    %527 = vector.extract_strided_slice %517 {offsets = [0, 128], sizes = [2, 128], strides = [1, 1]} : vector<2x384xf32> to vector<2x128xf32>
    %528 = arith.addf %526, %527 : vector<2x128xf32>
    %529 = arith.negf %528 : vector<2x128xf32>
    %530 = math.exp %529 : vector<2x128xf32>
    %cst_134 = arith.constant 1.000000e+00 : f32
    %531 = vector.broadcast %cst_134 : f32 to vector<2x128xf32>
    %532 = arith.addf %531, %530 : vector<2x128xf32>
    %533 = arith.divf %531, %532 : vector<2x128xf32>
    %534 = vector.extract_strided_slice %513 {offsets = [0, 256], sizes = [2, 128], strides = [1, 1]} : vector<2x384xf32> to vector<2x128xf32>
    %535 = vector.extract_strided_slice %517 {offsets = [0, 256], sizes = [2, 128], strides = [1, 1]} : vector<2x384xf32> to vector<2x128xf32>
    %536 = arith.mulf %525, %535 : vector<2x128xf32>
    %537 = arith.addf %534, %536 : vector<2x128xf32>
    %538 = math.tanh %537 : vector<2x128xf32>
    %cst_135 = arith.constant 1.000000e+00 : f32
    %539 = vector.broadcast %cst_135 : f32 to vector<2x128xf32>
    %540 = arith.subf %539, %533 : vector<2x128xf32>
    %541 = arith.mulf %540, %538 : vector<2x128xf32>
    %542 = arith.mulf %533, %504 : vector<2x128xf32>
    %543 = arith.addf %541, %542 : vector<2x128xf32>
    %c11_i32 = arith.constant 11 : i32
    %544 = arith.addi %15, %c11_i32 : i32
    %545 = vector.broadcast %544 : i32 to vector<2x1xi32>
    %546 = arith.cmpi sgt, %12, %545 : vector<2x1xi32>
    %547 = vector.shape_cast %546 : vector<2x1xi1> to vector<2x1xi1>
    %548 = vector.broadcast %547 : vector<2x1xi1> to vector<2x128xi1>
    %549 = arith.select %548, %543, %504 : vector<2x128xi1>, vector<2x128xf32>
    %cst_136 = arith.constant 1.000000e+00 : f32
    %550 = vector.shape_cast %546 : vector<2x1xi1> to vector<2x1xi1>
    %551 = vector.broadcast %550 : vector<2x1xi1> to vector<2x128xi1>
    %552 = vector.broadcast %cst_136 : f32 to vector<2x128xf32>
    %553 = arith.select %551, %543, %552 : vector<2x128xi1>, vector<2x128xf32>
    %c0_137 = arith.constant 0 : index
    %c11_138 = arith.constant 11 : index
    %c0_139 = arith.constant 0 : index
    %554 = vector.load %arg13[%c0_137, %c11_138, %c0_139] : memref<2x16x128xf32, #tpu.memory_space<vmem>>, vector<2x1x128xf32>
    %555 = vector.shape_cast %554 : vector<2x1x128xf32> to vector<2x128xf32>
    %556 = vector.shape_cast %553 : vector<2x128xf32> to vector<2x1x128xf32>
    tpu.vector_store %arg13[%c0_137, %c11_138, %c0_139], %556 {strides = array<i32>} : memref<2x16x128xf32, #tpu.memory_space<vmem>>, vector<2x1x128xf32>,
    %c12 = arith.constant 12 : index
    %c0_140 = arith.constant 0 : index
    %c0_141 = arith.constant 0 : index
    %557 = vector.load %arg12[%c12, %c0_140, %c0_141] : memref<16x2x384xf32, #tpu.memory_space<vmem>>, vector<1x2x384xf32>
    %558 = vector.shape_cast %557 : vector<1x2x384xf32> to vector<2x384xf32>
    %559 = arith.truncf %549 : vector<2x128xf32> to vector<2x128xbf16>
    %cst_142 = arith.constant dense<0.000000e+00> : vector<2x384xf32>
    %560 = tpu.matmul %559, %13, %cst_142 {dimension_numbers = #tpu.dot_dimension_numbers<[1], [0], [0], [1], [0, 0, 1, 1], [], []>} : vector<2x128xbf16>, vector<128x384xbf16>, vector<2x384xf32> -> vector<2x384xf32>
    %561 = vector.broadcast %14 : vector<1x384xf32> to vector<2x384xf32>
    %562 = arith.addf %560, %561 : vector<2x384xf32>
    %563 = vector.extract_strided_slice %558 {offsets = [0, 0], sizes = [2, 128], strides = [1, 1]} : vector<2x384xf32> to vector<2x128xf32>
    %564 = vector.extract_strided_slice %562 {offsets = [0, 0], sizes = [2, 128], strides = [1, 1]} : vector<2x384xf32> to vector<2x128xf32>
    %565 = arith.addf %563, %564 : vector<2x128xf32>
    %566 = arith.negf %565 : vector<2x128xf32>
    %567 = math.exp %566 : vector<2x128xf32>
    %cst_143 = arith.constant 1.000000e+00 : f32
    %568 = vector.broadcast %cst_143 : f32 to vector<2x128xf32>
    %569 = arith.addf %568, %567 : vector<2x128xf32>
    %570 = arith.divf %568, %569 : vector<2x128xf32>
    %571 = vector.extract_strided_slice %558 {offsets = [0, 128], sizes = [2, 128], strides = [1, 1]} : vector<2x384xf32> to vector<2x128xf32>
    %572 = vector.extract_strided_slice %562 {offsets = [0, 128], sizes = [2, 128], strides = [1, 1]} : vector<2x384xf32> to vector<2x128xf32>
    %573 = arith.addf %571, %572 : vector<2x128xf32>
    %574 = arith.negf %573 : vector<2x128xf32>
    %575 = math.exp %574 : vector<2x128xf32>
    %cst_144 = arith.constant 1.000000e+00 : f32
    %576 = vector.broadcast %cst_144 : f32 to vector<2x128xf32>
    %577 = arith.addf %576, %575 : vector<2x128xf32>
    %578 = arith.divf %576, %577 : vector<2x128xf32>
    %579 = vector.extract_strided_slice %558 {offsets = [0, 256], sizes = [2, 128], strides = [1, 1]} : vector<2x384xf32> to vector<2x128xf32>
    %580 = vector.extract_strided_slice %562 {offsets = [0, 256], sizes = [2, 128], strides = [1, 1]} : vector<2x384xf32> to vector<2x128xf32>
    %581 = arith.mulf %570, %580 : vector<2x128xf32>
    %582 = arith.addf %579, %581 : vector<2x128xf32>
    %583 = math.tanh %582 : vector<2x128xf32>
    %cst_145 = arith.constant 1.000000e+00 : f32
    %584 = vector.broadcast %cst_145 : f32 to vector<2x128xf32>
    %585 = arith.subf %584, %578 : vector<2x128xf32>
    %586 = arith.mulf %585, %583 : vector<2x128xf32>
    %587 = arith.mulf %578, %549 : vector<2x128xf32>
    %588 = arith.addf %586, %587 : vector<2x128xf32>
    %c12_i32 = arith.constant 12 : i32
    %589 = arith.addi %15, %c12_i32 : i32
    %590 = vector.broadcast %589 : i32 to vector<2x1xi32>
    %591 = arith.cmpi sgt, %12, %590 : vector<2x1xi32>
    %592 = vector.shape_cast %591 : vector<2x1xi1> to vector<2x1xi1>
    %593 = vector.broadcast %592 : vector<2x1xi1> to vector<2x128xi1>
    %594 = arith.select %593, %588, %549 : vector<2x128xi1>, vector<2x128xf32>
    %cst_146 = arith.constant 1.000000e+00 : f32
    %595 = vector.shape_cast %591 : vector<2x1xi1> to vector<2x1xi1>
    %596 = vector.broadcast %595 : vector<2x1xi1> to vector<2x128xi1>
    %597 = vector.broadcast %cst_146 : f32 to vector<2x128xf32>
    %598 = arith.select %596, %588, %597 : vector<2x128xi1>, vector<2x128xf32>
    %c0_147 = arith.constant 0 : index
    %c12_148 = arith.constant 12 : index
    %c0_149 = arith.constant 0 : index
    %599 = vector.load %arg13[%c0_147, %c12_148, %c0_149] : memref<2x16x128xf32, #tpu.memory_space<vmem>>, vector<2x1x128xf32>
    %600 = vector.shape_cast %599 : vector<2x1x128xf32> to vector<2x128xf32>
    %601 = vector.shape_cast %598 : vector<2x128xf32> to vector<2x1x128xf32>
    tpu.vector_store %arg13[%c0_147, %c12_148, %c0_149], %601 {strides = array<i32>} : memref<2x16x128xf32, #tpu.memory_space<vmem>>, vector<2x1x128xf32>,
    %c13 = arith.constant 13 : index
    %c0_150 = arith.constant 0 : index
    %c0_151 = arith.constant 0 : index
    %602 = vector.load %arg12[%c13, %c0_150, %c0_151] : memref<16x2x384xf32, #tpu.memory_space<vmem>>, vector<1x2x384xf32>
    %603 = vector.shape_cast %602 : vector<1x2x384xf32> to vector<2x384xf32>
    %604 = arith.truncf %594 : vector<2x128xf32> to vector<2x128xbf16>
    %cst_152 = arith.constant dense<0.000000e+00> : vector<2x384xf32>
    %605 = tpu.matmul %604, %13, %cst_152 {dimension_numbers = #tpu.dot_dimension_numbers<[1], [0], [0], [1], [0, 0, 1, 1], [], []>} : vector<2x128xbf16>, vector<128x384xbf16>, vector<2x384xf32> -> vector<2x384xf32>
    %606 = vector.broadcast %14 : vector<1x384xf32> to vector<2x384xf32>
    %607 = arith.addf %605, %606 : vector<2x384xf32>
    %608 = vector.extract_strided_slice %603 {offsets = [0, 0], sizes = [2, 128], strides = [1, 1]} : vector<2x384xf32> to vector<2x128xf32>
    %609 = vector.extract_strided_slice %607 {offsets = [0, 0], sizes = [2, 128], strides = [1, 1]} : vector<2x384xf32> to vector<2x128xf32>
    %610 = arith.addf %608, %609 : vector<2x128xf32>
    %611 = arith.negf %610 : vector<2x128xf32>
    %612 = math.exp %611 : vector<2x128xf32>
    %cst_153 = arith.constant 1.000000e+00 : f32
    %613 = vector.broadcast %cst_153 : f32 to vector<2x128xf32>
    %614 = arith.addf %613, %612 : vector<2x128xf32>
    %615 = arith.divf %613, %614 : vector<2x128xf32>
    %616 = vector.extract_strided_slice %603 {offsets = [0, 128], sizes = [2, 128], strides = [1, 1]} : vector<2x384xf32> to vector<2x128xf32>
    %617 = vector.extract_strided_slice %607 {offsets = [0, 128], sizes = [2, 128], strides = [1, 1]} : vector<2x384xf32> to vector<2x128xf32>
    %618 = arith.addf %616, %617 : vector<2x128xf32>
    %619 = arith.negf %618 : vector<2x128xf32>
    %620 = math.exp %619 : vector<2x128xf32>
    %cst_154 = arith.constant 1.000000e+00 : f32
    %621 = vector.broadcast %cst_154 : f32 to vector<2x128xf32>
    %622 = arith.addf %621, %620 : vector<2x128xf32>
    %623 = arith.divf %621, %622 : vector<2x128xf32>
    %624 = vector.extract_strided_slice %603 {offsets = [0, 256], sizes = [2, 128], strides = [1, 1]} : vector<2x384xf32> to vector<2x128xf32>
    %625 = vector.extract_strided_slice %607 {offsets = [0, 256], sizes = [2, 128], strides = [1, 1]} : vector<2x384xf32> to vector<2x128xf32>
    %626 = arith.mulf %615, %625 : vector<2x128xf32>
    %627 = arith.addf %624, %626 : vector<2x128xf32>
    %628 = math.tanh %627 : vector<2x128xf32>
    %cst_155 = arith.constant 1.000000e+00 : f32
    %629 = vector.broadcast %cst_155 : f32 to vector<2x128xf32>
    %630 = arith.subf %629, %623 : vector<2x128xf32>
    %631 = arith.mulf %630, %628 : vector<2x128xf32>
    %632 = arith.mulf %623, %594 : vector<2x128xf32>
    %633 = arith.addf %631, %632 : vector<2x128xf32>
    %c13_i32 = arith.constant 13 : i32
    %634 = arith.addi %15, %c13_i32 : i32
    %635 = vector.broadcast %634 : i32 to vector<2x1xi32>
    %636 = arith.cmpi sgt, %12, %635 : vector<2x1xi32>
    %637 = vector.shape_cast %636 : vector<2x1xi1> to vector<2x1xi1>
    %638 = vector.broadcast %637 : vector<2x1xi1> to vector<2x128xi1>
    %639 = arith.select %638, %633, %594 : vector<2x128xi1>, vector<2x128xf32>
    %cst_156 = arith.constant 1.000000e+00 : f32
    %640 = vector.shape_cast %636 : vector<2x1xi1> to vector<2x1xi1>
    %641 = vector.broadcast %640 : vector<2x1xi1> to vector<2x128xi1>
    %642 = vector.broadcast %cst_156 : f32 to vector<2x128xf32>
    %643 = arith.select %641, %633, %642 : vector<2x128xi1>, vector<2x128xf32>
    %c0_157 = arith.constant 0 : index
    %c13_158 = arith.constant 13 : index
    %c0_159 = arith.constant 0 : index
    %644 = vector.load %arg13[%c0_157, %c13_158, %c0_159] : memref<2x16x128xf32, #tpu.memory_space<vmem>>, vector<2x1x128xf32>
    %645 = vector.shape_cast %644 : vector<2x1x128xf32> to vector<2x128xf32>
    %646 = vector.shape_cast %643 : vector<2x128xf32> to vector<2x1x128xf32>
    tpu.vector_store %arg13[%c0_157, %c13_158, %c0_159], %646 {strides = array<i32>} : memref<2x16x128xf32, #tpu.memory_space<vmem>>, vector<2x1x128xf32>,
    %c14 = arith.constant 14 : index
    %c0_160 = arith.constant 0 : index
    %c0_161 = arith.constant 0 : index
    %647 = vector.load %arg12[%c14, %c0_160, %c0_161] : memref<16x2x384xf32, #tpu.memory_space<vmem>>, vector<1x2x384xf32>
    %648 = vector.shape_cast %647 : vector<1x2x384xf32> to vector<2x384xf32>
    %649 = arith.truncf %639 : vector<2x128xf32> to vector<2x128xbf16>
    %cst_162 = arith.constant dense<0.000000e+00> : vector<2x384xf32>
    %650 = tpu.matmul %649, %13, %cst_162 {dimension_numbers = #tpu.dot_dimension_numbers<[1], [0], [0], [1], [0, 0, 1, 1], [], []>} : vector<2x128xbf16>, vector<128x384xbf16>, vector<2x384xf32> -> vector<2x384xf32>
    %651 = vector.broadcast %14 : vector<1x384xf32> to vector<2x384xf32>
    %652 = arith.addf %650, %651 : vector<2x384xf32>
    %653 = vector.extract_strided_slice %648 {offsets = [0, 0], sizes = [2, 128], strides = [1, 1]} : vector<2x384xf32> to vector<2x128xf32>
    %654 = vector.extract_strided_slice %652 {offsets = [0, 0], sizes = [2, 128], strides = [1, 1]} : vector<2x384xf32> to vector<2x128xf32>
    %655 = arith.addf %653, %654 : vector<2x128xf32>
    %656 = arith.negf %655 : vector<2x128xf32>
    %657 = math.exp %656 : vector<2x128xf32>
    %cst_163 = arith.constant 1.000000e+00 : f32
    %658 = vector.broadcast %cst_163 : f32 to vector<2x128xf32>
    %659 = arith.addf %658, %657 : vector<2x128xf32>
    %660 = arith.divf %658, %659 : vector<2x128xf32>
    %661 = vector.extract_strided_slice %648 {offsets = [0, 128], sizes = [2, 128], strides = [1, 1]} : vector<2x384xf32> to vector<2x128xf32>
    %662 = vector.extract_strided_slice %652 {offsets = [0, 128], sizes = [2, 128], strides = [1, 1]} : vector<2x384xf32> to vector<2x128xf32>
    %663 = arith.addf %661, %662 : vector<2x128xf32>
    %664 = arith.negf %663 : vector<2x128xf32>
    %665 = math.exp %664 : vector<2x128xf32>
    %cst_164 = arith.constant 1.000000e+00 : f32
    %666 = vector.broadcast %cst_164 : f32 to vector<2x128xf32>
    %667 = arith.addf %666, %665 : vector<2x128xf32>
    %668 = arith.divf %666, %667 : vector<2x128xf32>
    %669 = vector.extract_strided_slice %648 {offsets = [0, 256], sizes = [2, 128], strides = [1, 1]} : vector<2x384xf32> to vector<2x128xf32>
    %670 = vector.extract_strided_slice %652 {offsets = [0, 256], sizes = [2, 128], strides = [1, 1]} : vector<2x384xf32> to vector<2x128xf32>
    %671 = arith.mulf %660, %670 : vector<2x128xf32>
    %672 = arith.addf %669, %671 : vector<2x128xf32>
    %673 = math.tanh %672 : vector<2x128xf32>
    %cst_165 = arith.constant 1.000000e+00 : f32
    %674 = vector.broadcast %cst_165 : f32 to vector<2x128xf32>
    %675 = arith.subf %674, %668 : vector<2x128xf32>
    %676 = arith.mulf %675, %673 : vector<2x128xf32>
    %677 = arith.mulf %668, %639 : vector<2x128xf32>
    %678 = arith.addf %676, %677 : vector<2x128xf32>
    %c14_i32 = arith.constant 14 : i32
    %679 = arith.addi %15, %c14_i32 : i32
    %680 = vector.broadcast %679 : i32 to vector<2x1xi32>
    %681 = arith.cmpi sgt, %12, %680 : vector<2x1xi32>
    %682 = vector.shape_cast %681 : vector<2x1xi1> to vector<2x1xi1>
    %683 = vector.broadcast %682 : vector<2x1xi1> to vector<2x128xi1>
    %684 = arith.select %683, %678, %639 : vector<2x128xi1>, vector<2x128xf32>
    %cst_166 = arith.constant 1.000000e+00 : f32
    %685 = vector.shape_cast %681 : vector<2x1xi1> to vector<2x1xi1>
    %686 = vector.broadcast %685 : vector<2x1xi1> to vector<2x128xi1>
    %687 = vector.broadcast %cst_166 : f32 to vector<2x128xf32>
    %688 = arith.select %686, %678, %687 : vector<2x128xi1>, vector<2x128xf32>
    %c0_167 = arith.constant 0 : index
    %c14_168 = arith.constant 14 : index
    %c0_169 = arith.constant 0 : index
    %689 = vector.load %arg13[%c0_167, %c14_168, %c0_169] : memref<2x16x128xf32, #tpu.memory_space<vmem>>, vector<2x1x128xf32>
    %690 = vector.shape_cast %689 : vector<2x1x128xf32> to vector<2x128xf32>
    %691 = vector.shape_cast %688 : vector<2x128xf32> to vector<2x1x128xf32>
    tpu.vector_store %arg13[%c0_167, %c14_168, %c0_169], %691 {strides = array<i32>} : memref<2x16x128xf32, #tpu.memory_space<vmem>>, vector<2x1x128xf32>,
    %c15 = arith.constant 15 : index
    %c0_170 = arith.constant 0 : index
    %c0_171 = arith.constant 0 : index
    %692 = vector.load %arg12[%c15, %c0_170, %c0_171] : memref<16x2x384xf32, #tpu.memory_space<vmem>>, vector<1x2x384xf32>
    %693 = vector.shape_cast %692 : vector<1x2x384xf32> to vector<2x384xf32>
    %694 = arith.truncf %684 : vector<2x128xf32> to vector<2x128xbf16>
    %cst_172 = arith.constant dense<0.000000e+00> : vector<2x384xf32>
    %695 = tpu.matmul %694, %13, %cst_172 {dimension_numbers = #tpu.dot_dimension_numbers<[1], [0], [0], [1], [0, 0, 1, 1], [], []>} : vector<2x128xbf16>, vector<128x384xbf16>, vector<2x384xf32> -> vector<2x384xf32>
    %696 = vector.broadcast %14 : vector<1x384xf32> to vector<2x384xf32>
    %697 = arith.addf %695, %696 : vector<2x384xf32>
    %698 = vector.extract_strided_slice %693 {offsets = [0, 0], sizes = [2, 128], strides = [1, 1]} : vector<2x384xf32> to vector<2x128xf32>
    %699 = vector.extract_strided_slice %697 {offsets = [0, 0], sizes = [2, 128], strides = [1, 1]} : vector<2x384xf32> to vector<2x128xf32>
    %700 = arith.addf %698, %699 : vector<2x128xf32>
    %701 = arith.negf %700 : vector<2x128xf32>
    %702 = math.exp %701 : vector<2x128xf32>
    %cst_173 = arith.constant 1.000000e+00 : f32
    %703 = vector.broadcast %cst_173 : f32 to vector<2x128xf32>
    %704 = arith.addf %703, %702 : vector<2x128xf32>
    %705 = arith.divf %703, %704 : vector<2x128xf32>
    %706 = vector.extract_strided_slice %693 {offsets = [0, 128], sizes = [2, 128], strides = [1, 1]} : vector<2x384xf32> to vector<2x128xf32>
    %707 = vector.extract_strided_slice %697 {offsets = [0, 128], sizes = [2, 128], strides = [1, 1]} : vector<2x384xf32> to vector<2x128xf32>
    %708 = arith.addf %706, %707 : vector<2x128xf32>
    %709 = arith.negf %708 : vector<2x128xf32>
    %710 = math.exp %709 : vector<2x128xf32>
    %cst_174 = arith.constant 1.000000e+00 : f32
    %711 = vector.broadcast %cst_174 : f32 to vector<2x128xf32>
    %712 = arith.addf %711, %710 : vector<2x128xf32>
    %713 = arith.divf %711, %712 : vector<2x128xf32>
    %714 = vector.extract_strided_slice %693 {offsets = [0, 256], sizes = [2, 128], strides = [1, 1]} : vector<2x384xf32> to vector<2x128xf32>
    %715 = vector.extract_strided_slice %697 {offsets = [0, 256], sizes = [2, 128], strides = [1, 1]} : vector<2x384xf32> to vector<2x128xf32>
    %716 = arith.mulf %705, %715 : vector<2x128xf32>
    %717 = arith.addf %714, %716 : vector<2x128xf32>
    %718 = math.tanh %717 : vector<2x128xf32>
    %cst_175 = arith.constant 1.000000e+00 : f32
    %719 = vector.broadcast %cst_175 : f32 to vector<2x128xf32>
    %720 = arith.subf %719, %713 : vector<2x128xf32>
    %721 = arith.mulf %720, %718 : vector<2x128xf32>
    %722 = arith.mulf %713, %684 : vector<2x128xf32>
    %723 = arith.addf %721, %722 : vector<2x128xf32>
    %c15_i32 = arith.constant 15 : i32
    %724 = arith.addi %15, %c15_i32 : i32
    %725 = vector.broadcast %724 : i32 to vector<2x1xi32>
    %726 = arith.cmpi sgt, %12, %725 : vector<2x1xi32>
    %727 = vector.shape_cast %726 : vector<2x1xi1> to vector<2x1xi1>
    %728 = vector.broadcast %727 : vector<2x1xi1> to vector<2x128xi1>
    %729 = arith.select %728, %723, %684 : vector<2x128xi1>, vector<2x128xf32>
    %cst_176 = arith.constant 1.000000e+00 : f32
    %730 = vector.shape_cast %726 : vector<2x1xi1> to vector<2x1xi1>
    %731 = vector.broadcast %730 : vector<2x1xi1> to vector<2x128xi1>
    %732 = vector.broadcast %cst_176 : f32 to vector<2x128xf32>
    %733 = arith.select %731, %723, %732 : vector<2x128xi1>, vector<2x128xf32>
    %c0_177 = arith.constant 0 : index
    %c15_178 = arith.constant 15 : index
    %c0_179 = arith.constant 0 : index
    %734 = vector.load %arg13[%c0_177, %c15_178, %c0_179] : memref<2x16x128xf32, #tpu.memory_space<vmem>>, vector<2x1x128xf32>
    %735 = vector.shape_cast %734 : vector<2x1x128xf32> to vector<2x128xf32>
    %736 = vector.shape_cast %733 : vector<2x128xf32> to vector<2x1x128xf32>
    tpu.vector_store %arg13[%c0_177, %c15_178, %c0_179], %736 {strides = array<i32>} : memref<2x16x128xf32, #tpu.memory_space<vmem>>, vector<2x1x128xf32>,
    %c0_180 = arith.constant 0 : index
    %c0_181 = arith.constant 0 : index
    %737 = vector.load %arg11[%c0_180, %c0_181] : memref<2x128xf32, #tpu.memory_space<vmem>>, vector<2x128xf32>
    tpu.vector_store %arg11[%c0_180, %c0_181], %729 {strides = array<i32>} : memref<2x128xf32, #tpu.memory_space<vmem>>, vector<2x128xf32>,
    %c0_182 = arith.constant 0 : index
    %c0_183 = arith.constant 0 : index
    %c0_184 = arith.constant 0 : index
    %738 = vector.load %arg13[%c0_182, %c0_183, %c0_184] : memref<2x16x128xf32, #tpu.memory_space<vmem>>, vector<2x16x128xf32>
    %739 = arith.truncf %738 : vector<2x16x128xf32> to vector<2x16x128xbf16>
    %c0_185 = arith.constant 0 : index
    %c0_186 = arith.constant 0 : index
    %c0_187 = arith.constant 0 : index
    %740 = vector.load %arg9[%c0_185, %c0_186, %c0_187] : memref<2x16x128xbf16, #tpu.memory_space<vmem>>, vector<2x16x128xbf16>
    tpu.vector_store %arg9[%c0_185, %c0_186, %c0_187], %739 {strides = array<i32>} : memref<2x16x128xbf16, #tpu.memory_space<vmem>>, vector<2x16x128xbf16>,
    %c1_i32_188 = arith.constant 1 : i32
    %741 = arith.cmpi eq, %arg1, %c1_i32_188 : i32
    %742 = arith.extui %741 : i1 to i32
    %c0_i32_189 = arith.constant 0 : i32
    %743 = arith.cmpi ne, %742, %c0_i32_189 : i32
    scf.if %743 {
      %c0_190 = arith.constant 0 : index
      %c0_191 = arith.constant 0 : index
      %c0_192 = arith.constant 0 : index
      %744 = vector.load %arg10[%c0_190, %c0_191, %c0_192] : memref<1x2x128xf32, #tpu.memory_space<vmem>>, vector<1x2x128xf32>
      %745 = vector.shape_cast %744 : vector<1x2x128xf32> to vector<2x128xf32>
      %746 = vector.shape_cast %729 : vector<2x128xf32> to vector<1x2x128xf32>
      tpu.vector_store %arg10[%c0_190, %c0_191, %c0_192], %746 {strides = array<i32>} : memref<1x2x128xf32, #tpu.memory_space<vmem>>, vector<1x2x128xf32>,
    } else {
    }
    return
  }
  func.func @transform_0(%arg0: i32, %arg1: i32) -> (i32, i32) {
    %c0_i32 = arith.constant 0 : i32
    %c0_i32_0 = arith.constant 0 : i32
    return %arg0, %c0_i32 : i32, i32
  }
  func.func @transform_1(%arg0: i32, %arg1: i32) -> (i32, i32, i32) {
    %c0_i32 = arith.constant 0 : i32
    %c0_i32_0 = arith.constant 0 : i32
    return %arg1, %arg0, %c0_i32 : i32, i32, i32
  }
  func.func @transform_2(%arg0: i32, %arg1: i32) -> (i32, i32, i32) {
    %c0_i32 = arith.constant 0 : i32
    %c0_i32_0 = arith.constant 0 : i32
    %c0_i32_1 = arith.constant 0 : i32
    return %c0_i32, %arg0, %c0_i32_0 : i32, i32, i32
  }
  func.func @transform_3(%arg0: i32, %arg1: i32) -> (i32, i32) {
    %c0_i32 = arith.constant 0 : i32
    %c0_i32_0 = arith.constant 0 : i32
    %c0_i32_1 = arith.constant 0 : i32
    return %c0_i32, %c0_i32_0 : i32, i32
  }
  func.func @transform_4(%arg0: i32, %arg1: i32) -> (i32, i32) {
    %c0_i32 = arith.constant 0 : i32
    %c0_i32_0 = arith.constant 0 : i32
    %c0_i32_1 = arith.constant 0 : i32
    return %c0_i32, %c0_i32_0 : i32, i32
  }
  func.func @transform_5(%arg0: i32, %arg1: i32) -> (i32, i32) {
    %c0_i32 = arith.constant 0 : i32
    %c0_i32_0 = arith.constant 0 : i32
    %c0_i32_1 = arith.constant 0 : i32
    return %c0_i32, %c0_i32_0 : i32, i32
  }
  func.func @transform_6(%arg0: i32, %arg1: i32) -> (i32, i32) {
    %c0_i32 = arith.constant 0 : i32
    %c0_i32_0 = arith.constant 0 : i32
    %c0_i32_1 = arith.constant 0 : i32
    return %c0_i32, %c0_i32_0 : i32, i32
  }
  func.func @transform_7(%arg0: i32, %arg1: i32) -> (i32, i32, i32) {
    %c0_i32 = arith.constant 0 : i32
    %c0_i32_0 = arith.constant 0 : i32
    return %arg0, %arg1, %c0_i32 : i32, i32, i32
  }
  func.func @transform_8(%arg0: i32, %arg1: i32) -> (i32, i32, i32) {
    %c0_i32 = arith.constant 0 : i32
    %c0_i32_0 = arith.constant 0 : i32
    %c0_i32_1 = arith.constant 0 : i32
    return %c0_i32, %arg0, %c0_i32_0 : i32, i32, i32
  }
}

</mosaic_0001>

<bundles_post_ra>
// kernel: tpu_custom_call.1
= control target key start
LH: loop header
LB: loop body
LE: loop exit
PB: predicated region body
PF: predicated region fallthrough
CT: control target
= control target key end

     0   :  { %s6166_s0 = inlined_call_operand.vmem [shape: s32[2,1], index: 0, kind: input, shape index: {}]   ;;  %s6167_s1 = inlined_call_operand.hbm [shape: bf16[32,2,32], index: 1, kind: input, shape index: {}]   ;;  %s6168_s2 = inlined_call_operand.vmem [shape: f32[1,2,128], index: 2, kind: input, shape index: {}]   ;;  %s6169_s3 = inlined_call_operand.hbm [shape: bf16[32,384], index: 3, kind: input, shape index: {}]   ;;  %s6170_s4 = inlined_call_operand.hbm [shape: bf16[128,384], index: 4, kind: input, shape index: {}]   ;;  %s6171_s5 = inlined_call_operand.vmem [shape: f32[1,384], index: 5, kind: input, shape index: {}]   ;;  %s6172_s6 = inlined_call_operand.vmem [shape: f32[1,384], index: 6, kind: input, shape index: {}]   ;;  %s6173_s7 = inlined_call_operand.hbm [shape: bf16[2,32,128], index: 7, kind: output, shape index: {0}]   ;;  %s6174_s8 = inlined_call_operand.hbm [shape: f32[1,2,128], index: 8, kind: output, shape index: {1}]  }
   0x1   :  { %6184 = sst [smem:[#allocation22_spill]] %s6174_s8 }
   0x2   :  { %14 = vsyncpa [#allocation6], 0 }
   0x3   :  { %16 = vsyncpa [#allocation6 + $0x1], 0 }
   0x4   :  { %17 = vsyncpa [#allocation9], 0 }
   0x5   :  { %18 = vsyncpa [#allocation7], 0 }
   0x6   :  { %20 = vsyncpa [#allocation7 + $0x1], 0 }
   0x7   :  { %21 = vsyncpa [#allocation13], 0  ;;  %s4889_s27 = smov 0   ;;  %s4891_s28 = smov 0  }
   0x8   :  { %s4893_s29 = smov 0   ;;  %s4895_s30 = smov 0  }
   0x9   :  { %s4897_s9 = smov 0   ;;  %s4899_s10 = smov 0  }
   0xa LB: > { %6185 = sst [smem:[#allocation20_spill]] %s4802_s27  ;;  %s3665_s11 = sadd.s32 4294967295, %s4822_s10   ;;  %s4822_s10 = sphi %s4899_s10, %s27_s10   ;;  %s4818_s9 = sphi %s4897_s9, %s6208_s9   ;;  %s4814_s30 = sphi %s4895_s30, %s6207_s30   ;;  %s4810_s29 = sphi %s4893_s29, %s6206_s29   ;;  %s4806_s28 = sphi %s4891_s28, %s6205_s28   ;;  %s4802_s27 = sphi %s4889_s27, %s6204_s27  }
   0xb   : > { %s3666_s12 = sadd.s32 4294967294, %s4822_s10   ;;  %p87_p0 = scmp.ne.s32.totalorder %s4806_s28, %s4802_s27 }
   0xc   : > { %p4923_p1 = scmp.eq.s32.totalorder %s3665_s11, 0  ;;  %p4927_p2 = scmp.eq.s32.totalorder %s3665_s11, 1 }
   0xd   : > { %p229_p3 = scmp.eq.s32.totalorder %s3666_s12, 1  ;;  %p3667_p5 = scmp.ge.s32.totalorder %s4822_s10, 1 }
   0xe   : > { %s6186_s13 = scalar_select %p4923_p1, 1, 0 }
   0xf   : > { %s6187_s14 = scalar_select %p4927_p2, 1, 0 }
  0x10   : > { %p4933_p4 = por %p4923_p1, %p87_p0  ;;  %p4938_p6 = por %p229_p3, %p87_p0 }
  0x11   : > { %p262_p7 = scmp.lt.s32.totalorder %s4822_s10, 3  ;;  %s4824_s18 = smov [#allocation8]  }
  0x12   : > { %s6188_s15 = scalar_select %p4933_p4, 1, 0 }
  0x13   : > { %s6189_s16 = scalar_select %p4938_p6, 1, 0 }
  0x14   : > { %p4943_p8 = pnand %p3667_p5, %p262_p7  ;;  %s288_s19 = sshll.u32 %s4824_s18, 4  ;;  %s4947_s19 = int_to_ptr.vmem [resolvable:$true] %s288_s19 }
  0x15   : > { %6190 = sst [smem:[#allocation21_spill]] %s6189_s16  ;;  %s4825_s21 = smov [#allocation10]  }
  0x16   : > { %p4308_p9 = pneg %p4943_p8  ;;  %s301_s22 = sshll.u32 %s4825_s21, 4  ;;  %s4958_s22 = int_to_ptr.vmem [resolvable:$true] %s301_s22 }
  0x17   : > { %s4648_s25 = scalar_lea.hbm %s6169_s3, 768 }
  0x18   : > { %p4954_p11 = pnand %p4308_p9, %p4923_p1  ;;  %p4649_p12 = scmp.ne.s32.totalorder %s6169_s3, %s4648_s25 }
  0x19   : > { %p4655_p5 = scmp.lt.u32.totalorder %s4648_s25, %s6169_s3 }
  0x1a   : > { %p4650_p13 = pneg %p4954_p11 }
  0x1c   : > { %p4651_p0 = pnand %p4650_p13, %p4649_p12 }
  0x1e   : > { %p4652_p3 = pneg %p4651_p0 }
  0x20   : > { %p4657_p7 = pnand %p4655_p5, %p4652_p3 }
  0x22   : > { %4660 = shalt.err (!%p4657_p7)
}
  0x23   : > { %s4661_s21 = scalar_lea.vmem %s4947_s19, 768  ;;  %p4669_p1 = scmp.lt.s32.totalorder %s4947_s19, %s4947_s19 }
  0x24   : > { %p4662_p9 = scmp.ne.s32.totalorder %s4947_s19, %s4661_s21  ;;  %p4670_p12 = scmp.lt.s32.totalorder %s4661_s21, %s4661_s21 }
  0x26   : > { %p4664_p10 = pnand %p4662_p9, %p4650_p13  ;;  %p4671_p0 = por %p4670_p12, %p4669_p1 }
  0x28   : > { %p4665_p6 = pneg %p4664_p10 }
  0x2a   : > { %p4672_p4 = pnand %p4671_p0, %p4665_p6 }
  0x2c   : > { %4675 = shalt.err (!%p4672_p4)
}
  0x2d   : > { %s4826_s23 = smov 192   ;;  %s4827_s24 = smov 12  }
  0x2e   : > { %4311 = dma.hbm_to_vmem [thread:$0]  (!%p4954_p11), %s6169_s3, 768, %s4947_s19, [#allocation9], %s4826_s23, %s4826_s23, %s4827_s24  }
  0x2f   : > { %s4676_s18 = scalar_lea.hbm %s6170_s4, 3072 }
  0x30   : > { %p4677_p1 = scmp.ne.s32.totalorder %s6170_s4, %s4676_s18  ;;  %p4683_p10 = scmp.lt.u32.totalorder %s4676_s18, %s6170_s4 }
  0x32   : > { %p4679_p4 = pnand %p4677_p1, %p4650_p13 }
  0x34   : > { %p4680_p6 = pneg %p4679_p4 }
  0x36   : > { %p4685_p3 = pnand %p4683_p10, %p4680_p6 }
  0x38   : > { %4688 = shalt.err (!%p4685_p3)
}
  0x39   : > { %s4689_s19 = scalar_lea.vmem %s4958_s22, 3072  ;;  %p4697_p12 = scmp.lt.s32.totalorder %s4958_s22, %s4958_s22 }
  0x3a   : > { %p4690_p5 = scmp.ne.s32.totalorder %s4958_s22, %s4689_s19  ;;  %p4698_p0 = scmp.lt.s32.totalorder %s4689_s19, %s4689_s19 }
  0x3c   : > { %p4692_p7 = pnand %p4690_p5, %p4650_p13  ;;  %p4699_p1 = por %p4698_p0, %p4697_p12 }
  0x3e   : > { %p4693_p9 = pneg %p4692_p7 }
  0x40   : > { %p4700_p4 = pnand %p4699_p1, %p4693_p9 }
  0x42   : > { %4703 = shalt.err (!%p4700_p4)
}
  0x43   : > { %4314 = dma.hbm_to_vmem [thread:$0]  (!%p4954_p11), %s6170_s4, 3072, %s4958_s22, [#allocation9], %s4826_s23, %s4826_s23, %s4827_s24  }
  0x44   : > { %s36_s16 = sadd.s32 1, %s4818_s9  ;;  %s74_s25 = sadd.s32 1, %s4810_s29 }
  0x45   : > { %p37_p13 = scmp.ge.s32.totalorder %s36_s16, 2  ;;  %p81_p6 = scmp.ne.s32.totalorder %s4810_s29, %s4806_s28 }
  0x46   : > { %p82_p10 = scmp.eq.s32.totalorder %s4822_s10, 0  ;;  %p4325_p3 = scmp.lt.s32.totalorder %s4822_s10, 2 }
  0x47   : > { %s6210_s16 = smov (%p37_p13, %s36_s16), 0  ;;  %p5022_p7 = por %p4927_p2, %p81_p6 }
  0x48   : > { %p83_p5 = por %p82_p10, %p81_p6  ;;  %s69_s26 = ssub.s32 %s4818_s9, %s6210_s16 }
  0x49   : > { %s6193_s20 = scalar_select %p5022_p7, 1, 0 }
  0x4a   : > { %s321_s11 = sand.u32 1, %s4810_s29   ;;  %p72_p9 = scmp.eq.s32.totalorder %s69_s26, 0 }
  0x4b   : > { %s3673_s22 = sshll.u32 %s321_s11, 4  ;;  %s3793_s23 = sshll.u32 %s4818_s9, 8 }
  0x4c   : > { %s5031_s24 = scalar_select %p72_p9, %s4810_s29, %s74_s25  }
  0x4d   : > { %s5036_s21 = scalar_lea.hbm %s6167_s1, %s3793_s23  ;;  %s325_s19 = scalar_lea.vmem [#allocation5], %s3673_s22 }
  0x4e   : > { %s333_s8 = sshll.u32 %s325_s19, 4  ;;  %p5040_p11 = pnand %p4325_p3, %p83_p5  ;;  %s5044_s8 = int_to_ptr.vmem [resolvable:$true] %s333_s8 }
  0x4f   : > { %s5046_s25 = scalar_lea.sflag [#allocation6], %s321_s11  ;;  %s4704_s26 = scalar_lea.hbm %s5036_s21, 256 }
  0x50   : > { %p4705_p12 = scmp.ne.s32.totalorder %s5036_s21, %s4704_s26  ;;  %p4706_p0 = pneg %p5040_p11 }
  0x51   : > { %s4709_s12 = scalar_lea.hbm %s6167_s1, 512  ;;  %p4710_p13 = scmp.lt.u32.totalorder %s5036_s21, %s6167_s1 }
  0x52   : > { %p4707_p1 = pnand %p4706_p0, %p4705_p12  ;;  %p4711_p6 = scmp.lt.u32.totalorder %s4709_s12, %s4704_s26 }
  0x53   : > { %p4713_p3 = scmp.lt.u32.totalorder %s4704_s26, %s5036_s21 }
  0x54   : > { %p4708_p4 = pneg %p4707_p1  ;;  %p4712_p10 = por %p4711_p6, %p4710_p13 }
  0x56   : > { %p4714_p5 = por %p4713_p3, %p4712_p10 }
  0x58   : > { %p4715_p9 = pnand %p4714_p5, %p4708_p4 }
  0x5a   : > { %4718 = shalt.err (!%p4715_p9)
}
  0x5b   : > { %s4719_s11 = scalar_lea.vmem %s5044_s8, 256  ;;  %s4828_s22 = smov [#allocation5]  }
  0x5c   : > { %p4720_p12 = scmp.ne.s32.totalorder %s5044_s8, %s4719_s11  ;;  %s4724_s23 = sshll.u32 %s4828_s22, 4  ;;  %s4725_s23 = int_to_ptr.vmem [resolvable:$false] %s4724_s23 }
  0x5d   : > { %s4726_s18 = scalar_lea.vmem %s4725_s23, 512  ;;  %p4727_p7 = scmp.lt.s32.totalorder %s5044_s8, %s4725_s23 }
  0x5e   : > { %p4722_p1 = pnand %p4720_p12, %p4706_p0  ;;  %p4728_p13 = scmp.lt.s32.totalorder %s4726_s18, %s4719_s11 }
  0x60   : > { %p4723_p2 = pneg %p4722_p1  ;;  %p4729_p6 = por %p4728_p13, %p4727_p7 }
  0x62   : > { %p4730_p10 = pnand %p4729_p6, %p4723_p2 }
  0x64   : > { %4733 = shalt.err (!%p4730_p10)
}
  0x65   : > { %s4829_s26 = smov 16   ;;  %s4830_s12 = smov 1  }
  0x66   : > { %4318 = dma.hbm_to_vmem [thread:$0]  (!%p5040_p11), %s5036_s21, 256, %s5044_s8, %s5046_s25, %s4829_s26, %s4829_s26, %s4830_s12  }
  0x67   : > { %345 = sbr.rel (%p4943_p8) target bundleno = 4452 (0x1164), region = 48  ;;  %s5077_s19 = sand.u32 (!%p4943_p8), 1, %s4806_s28  }
  0x68   : > { %s3677_s11 = sshll.u32 (!%p4943_p8), %s5077_s19, 4  ;;  %s348_s22 = scalar_lea.sflag (!%p4943_p8), [#allocation6], %s5077_s19 }
  0x69   : > { %s5081_s23 = scalar_lea.vmem (!%p4943_p8), [#allocation5], %s3677_s11  ;;  %p6195_p2 = scmp.ne.s32.totalorder (!%p4943_p8), %s6188_s15, 0 }
  0x6e   : > { %4785 = dma.done.wait (%p6195_p2), %s348_s22, 256  }
  0x6f   : > { %4787 = vsyncadd (%p6195_p2), %s348_s22, 4294967040  ;;  %p6196_p7 = scmp.ne.s32.totalorder %s6186_s13, 0 }
  0x71   : > { %4789 = dma.done.wait (%p6196_p7), [#allocation9], 3840  }
  0x72   : > { %4791 = vsyncadd (%p6196_p7), [#allocation9], 4294963456  ;;  %s5091_s17 = scalar_lea.vmem [#allocation11], %s3677_s11  ;;  %p3681_p8 = scmp.ne.s32.totalorder %s4814_s30, 0 }
  0x73   : > { %v416_v0 = vld [vmem:[%s6168_s2] sm:$0x3] (!%p3681_p8) }
  0x74   : > { %415 = sbr.rel (%p3681_p8) target bundleno = 123 (0x7b), region = 64  ;;  %417 = vst [vmem:[#allocation2] sm:$0x3] (!%p3681_p8), %v416_v0 }
  0x7b PF: > { %v4400_v1 = vld [vmem:[#allocation8 + $0x4] ss:$12 sps:$4 sm:$0xff]   ;;  %v4402_v2 = vld [vmem:[#allocation8] ss:$12 sps:$4 sm:$0xff]   ;;  %v4831_v3 = vmov 0   ;;  %v444_v4 = vlaneseq  ;;  %v4833_v28 = vmov 0.0  }
  0x7c   : > { %644 = vmatprep.mubr.bf16.mxu0 %v4831_v3  ;;  %4398 = vset.pattern.permute.xlu0 %v4831_v3  ;;  %v4403_v5 = vld [vmem:[#allocation8 + $0x8] ss:$12 sps:$4 sm:$0xff]   ;;  %v4406_v7 = vld [vmem:[#allocation8 + $0x18] ss:$12 sps:$4 sm:$0xff]   ;;  %v4407_v8 = vld [vmem:[#allocation8 + $0x20] ss:$12 sps:$4 sm:$0xff]  }
  0x7d   : > { %612 = vmatprep.subr.bf16.mxu0 %v4400_v1  ;;  %4399 = vset.pattern.permute.xlu1 %v4831_v3  ;;  %v4404_v6 = vld [vmem:[#allocation8 + $0x1c] ss:$12 sps:$4 sm:$0xff]   ;;  %v5100_v9 = vld [vmem:[#allocation10 + $0x4] ss:$12 sps:$4 sm:$0xff]   ;;  %v5102_v10 = vshrl.u32 %v444_v4, 7  ;;  %vm605_vm0 = vcmask 261120  }
  0x7e   : > { %613 = vmatpush1.bf16.msra.mxu0 %v4402_v2  ;;  %3958 = vmatprep.subr.bf16.mxu1 %v4403_v5  ;;  %v418_v11 = vld [vmem:[%s5081_s23] sm:$0x1]  ;;  %v419_v12 = vld [vmem:[%s5081_s23 + $0x1] sm:$0x1]  ;;  %v420_v13 = vld [vmem:[%s5081_s23 + $0x2] sm:$0x1] }
  0x7f   : > { %3959 = vmatpush3.bf16.msra.mxu1 %v4403_v5  ;;  %614 = vmatprep.subr.bf16.mxu0 %v4404_v6  ;;  %v421_v14 = vld [vmem:[%s5081_s23 + $0x3] sm:$0x1]  ;;  %v422_v15 = vld [vmem:[%s5081_s23 + $0x4] sm:$0x1]  ;;  %v423_v16 = vld [vmem:[%s5081_s23 + $0x5] sm:$0x1]  ;;  %v475_v24 = vcombine.low %v418_v11, %v419_v12 }
  0x80   : > { %3960 = vmatprep.subr.bf16.mxu1 %v4407_v8  ;;  %v424_v17 = vld [vmem:[%s5081_s23 + $0x6] sm:$0x1]  ;;  %v425_v18 = vld [vmem:[%s5081_s23 + $0x7] sm:$0x1]  ;;  %v4832_v19 = vmov 1966171168   ;;  %v476_v29 = vcombine.low %v420_v13, %v421_v14  ;;  %v477_v30 = vcombine.low %v422_v15, %v423_v16 }
  0x81   : > { %v480_v20 = vunpack.c.l.s4 %v4832_v19  ;;  %v426_v21 = vld [vmem:[%s5081_s23 + $0x8] sm:$0x1]  ;;  %v427_v22 = vld [vmem:[%s5081_s23 + $0x9] sm:$0x1]  ;;  %v428_v23 = vld [vmem:[%s5081_s23 + $0xa] sm:$0x1]  ;;  %v478_v31 = vcombine.low %v424_v17, %v425_v18 }
  0x82   : > { %615 = vmatpush1.bf16.msra.mxu0 %v4406_v7  ;;  %v429_v25 = vld [vmem:[%s5081_s23 + $0xb] sm:$0x1]  ;;  %v430_v26 = vld [vmem:[%s5081_s23 + $0xc] sm:$0x1]  ;;  %v431_v27 = vld [vmem:[%s5081_s23 + $0xd] sm:$0x1]  ;;  %v524_v35 = vcombine.low %v426_v21, %v427_v22 }
  0x83   : > { %1080 = vmatprep.subr.bf16.mxu0 %v5100_v9  ;;  %3961 = vmatpush3.bf16.msra.mxu1 %v4407_v8  ;;  %v481_v32 = vunpack.c.0.s8 %v480_v20  ;;  %v432_v33 = vld [vmem:[%s5081_s23 + $0xe] sm:$0x1]  ;;  %v433_v34 = vld [vmem:[%s5081_s23 + $0xf] sm:$0x1]  ;;  %v525_v36 = vcombine.low %v428_v23, %v429_v25  ;;  %v526_v37 = vcombine.low %v430_v26, %v431_v27  ;;  %s5142_s13 = sshll.u32 %s4814_s30, 4  ;;  %vm4834_vm1 = vmmov 0  }
  0x84   : > { %3966 = vmatprep.subr.bf16.mxu1 %v4833_v28  ;;  %v527_v38 = vcombine.low %v432_v33, %v433_v34  ;;  %v5135_v54 = vld [vmem:[#allocation10] ss:$12 sps:$4 sm:$0xff]   ;;  %v5139_v58 = vld [vmem:[#allocation10 + $0x1c] ss:$12 sps:$4 sm:$0xff]   ;;  %s1333_s15 = sadd.s32 1, %s5142_s13  ;;  %v1187_v0 = vstv %s5142_s13  ;;  %s1774_s18 = sadd.s32 4, %s5142_s13 }
  0x85   : > { %v5123_v39 = vsub.s32 %v481_v32, %v5102_v10  ;;  %v5144_v60 = vld [vmem:[#allocation10 + $0x8] ss:$12 sps:$4 sm:$0xff]   ;;  %v5151_v61 = vld [vmem:[#allocation10 + $0x18] ss:$12 sps:$4 sm:$0xff]   ;;  %v5158_v63 = vld [vmem:[#allocation10 + $0x20] ss:$12 sps:$4 sm:$0xff]   ;;  %v1334_v2 = vstv %s1333_s15  ;;  %v1775_v11 = vstv %s1774_s18 }
  0x86   : > { %v5154_v62 = vld [vmem:[#allocation10 + $0x34] ss:$12 sps:$4 sm:$0xff]   ;;  %v5165_v1 = vld [vmem:[#allocation10 + $0x30] ss:$12 sps:$4 sm:$0xff]   ;;  %v5168_v4 = vld [vmem:[#allocation10 + $0x4c] ss:$12 sps:$4 sm:$0xff]  }
  0x87   : > { %v485_v40 = vrot.slane %v475_v24, %v5123_v39  ;;  %v492_v41 = vrot.slane %v476_v29, %v5123_v39  ;;  %v499_v42 = vrot.slane %v477_v30, %v5123_v39  ;;  %v506_v43 = vrot.slane %v478_v31, %v5123_v39  ;;  %v5173_v5 = vld [vmem:[%s6166_s0] sm:$0x3]  ;;  %v5177_v6 = vld [vmem:[#allocation10 + $0x38] ss:$12 sps:$4 sm:$0xff]   ;;  %s2068_s26 = sadd.s32 6, %s5142_s13  ;;  %s2362_s12 = sadd.s32 8, %s5142_s13 }
  0x88   : > { %v534_v44 = vrot.slane %v524_v35, %v5123_v39  ;;  %v541_v45 = vrot.slane %v525_v36, %v5123_v39  ;;  %v548_v46 = vrot.slane %v526_v37, %v5123_v39  ;;  %v555_v47 = vrot.slane %v527_v38, %v5123_v39  ;;  %v5185_v8 = vld [vmem:[#allocation10 + $0x48] ss:$12 sps:$4 sm:$0xff]   ;;  %v5189_v12 = vld [vmem:[#allocation10 + $0x64] ss:$12 sps:$4 sm:$0xff]   ;;  %v5199_v15 = vld [vmem:[#allocation10 + $0x60] ss:$12 sps:$4 sm:$0xff]  }
  0x89   : > { %v507_v48 = vcombine.low %v485_v40, %v492_v41  ;;  %v508_v49 = vcombine.low %v499_v42, %v506_v43  ;;  %vm1188_vm2 = vcmp.gt.s32.totalorder %v5173_v5, %v1187_v0  ;;  %vm1335_vm3 = vcmp.gt.s32.totalorder %v5173_v5, %v1334_v2  ;;  %v5193_v13 = vld [vmem:[#allocation10 + $0x50] ss:$12 sps:$4 sm:$0xff]   ;;  %v5206_v18 = vld [vmem:[#allocation10 + $0x68] ss:$12 sps:$4 sm:$0xff]   ;;  %v5212_v20 = vld [vmem:[#allocation10 + $0x78] ss:$12 sps:$4 sm:$0xff]  }
  0x8a   : > { %v556_v50 = vcombine.low %v534_v44, %v541_v45  ;;  %v557_v51 = vcombine.low %v548_v46, %v555_v47  ;;  %v1189_v7 = vsel %vm1188_vm2, 1, %v4831_v3  ;;  %v1336_v14 = vsel %vm1335_vm3, 1, %v4831_v3  ;;  %v5202_v17 = vld [vmem:[#allocation10 + $0x7c] ss:$12 sps:$4 sm:$0xff]   ;;  %v5215_v22 = vld [vmem:[#allocation10 + $0x94] ss:$12 sps:$4 sm:$0xff]  }
  0x8b   : > { %v515_v52 = vrot.slane %v507_v48, %v5123_v39  ;;  %v522_v53 = vrot.slane %v508_v49, %v5123_v39  ;;  %1191 = vperm.xlu0 %4398, %v1189_v7   ;;  %vm1776_vm4 = vcmp.gt.s32.totalorder %v5173_v5, %v1775_v11  ;;  %v2069_v16 = vstv %s2068_s26  ;;  %s2656_s11 = sadd.s32 10, %s5142_s13  ;;  %v5219_v23 = vld [vmem:[#allocation10 + $0x80] ss:$12 sps:$4 sm:$0xff]   ;;  %v5225_v25 = vld [vmem:[#allocation10 + $0x90] ss:$12 sps:$4 sm:$0xff]   ;;  %s2950_s22 = sadd.s32 12, %s5142_s13 }
  0x8c   : > { %v564_v55 = vrot.slane %v556_v50, %v5123_v39  ;;  %v571_v56 = vrot.slane %v557_v51, %v5123_v39  ;;  %v1777_v19 = vsel %vm1776_vm4, 1, %v4831_v3  ;;  %vm2070_vm5 = vcmp.gt.s32.totalorder %v5173_v5, %v2069_v16  ;;  %v5228_v27 = vld [vmem:[#allocation10 + $0xac] ss:$12 sps:$4 sm:$0xff]   ;;  %v5238_v31 = vld [vmem:[#allocation10 + $0xa8] ss:$12 sps:$4 sm:$0xff]   ;;  %s3244_s23 = sadd.s32 14, %s5142_s13 }
  0x8d   : > { %v523_v57 = vcombine.low %v515_v52, %v522_v53  ;;  %v2363_v21 = vstv %s2362_s12  ;;  %v2071_v24 = vsel %vm2070_vm5, 1, %v4831_v3  ;;  %v2657_v26 = vstv %s2656_s11  ;;  %v5232_v29 = vld [vmem:[#allocation10 + $0x98] ss:$12 sps:$4 sm:$0xff]   ;;  %v5240_v32 = vld [vmem:[#allocation2] sm:$0x3]  ;;  %s1480_s25 = sadd.s32 2, %s5142_s13 }
  0x8e   : > { %v572_v59 = vcombine.low %v564_v55, %v571_v56  ;;  %vm2364_vm6 = vcmp.gt.s32.totalorder %v5173_v5, %v2363_v21  ;;  %vm2658_vm7 = vcmp.gt.s32.totalorder %v5173_v5, %v2657_v26  ;;  %v2951_v33 = vstv %s2950_s22  ;;  %v5245_v34 = vld [vmem:[#allocation10 + $0xb0] ss:$12 sps:$4 sm:$0xff]   ;;  %v442_v44 = vld [vmem:[%s6171_s5] sm:$0x7]  ;;  %s1627_s18 = sadd.s32 3, %s5142_s13  ;;  %s1921_s26 = sadd.s32 5, %s5142_s13 }
  0x8f   : > { %3688 = vmatmul.mubr.msk.bf16.vlgmr.msra.gmra.mrb[0].mxu0 %vm605_vm0, %v523_v57  ;;  %3962 = vmatprep.mubr.msk.bf16.mxu1 %vm605_vm0, %v523_v57  ;;  %v2365_v30 = vsel %vm2364_vm6, 1, %v4831_v3  ;;  %v2659_v35 = vsel %vm2658_vm7, 1, %v4831_v3  ;;  %v935_v36 = vpack.c.bf16 %v5240_v32, %v5240_v32  ;;  %vm2952_vm8 = vcmp.gt.s32.totalorder %v5173_v5, %v2951_v33  ;;  %s2215_s12 = sadd.s32 7, %s5142_s13  ;;  %s2509_s11 = sadd.s32 9, %s5142_s13 }
  0x90   : > { %1081 = vmatpush1.bf16.msra.mxu0 %v5135_v54  ;;  %3963 = vmatmul.mubr.msk.bf16.vlgmr.msra.gmra.mrb[0].mxu1 %vm605_vm0, %v572_v59  ;;  %v3245_v37 = vstv %s3244_s23  ;;  %v2953_v38 = vsel %vm2952_vm8, 1, %v4831_v3  ;;  %v446_v41 = vsub.s32 0, %v5102_v10  ;;  %v4835_v42 = vmov 1983009808   ;;  %s2803_s22 = sadd.s32 11, %s5142_s13  ;;  %s3097_s23 = sadd.s32 13, %s5142_s13 }
  0x91   : > { %1082 = vmatprep.subr.bf16.mxu0 %v5139_v58  ;;  %654 = vmatprep.mubr.bf16.mxu0 %v4831_v3  ;;  %vm3246_vm9 = vcmp.gt.s32.totalorder %v5173_v5, %v3245_v37  ;;  %v730_v43 = vunpack.c.l.s4 %v4835_v42  ;;  %v450_v45 = vsub.s32 1, %v5102_v10  ;;  %v454_v46 = vsub.s32 2, %v5102_v10  ;;  %s3391_s21 = sadd.s32 15, %s5142_s13  ;;  %p3785_p11 = scmp.ne.s32.totalorder %s4814_s30, 1 }
  0x92   : > { %3967 = vmatpush3.bf16.msra.mxu1 %v5144_v60  ;;  %3982 = vmatprep.mubr.msk.bf16.mxu1 %vm4834_vm1, %v4833_v28  ;;  %v3247_v40 = vsel %vm3246_vm9, 1, %v4831_v3  ;;  %v447_v47 = vrot.slane %v442_v44, %v446_v41 }
  0x93   : > { %3968 = vmatprep.subr.bf16.mxu1 %v4833_v28  ;;  %1338 = vperm.xlu0 %4398, %v1336_v14   ;;  %v731_v48 = vunpack.c.0.s8 %v730_v43  ;;  %v451_v49 = vrot.slane %v442_v44, %v450_v45  ;;  %v455_v50 = vrot.slane %v442_v44, %v454_v46 }
  0x94   : > { %1083 = vmatpush1.bf16.msra.mxu0 %v5151_v61 }
  0x95   : > { %1084 = vmatprep.subr.bf16.mxu0 %v5154_v62  ;;  %v5307_v55 = vsub.s32 %v731_v48, %v5102_v10 }
  0x96   : > { %3969 = vmatpush3.bf16.msra.mxu1 %v5158_v63 }
  0x97   : > { %3689 = vmatmul.mubr.msk.bf16.gmra.mrb[4].mxu0 %vm605_vm0, %v572_v59  ;;  %3970 = vmatprep.subr.bf16.mxu1 %v4833_v28 }
  0x98   : > { %1085 = vmatpush1.bf16.msra.mxu0 %v5165_v1  ;;  %1112 = vmatprep.mubr.bf16.mxu0 %v4831_v3 }
  0x99   : > { %1086 = vmatprep.subr.bf16.mxu0 %v5168_v4  ;;  %1779 = vperm.xlu0 %4398, %v1777_v19  }
  0x9a   : > { %3971 = vmatpush3.bf16.msra.mxu1 %v5177_v6 }
  0x9b   : > { %3972 = vmatprep.subr.bf16.mxu1 %v4833_v28 }
  0x9c   : > { %1087 = vmatpush1.bf16.msra.mxu0 %v5185_v8 }
  0x9d   : > { %1088 = vmatprep.subr.bf16.mxu0 %v5189_v12  ;;  %2073 = vperm.xlu0 %4398, %v2071_v24  }
  0x9e   : > { %3973 = vmatpush3.bf16.msra.mxu1 %v5193_v13 }
  0x9f   : > { %3974 = vmatprep.subr.bf16.mxu1 %v4833_v28 }
  0xa0   : > { %1089 = vmatpush1.bf16.msra.mxu0 %v5199_v15 }
  0xa1   : > { %1090 = vmatprep.subr.bf16.mxu0 %v5202_v17  ;;  %2367 = vperm.xlu0 %4398, %v2365_v30  }
  0xa2   : > { %3975 = vmatpush3.bf16.msra.mxu1 %v5206_v18 }
  0xa3   : > { %3976 = vmatprep.subr.bf16.mxu1 %v4833_v28 }
  0xa4   : > { %1091 = vmatpush1.bf16.msra.mxu0 %v5212_v20 }
  0xa5   : > { %1092 = vmatprep.subr.bf16.mxu0 %v5215_v22  ;;  %2661 = vperm.xlu0 %4398, %v2659_v35  }
  0xa6   : > { %3977 = vmatpush3.bf16.msra.mxu1 %v5219_v23 }
  0xa7   : > { %3978 = vmatprep.subr.bf16.mxu1 %v4833_v28 }
  0xa8   : > { %1093 = vmatpush1.bf16.msra.mxu0 %v5225_v25 }
  0xa9   : > { %1094 = vmatprep.subr.bf16.mxu0 %v5228_v27  ;;  %2955 = vperm.xlu0 %4398, %v2953_v38  }
  0xaa   : > { %3979 = vmatpush3.bf16.msra.mxu1 %v5232_v29 }
  0xab   : > { %3980 = vmatprep.subr.bf16.mxu1 %v4833_v28 }
  0xac   : > { %1095 = vmatpush1.bf16.msra.mxu0 %v5238_v31 }
  0xad   : > { %1226 = vmatprep.subr.bf16.mxu0 %v5100_v9  ;;  %3249 = vperm.xlu0 %4398, %v3247_v40  }
  0xae   : > { %3981 = vmatpush3.bf16.msra.mxu1 %v5245_v34 }
  0xaf   : > { %1113 = vmatmul.mubr.bf16.vlgmr.msra.gmra.mrb[8].mxu0 %v935_v36  ;;  %3986 = vmatprep.subr.bf16.mxu1 %v4833_v28 }
  0xb0   : > { %1227 = vmatpush1.bf16.msra.mxu0 %v5135_v54  ;;  %1258 = vmatprep.mubr.bf16.mxu0 %v4831_v3 }
  0xb1   : > { %3983 = vmatmul.mubr.bf16.vlgmr.msra.gmra.mrb[4].mxu1 %v935_v36  ;;  %1228 = vmatprep.subr.bf16.mxu0 %v5139_v58 }
  0xb2   : > { %3987 = vmatpush3.bf16.msra.mxu1 %v5144_v60  ;;  %4002 = vmatprep.mubr.msk.bf16.mxu1 %vm4834_vm1, %v4833_v28 }
  0xb3   : > { %3988 = vmatprep.subr.bf16.mxu1 %v4833_v28 }
  0xb4   : > { %1229 = vmatpush1.bf16.msra.mxu0 %v5151_v61 }
  0xb5   : > { %1230 = vmatprep.subr.bf16.mxu0 %v5154_v62 }
  0xb6   : > { %3989 = vmatpush3.bf16.msra.mxu1 %v5158_v63 }
  0xb7   : > { %3990 = vmatprep.subr.bf16.mxu1 %v4833_v28 }
  0xb8   : > { %1231 = vmatpush1.bf16.msra.mxu0 %v5165_v1 }
  0xb9   : > { %1232 = vmatprep.subr.bf16.mxu0 %v5168_v4 }
  0xba   : > { %3991 = vmatpush3.bf16.msra.mxu1 %v5177_v6 }
  0xbb   : > { %3992 = vmatprep.subr.bf16.mxu1 %v4833_v28 }
  0xbc   : > { %1233 = vmatpush1.bf16.msra.mxu0 %v5185_v8 }
  0xbd   : > { %1234 = vmatprep.subr.bf16.mxu0 %v5189_v12 }
  0xbe   : > { %3993 = vmatpush3.bf16.msra.mxu1 %v5193_v13 }
  0xbf   : > { %3994 = vmatprep.subr.bf16.mxu1 %v4833_v28 }
  0xc0   : > { %1235 = vmatpush1.bf16.msra.mxu0 %v5199_v15 }
  0xc1   : > { %1236 = vmatprep.subr.bf16.mxu0 %v5202_v17 }
  0xc2   : > { %3995 = vmatpush3.bf16.msra.mxu1 %v5206_v18 }
  0xc3   : > { %3996 = vmatprep.subr.bf16.mxu1 %v4833_v28 }
  0xc4   : > { %1237 = vmatpush1.bf16.msra.mxu0 %v5212_v20 }
  0xc5   : > { %1238 = vmatprep.subr.bf16.mxu0 %v5215_v22 }
  0xc6   : > { %3997 = vmatpush3.bf16.msra.mxu1 %v5219_v23 }
  0xc7   : > { %3998 = vmatprep.subr.bf16.mxu1 %v4833_v28 }
  0xc8   : > { %1239 = vmatpush1.bf16.msra.mxu0 %v5225_v25 }
  0xc9   : > { %1240 = vmatprep.subr.bf16.mxu0 %v5228_v27 }
  0xca   : > { %3999 = vmatpush3.bf16.msra.mxu1 %v5232_v29 }
  0xcb   : > { %4000 = vmatprep.subr.bf16.mxu1 %v4833_v28 }
  0xcc   : > { %1241 = vmatpush1.bf16.msra.mxu0 %v5238_v31 }
  0xcd   : > { %1373 = vmatprep.subr.bf16.mxu0 %v5100_v9 }
  0xce   : > { %4001 = vmatpush3.bf16.msra.mxu1 %v5245_v34 }
  0xcf   : > { %4006 = vmatprep.subr.bf16.mxu1 %v4833_v28 }
 0x162   : > { %v646_v51 = vpop.f32.mrb[0].mxu0 }
 0x163   : > { %v647_v52 = vadd.f32 %v646_v51, %v447_v47  ;;  %v648_v53 = vpop.f32.mrb[1].mxu0  ;;  %v3964_v56 = vpop.f32.mrb[0].mxu1 }
 0x164   : > { %v649_v57 = vadd.f32 %v648_v53, %v451_v49  ;;  %v650_v59 = vpop.f32.mrb[2].mxu0  ;;  %v699_v0 = vpop.f32.mrb[1].mxu1  ;;  %v708_v21 = vadd.f32 %v3964_v56, %v455_v50 }
 0x165   : > { %v651_v2 = vadd.f32 %v650_v59, %v447_v47  ;;  %v700_v7 = vadd.f32 %v699_v0, %v455_v50  ;;  %v652_v11 = vpop.f32.mrb[3].mxu0  ;;  %v3965_v14 = vpop.f32.mrb[2].mxu1 }
 0x166   : > { %v726_v16 = vcombine.low %v647_v52, %v649_v57  ;;  %v727_v19 = vcombine.high %v647_v52, %v649_v57  ;;  %v702_v24 = vpop.f32.mrb[3].mxu1  ;;  %v653_v33 = vadd.f32 %v652_v11, %v451_v49  ;;  %v711_v43 = vadd.f32 %v3965_v14, %v455_v50 }
 0x167   : > { %v728_v26 = vcombine.high %v700_v7, %v700_v7  ;;  %v749_v30 = vrot.slane %v700_v7, %v5307_v55  ;;  %v703_v37 = vadd.f32 %v702_v24, %v455_v50  ;;  %v798_v44 = vcombine.high %v708_v21, %v708_v21 }
 0x168   : > { %v735_v35 = vrot.slane %v726_v16, %v5307_v55  ;;  %v742_v36 = vrot.slane %v727_v19, %v5307_v55  ;;  %v761_v40 = vcombine.low %v651_v2, %v653_v33  ;;  %v762_v42 = vcombine.high %v651_v2, %v653_v33 }
 0x169   : > { %v756_v38 = vrot.slane %v728_v26, %v5307_v55  ;;  %v763_v52 = vcombine.high %v703_v37, %v703_v37  ;;  %v784_v11 = vrot.slane %v703_v37, %v5307_v55  ;;  %v819_v14 = vrot.slane %v708_v21, %v5307_v55 }
 0x16a   : > { %v757_v48 = vcombine.low %v735_v35, %v749_v30  ;;  %v758_v51 = vcombine.high %v735_v35, %v749_v30  ;;  %v656_v53 = vpop.f32.mrb[4].mxu0  ;;  %v770_v59 = vrot.slane %v761_v40, %v5307_v55  ;;  %v777_v0 = vrot.slane %v762_v42, %v5307_v55 }
 0x16b   : > { %v759_v56 = vcombine.low %v742_v36, %v756_v38  ;;  %v760_v57 = vcombine.high %v742_v36, %v756_v38  ;;  %v658_v7 = vpop.f32.mrb[5].mxu0  ;;  %v791_v16 = vrot.slane %v763_v52, %v5307_v55  ;;  %v657_v2 = vadd.f32 %v656_v53, %v447_v47 }
 0x16c   : > { %882 = vst [vmem:[#allocation3] sm:$0x3f] %v757_v48  ;;  %883 = vst [vmem:[#allocation3 + $0x6] sm:$0x3f] %v758_v51  ;;  %v660_v50 = vpop.f32.mrb[6].mxu0  ;;  %v833_v19 = vcombine.high %v711_v43, %v711_v43  ;;  %v659_v24 = vadd.f32 %v658_v7, %v451_v49  ;;  %v792_v33 = vcombine.low %v770_v59, %v784_v11 }
 0x16d   : > { %884 = vst [vmem:[#allocation3 + $0xc] sm:$0x3f] %v759_v56  ;;  %885 = vst [vmem:[#allocation3 + $0x12] sm:$0x3f] %v760_v57  ;;  %v661_v26 = vadd.f32 %v660_v50, %v447_v47  ;;  %v662_v30 = vpop.f32.mrb[7].mxu0  ;;  %v793_v35 = vcombine.high %v770_v59, %v784_v11  ;;  %v794_v36 = vcombine.low %v777_v0, %v791_v16 }
 0x16e   : > { %v795_v38 = vcombine.high %v777_v0, %v791_v16  ;;  %v826_v40 = vrot.slane %v798_v44, %v5307_v55  ;;  %v796_v42 = vcombine.low %v657_v2, %v659_v24  ;;  %v797_v37 = vcombine.high %v657_v2, %v659_v24  ;;  %886 = vst [vmem:[#allocation3 + $0x18] sm:$0x3f] %v792_v33 }
 0x16f   : > { %v663_v48 = vadd.f32 %v662_v30, %v451_v49  ;;  %887 = vst [vmem:[#allocation3 + $0x1e] sm:$0x3f] %v793_v35  ;;  %888 = vst [vmem:[#allocation3 + $0x24] sm:$0x3f] %v794_v36  ;;  %v854_v53 = vrot.slane %v711_v43, %v5307_v55  ;;  %v861_v56 = vrot.slane %v833_v19, %v5307_v55  ;;  %v931_v43 = vld [vmem:[%s6172_s6] sm:$0x7] }
 0x170   : > { %889 = vst [vmem:[#allocation3 + $0x2a] sm:$0x3f] %v795_v38  ;;  %v805_v21 = vrot.slane %v796_v42, %v5307_v55  ;;  %v812_v51 = vrot.slane %v797_v37, %v5307_v55 }
 0x171   : > { %v831_v52 = vcombine.low %v661_v26, %v663_v48  ;;  %v832_v47 = vcombine.high %v661_v26, %v663_v48 }
 0x172   : > { %v827_v57 = vcombine.low %v805_v21, %v819_v14  ;;  %v828_v59 = vcombine.high %v805_v21, %v819_v14  ;;  %v829_v44 = vcombine.low %v812_v51, %v826_v40  ;;  %v830_v0 = vcombine.high %v812_v51, %v826_v40 }
 0x173   : > { %v840_v49 = vrot.slane %v831_v52, %v5307_v55  ;;  %v847_v7 = vrot.slane %v832_v47, %v5307_v55  ;;  %v5330_v14 = vrot.slane %v931_v43, %v446_v41  ;;  %v5334_v55 = vrot.slane %v931_v43, %v450_v45  ;;  %v934_v24 = vld [vmem:[#allocation3] sm:$0x3f] }
 0x174   : > { %890 = vst [vmem:[#allocation3 + $0x30] sm:$0x3f] %v827_v57  ;;  %891 = vst [vmem:[#allocation3 + $0x36] sm:$0x3f] %v828_v59  ;;  %v1169_v37 = vrot.slane %v934_v24, 2 }
 0x175   : > { %892 = vst [vmem:[#allocation3 + $0x3c] sm:$0x3f] %v829_v44  ;;  %893 = vst [vmem:[#allocation3 + $0x42] sm:$0x3f] %v830_v0  ;;  %v862_v11 = vcombine.low %v840_v49, %v854_v53  ;;  %v863_v16 = vcombine.high %v840_v49, %v854_v53  ;;  %v864_v2 = vcombine.low %v847_v7, %v861_v56  ;;  %v1179_v49 = vrot.slane %v934_v24, 4 }
 0x176   : > { %v865_v50 = vcombine.high %v847_v7, %v861_v56  ;;  %v5340_v53 = vrot.slane %v931_v43, %v454_v46 }
 0x177   : > { %894 = vst [vmem:[#allocation3 + $0x48] sm:$0x3f] %v862_v11  ;;  %895 = vst [vmem:[#allocation3 + $0x4e] sm:$0x3f] %v863_v16 }
 0x178   : > { %896 = vst [vmem:[#allocation3 + $0x54] sm:$0x3f] %v864_v2  ;;  %897 = vst [vmem:[#allocation3 + $0x5a] sm:$0x3f] %v865_v50  ;;  %v1192_v50 = vpop.permute.xlu0 %1191 }
 0x179   : > { %vm1193_vm10 = vcmp.eq.s32.totalorder %v1192_v50, 1 }
 0x182   : > { %v1114_v19 = vpop.f32.mrb[8].mxu0 }
 0x183   : > { %v1115_v26 = vadd.f32 %v1114_v19, %v5330_v14  ;;  %v1116_v30 = vpop.f32.mrb[9].mxu0 }
 0x184   : > { %v1117_v33 = vadd.f32 %v1116_v30, %v5334_v55  ;;  %v1118_v35 = vpop.f32.mrb[10].mxu0  ;;  %v1155_v36 = vpop.f32.mrb[4].mxu1 }
 0x185   : > { %v1161_v38 = vadd.f32 %v1115_v26, %v934_v24  ;;  %v1119_v40 = vpop.f32.mrb[11].mxu0  ;;  %v3984_v42 = vpop.f32.mrb[5].mxu1  ;;  %v1156_v59 = vadd.f32 %v1155_v36, %v5340_v53  ;;  %v1628_v35 = vstv %s1627_s18 }
 0x186   : > { %v1158_v48 = vpop.f32.mrb[6].mxu1  ;;  %v1171_v51 = vadd.f32 %v1169_v37, %v1117_v33  ;;  %vm1629_vm12 = vcmp.gt.s32.totalorder %v5173_v5, %v1628_v35  ;;  %v2216_v40 = vstv %s2215_s12  ;;  %v2510_v37 = vstv %s2509_s11 }
 0x187   : > { %v3717_v41 = vmul.f32 -1.442695, %v1161_v38  ;;  %v3985_v21 = vpop.f32.mrb[7].mxu1  ;;  %v1922_v38 = vstv %s1921_s26  ;;  %vm2217_vm14 = vcmp.gt.s32.totalorder %v5173_v5, %v2216_v40  ;;  %vm2511_vm15 = vcmp.gt.s32.totalorder %v5173_v5, %v2510_v37 }
 0x188   : > { %v3718_v45 = vmul.f32 -1.442695, %v1171_v51  ;;  %vm1923_vm13 = vcmp.gt.s32.totalorder %v5173_v5, %v1922_v38  ;;  %v2218_v48 = vsel %vm2217_vm14, 1, %v4831_v3  ;;  %v2512_v21 = vsel %vm2511_vm15, 1, %v4831_v3 }
 0x189   : > { %4440 = vpow2.f32 %v3717_v41  ;;  %v1924_v42 = vsel %vm1923_vm13, 1, %v4831_v3  ;;  %v2804_v41 = vstv %s2803_s22  ;;  %v3098_v51 = vstv %s3097_s23 }
 0x18a   : > { %4442 = vpow2.f32 %v3718_v45  ;;  %vm2805_vm0 = vcmp.gt.s32.totalorder %v5173_v5, %v2804_v41  ;;  %vm3099_vm2 = vcmp.gt.s32.totalorder %v5173_v5, %v3098_v51 }
 0x18b   : > { %v2806_v45 = vsel %vm2805_vm0, 1, %v4831_v3 }
 0x193   : > { %v4441_v52 = vpop.eup %4440 }
 0x194   : > { %v1165_v47 = vadd.f32 1.0, %v4441_v52  ;;  %v4443_v56 = vpop.eup %4442  ;;  %v3392_v52 = vstv %s3391_s21 }
 0x195   : > { %v1175_v57 = vadd.f32 1.0, %v4443_v56  ;;  %vm3393_vm3 = vcmp.gt.s32.totalorder %v5173_v5, %v3392_v52 }
 0x196   : > { %4444 = vrcp.f32 %v1165_v47  ;;  %v3100_v47 = vsel %vm3099_vm2, 1, %v4831_v3  ;;  %v3394_v56 = vsel %vm3393_vm3, 1, %v4831_v3 }
 0x197   : > { %4446 = vrcp.f32 %v1175_v57 }
 0x1a0   : > { %v4445_v44 = vpop.eup %4444 }
 0x1a1   : > { %v1178_v0 = vmul.f32 %v4445_v44, %v1156_v59  ;;  %v4447_v11 = vpop.eup %4446  ;;  %v1224_v44 = vld [vmem:[#allocation3 + $0x6] sm:$0x3f] }
 0x1a2   : > { %v1183_v16 = vsub.f32 1.0, %v4447_v11  ;;  %v1185_v26 = vmul.f32 %v4447_v11, %v5240_v32  ;;  %v1325_v40 = vrot.slane %v1224_v44, 4 }
 0x1a3   : > { %v1181_v7 = vadd.f32 %v1179_v49, %v1178_v0 }
 0x1a5   : > { %4448 = vtanh.f32 %v1181_v7 }
 0x1af   : > { %v4449_v2 = vpop.eup %4448 }
 0x1b0   : > { %v1184_v19 = vmul.f32 %v4449_v2, %v1183_v16 }
 0x1b2   : > { %v1186_v10 = vadd.f32 %v1185_v26, %v1184_v19 }
 0x1b4   : > { %v5345_v46 = vsel %vm1193_vm10, %v1186_v10, %v5240_v32  ;;  %v1195_v43 = vsel %vm1193_vm10, %v1186_v10, 1.0  ;;  %v1481_v32 = vstv %s1480_s25  ;;  %v1315_v10 = vrot.slane %v1224_v44, 2 }
 0x1b5   : > { %v1203_v30 = vrot.slane %v1195_v43, %v5123_v39  ;;  %v1225_v24 = vpack.c.bf16 %v5345_v46, %v5345_v46  ;;  %vm1482_vm11 = vcmp.gt.s32.totalorder %v5173_v5, %v1481_v32 }
 0x1b6   : > { %v1483_v36 = vsel %vm1482_vm11, 1, %v4831_v3 }
 0x1b7   : > { %v1204_v33 = vcombine.high %v1203_v30, %v1203_v30  ;;  %3719 = vst.sshfl [vmem:[#allocation4] sm:$0x1 pattern:$0x73625140] %v1203_v30  ;;  %1259 = vmatmul.mubr.bf16.vlgmr.msra.gmra.mrb[12].mxu0 %v1225_v24  ;;  %4003 = vmatmul.mubr.bf16.vlgmr.msra.gmra.mrb[8].mxu1 %v1225_v24 }
 0x1b8   : > { %1374 = vmatpush1.bf16.msra.mxu0 %v5135_v54  ;;  %4007 = vmatpush3.bf16.msra.mxu1 %v5144_v60 }
 0x1b9   : > { %3720 = vst.sshfl [vmem:[#allocation4 + $0x10] sm:$0x1 pattern:$0x73625140] %v1204_v33  ;;  %1375 = vmatprep.subr.bf16.mxu0 %v5139_v58  ;;  %4008 = vmatprep.subr.bf16.mxu1 %v4833_v28 }
 0x1ba   : > { %1405 = vmatprep.mubr.bf16.mxu0 %v4831_v3  ;;  %4022 = vmatprep.mubr.msk.bf16.mxu1 %vm4834_vm1, %v4833_v28 }
 0x1bb   : > { %1485 = vperm.xlu1 %4399, %v1483_v36  }
 0x1bc   : > { %1376 = vmatpush1.bf16.msra.mxu0 %v5151_v61  ;;  %4009 = vmatpush3.bf16.msra.mxu1 %v5158_v63 }
 0x1bd   : > { %1377 = vmatprep.subr.bf16.mxu0 %v5154_v62  ;;  %4010 = vmatprep.subr.bf16.mxu1 %v4833_v28 }
 0x1c0   : > { %1378 = vmatpush1.bf16.msra.mxu0 %v5165_v1  ;;  %4011 = vmatpush3.bf16.msra.mxu1 %v5177_v6 }
 0x1c1   : > { %1379 = vmatprep.subr.bf16.mxu0 %v5168_v4  ;;  %4012 = vmatprep.subr.bf16.mxu1 %v4833_v28 }
 0x1c4   : > { %1380 = vmatpush1.bf16.msra.mxu0 %v5185_v8  ;;  %4013 = vmatpush3.bf16.msra.mxu1 %v5193_v13 }
 0x1c5   : > { %1381 = vmatprep.subr.bf16.mxu0 %v5189_v12  ;;  %4014 = vmatprep.subr.bf16.mxu1 %v4833_v28 }
 0x1c8   : > { %1382 = vmatpush1.bf16.msra.mxu0 %v5199_v15  ;;  %4015 = vmatpush3.bf16.msra.mxu1 %v5206_v18 }
 0x1c9   : > { %1383 = vmatprep.subr.bf16.mxu0 %v5202_v17  ;;  %4016 = vmatprep.subr.bf16.mxu1 %v4833_v28 }
 0x1cc   : > { %1384 = vmatpush1.bf16.msra.mxu0 %v5212_v20  ;;  %4017 = vmatpush3.bf16.msra.mxu1 %v5219_v23 }
 0x1cd   : > { %1385 = vmatprep.subr.bf16.mxu0 %v5215_v22  ;;  %4018 = vmatprep.subr.bf16.mxu1 %v4833_v28 }
 0x1d0   : > { %1386 = vmatpush1.bf16.msra.mxu0 %v5225_v25  ;;  %4019 = vmatpush3.bf16.msra.mxu1 %v5232_v29 }
 0x1d1   : > { %1387 = vmatprep.subr.bf16.mxu0 %v5228_v27  ;;  %4020 = vmatprep.subr.bf16.mxu1 %v4833_v28 }
 0x1d4   : > { %1388 = vmatpush1.bf16.msra.mxu0 %v5238_v31  ;;  %4021 = vmatpush3.bf16.msra.mxu1 %v5245_v34 }
 0x1d5   : > { %1520 = vmatprep.subr.bf16.mxu0 %v5100_v9  ;;  %4026 = vmatprep.subr.bf16.mxu1 %v4833_v28  ;;  %v1630_v9 = vsel %vm1629_vm12, 1, %v4831_v3 }
 0x1d6   : > { %1632 = vperm.xlu1 %4399, %v1630_v9  }
 0x1da   : > { %1926 = vperm.xlu1 %4399, %v1924_v42  }
 0x1de   : > { %2220 = vperm.xlu1 %4399, %v2218_v48  }
 0x1e2   : > { %2514 = vperm.xlu1 %4399, %v2512_v21  }
 0x1e6   : > { %2808 = vperm.xlu1 %4399, %v2806_v45   ;;  %v1339_v45 = vpop.permute.xlu0 %1338 }
 0x1e7   : > { %vm1340_vm4 = vcmp.eq.s32.totalorder %v1339_v45, 1 }
 0x1ea   : > { %3102 = vperm.xlu1 %4399, %v3100_v47  }
 0x1ee   : > { %3396 = vperm.xlu1 %4399, %v3394_v56  }
 0x28a   : > { %v1260_v57 = vpop.f32.mrb[12].mxu0  ;;  %v1301_v59 = vpop.f32.mrb[8].mxu1 }
 0x28b   : > { %v1261_v0 = vadd.f32 %v1260_v57, %v5330_v14  ;;  %v1262_v49 = vpop.f32.mrb[13].mxu0  ;;  %v4004_v7 = vpop.f32.mrb[9].mxu1  ;;  %v1302_v36 = vadd.f32 %v1301_v59, %v5340_v53 }
 0x28c   : > { %v1263_v11 = vadd.f32 %v1262_v49, %v5334_v55  ;;  %v1264_v16 = vpop.f32.mrb[14].mxu0  ;;  %v1304_v2 = vpop.f32.mrb[10].mxu1  ;;  %v1371_v7 = vld [vmem:[#allocation3 + $0xc] sm:$0x3f] }
 0x28d   : > { %v1307_v50 = vadd.f32 %v1261_v0, %v1224_v44  ;;  %v1265_v19 = vpop.f32.mrb[15].mxu0  ;;  %v4005_v26 = vpop.f32.mrb[11].mxu1 }
 0x28e   : > { %v1317_v43 = vadd.f32 %v1315_v10, %v1263_v11 }
 0x28f   : > { %v3721_v5 = vmul.f32 -1.442695, %v1307_v50 }
 0x290   : > { %v3722_v30 = vmul.f32 -1.442695, %v1317_v43 }
 0x291   : > { %4450 = vpow2.f32 %v3721_v5 }
 0x292   : > { %4452 = vpow2.f32 %v3722_v30  ;;  %v1462_v30 = vrot.slane %v1371_v7, 2 }
 0x29b   : > { %v4451_v24 = vpop.eup %4450 }
 0x29c   : > { %v1311_v33 = vadd.f32 1.0, %v4451_v24  ;;  %v4453_v32 = vpop.eup %4452 }
 0x29d   : > { %v1321_v35 = vadd.f32 1.0, %v4453_v32 }
 0x29e   : > { %4454 = vrcp.f32 %v1311_v33 }
 0x29f   : > { %4456 = vrcp.f32 %v1321_v35 }
 0x2a8   : > { %v4455_v38 = vpop.eup %4454 }
 0x2a9   : > { %v1324_v9 = vmul.f32 %v4455_v38, %v1302_v36  ;;  %v4457_v37 = vpop.eup %4456 }
 0x2aa   : > { %v1329_v48 = vsub.f32 1.0, %v4457_v37  ;;  %v1331_v51 = vmul.f32 %v4457_v37, %v5345_v46 }
 0x2ab   : > { %v1327_v42 = vadd.f32 %v1325_v40, %v1324_v9 }
 0x2ad   : > { %4458 = vtanh.f32 %v1327_v42 }
 0x2b7   : > { %v4459_v41 = vpop.eup %4458 }
 0x2b8   : > { %v1330_v21 = vmul.f32 %v4459_v41, %v1329_v48  ;;  %v1472_v48 = vrot.slane %v1371_v7, 4 }
 0x2ba   : > { %v1332_v52 = vadd.f32 %v1331_v51, %v1330_v21 }
 0x2bc   : > { %v5414_v47 = vsel %vm1340_vm4, %v1332_v52, %v5345_v46  ;;  %v1342_v56 = vsel %vm1340_vm4, %v1332_v52, 1.0  ;;  %v5452_v46 = vld [vmem:[#allocation10 + $0x4] ss:$12 sps:$4 sm:$0xff]   ;;  %v1486_v52 = vpop.permute.xlu1 %1485 }
 0x2bd   : > { %v1350_v57 = vrot.slane %v1342_v56, %v5123_v39  ;;  %v1372_v59 = vpack.c.bf16 %v5414_v47, %v5414_v47  ;;  %vm1487_vm5 = vcmp.eq.s32.totalorder %v1486_v52, 1  ;;  %v5550_v52 = vld [vmem:[#allocation10 + $0x64] ss:$12 sps:$4 sm:$0xff]  }
 0x2bf   : > { %v1351_v44 = vcombine.high %v1350_v57, %v1350_v57  ;;  %3723 = vst.sshfl [vmem:[#allocation4 + $0x1] sm:$0x1 pattern:$0x73625140] %v1350_v57  ;;  %1406 = vmatmul.mubr.bf16.vlgmr.msra.gmra.mrb[16].mxu0 %v1372_v59  ;;  %4023 = vmatmul.mubr.bf16.vlgmr.msra.gmra.mrb[12].mxu1 %v1372_v59 }
 0x2c0   : > { %1521 = vmatpush1.bf16.msra.mxu0 %v5135_v54  ;;  %4027 = vmatpush3.bf16.msra.mxu1 %v5144_v60 }
 0x2c1   : > { %3724 = vst.sshfl [vmem:[#allocation4 + $0x11] sm:$0x1 pattern:$0x73625140] %v1351_v44  ;;  %1522 = vmatprep.subr.bf16.mxu0 %v5139_v58  ;;  %4028 = vmatprep.subr.bf16.mxu1 %v4833_v28 }
 0x2c2   : > { %1552 = vmatprep.mubr.bf16.mxu0 %v4831_v3  ;;  %4042 = vmatprep.mubr.msk.bf16.mxu1 %vm4834_vm1, %v4833_v28 }
 0x2c4   : > { %1523 = vmatpush1.bf16.msra.mxu0 %v5151_v61  ;;  %4029 = vmatpush3.bf16.msra.mxu1 %v5158_v63 }
 0x2c5   : > { %1524 = vmatprep.subr.bf16.mxu0 %v5154_v62  ;;  %4030 = vmatprep.subr.bf16.mxu1 %v4833_v28 }
 0x2c8   : > { %1525 = vmatpush1.bf16.msra.mxu0 %v5165_v1  ;;  %4031 = vmatpush3.bf16.msra.mxu1 %v5177_v6 }
 0x2c9   : > { %1526 = vmatprep.subr.bf16.mxu0 %v5168_v4  ;;  %4032 = vmatprep.subr.bf16.mxu1 %v4833_v28 }
 0x2cc   : > { %1527 = vmatpush1.bf16.msra.mxu0 %v5185_v8  ;;  %4033 = vmatpush3.bf16.msra.mxu1 %v5193_v13 }
 0x2cd   : > { %1528 = vmatprep.subr.bf16.mxu0 %v5189_v12  ;;  %4034 = vmatprep.subr.bf16.mxu1 %v4833_v28 }
 0x2d0   : > { %1529 = vmatpush1.bf16.msra.mxu0 %v5199_v15  ;;  %4035 = vmatpush3.bf16.msra.mxu1 %v5206_v18 }
 0x2d1   : > { %1530 = vmatprep.subr.bf16.mxu0 %v5202_v17  ;;  %4036 = vmatprep.subr.bf16.mxu1 %v4833_v28 }
 0x2d4   : > { %1531 = vmatpush1.bf16.msra.mxu0 %v5212_v20  ;;  %4037 = vmatpush3.bf16.msra.mxu1 %v5219_v23 }
 0x2d5   : > { %1532 = vmatprep.subr.bf16.mxu0 %v5215_v22  ;;  %4038 = vmatprep.subr.bf16.mxu1 %v4833_v28 }
 0x2d8   : > { %1533 = vmatpush1.bf16.msra.mxu0 %v5225_v25  ;;  %4039 = vmatpush3.bf16.msra.mxu1 %v5232_v29 }
 0x2d9   : > { %1534 = vmatprep.subr.bf16.mxu0 %v5228_v27  ;;  %4040 = vmatprep.subr.bf16.mxu1 %v4833_v28 }
 0x2dc   : > { %1535 = vmatpush1.bf16.msra.mxu0 %v5238_v31  ;;  %4041 = vmatpush3.bf16.msra.mxu1 %v5245_v34 }
 0x2dd   : > { %1667 = vmatprep.subr.bf16.mxu0 %v5452_v46  ;;  %4046 = vmatprep.subr.bf16.mxu1 %v4833_v28 }
 0x392   : > { %v1407_v0 = vpop.f32.mrb[16].mxu0  ;;  %v1448_v49 = vpop.f32.mrb[12].mxu1 }
 0x393   : > { %v1408_v11 = vadd.f32 %v1407_v0, %v5330_v14  ;;  %v1409_v16 = vpop.f32.mrb[17].mxu0  ;;  %v4024_v2 = vpop.f32.mrb[13].mxu1  ;;  %v1449_v40 = vadd.f32 %v1448_v49, %v5340_v53 }
 0x394   : > { %v1410_v50 = vadd.f32 %v1409_v16, %v5334_v55  ;;  %v1411_v19 = vpop.f32.mrb[18].mxu0  ;;  %v1451_v26 = vpop.f32.mrb[14].mxu1 }
 0x395   : > { %v1454_v10 = vadd.f32 %v1408_v11, %v1371_v7  ;;  %v1412_v5 = vpop.f32.mrb[19].mxu0  ;;  %v4025_v43 = vpop.f32.mrb[15].mxu1 }
 0x396   : > { %v1464_v33 = vadd.f32 %v1462_v30, %v1410_v50  ;;  %v1633_v5 = vpop.permute.xlu1 %1632 }
 0x397   : > { %v3725_v24 = vmul.f32 -1.442695, %v1454_v10  ;;  %vm1634_vm6 = vcmp.eq.s32.totalorder %v1633_v5, 1 }
 0x398   : > { %v3726_v32 = vmul.f32 -1.442695, %v1464_v33 }
 0x399   : > { %4460 = vpow2.f32 %v3725_v24 }
 0x39a   : > { %4462 = vpow2.f32 %v3726_v32 }
 0x3a3   : > { %v4461_v35 = vpop.eup %4460 }
 0x3a4   : > { %v1458_v36 = vadd.f32 1.0, %v4461_v35  ;;  %v4463_v38 = vpop.eup %4462 }
 0x3a5   : > { %v1468_v9 = vadd.f32 1.0, %v4463_v38  ;;  %v5514_v38 = vld [vmem:[#allocation10 + $0x8] ss:$12 sps:$4 sm:$0xff]  }
 0x3a6   : > { %4464 = vrcp.f32 %v1458_v36  ;;  %v5511_v36 = vld [vmem:[#allocation10] ss:$12 sps:$4 sm:$0xff]  }
 0x3a7   : > { %4466 = vrcp.f32 %v1468_v9  ;;  %v5517_v9 = vld [vmem:[#allocation10 + $0x1c] ss:$12 sps:$4 sm:$0xff]  }
 0x3b0   : > { %v4465_v42 = vpop.eup %4464 }
 0x3b1   : > { %v1471_v37 = vmul.f32 %v4465_v42, %v1449_v40  ;;  %v4467_v21 = vpop.eup %4466  ;;  %v5524_v40 = vld [vmem:[#allocation10 + $0x18] ss:$12 sps:$4 sm:$0xff]   ;;  %v5527_v42 = vld [vmem:[#allocation10 + $0x20] ss:$12 sps:$4 sm:$0xff]  }
 0x3b2   : > { %v1476_v51 = vsub.f32 1.0, %v4467_v21  ;;  %v1478_v57 = vmul.f32 %v4467_v21, %v5414_v47  ;;  %v5540_v21 = vld [vmem:[#allocation10 + $0x4c] ss:$12 sps:$4 sm:$0xff]  }
 0x3b3   : > { %v1474_v41 = vadd.f32 %v1472_v48, %v1471_v37  ;;  %v5530_v37 = vld [vmem:[#allocation10 + $0x34] ss:$12 sps:$4 sm:$0xff]   ;;  %v5534_v48 = vld [vmem:[#allocation10 + $0x30] ss:$12 sps:$4 sm:$0xff]  }
 0x3b5   : > { %4468 = vtanh.f32 %v1474_v41  ;;  %v5537_v41 = vld [vmem:[#allocation10 + $0x38] ss:$12 sps:$4 sm:$0xff]  }
 0x3bf   : > { %v4469_v45 = vpop.eup %4468 }
 0x3c0   : > { %v1477_v56 = vmul.f32 %v4469_v45, %v1476_v51  ;;  %v5544_v51 = vld [vmem:[#allocation10 + $0x48] ss:$12 sps:$4 sm:$0xff]   ;;  %v5547_v45 = vld [vmem:[#allocation10 + $0x50] ss:$12 sps:$4 sm:$0xff]  }
 0x3c2   : > { %v1479_v59 = vadd.f32 %v1478_v57, %v1477_v56  ;;  %v5554_v56 = vld [vmem:[#allocation10 + $0x60] ss:$12 sps:$4 sm:$0xff]   ;;  %v5557_v57 = vld [vmem:[#allocation10 + $0x68] ss:$12 sps:$4 sm:$0xff]  }
 0x3c4   : > { %v5461_v44 = vsel %vm1487_vm5, %v1479_v59, %v5414_v47  ;;  %v1489_v0 = vsel %vm1487_vm5, %v1479_v59, 1.0  ;;  %v5560_v59 = vld [vmem:[#allocation10 + $0x7c] ss:$12 sps:$4 sm:$0xff]  }
 0x3c5   : > { %v1497_v49 = vrot.slane %v1489_v0, %v5123_v39  ;;  %v1519_v7 = vpack.c.bf16 %v5461_v44, %v5461_v44  ;;  %v5567_v0 = vld [vmem:[#allocation10 + $0x80] ss:$12 sps:$4 sm:$0xff]  }
 0x3c7   : > { %v1498_v11 = vcombine.high %v1497_v49, %v1497_v49  ;;  %3727 = vst.sshfl [vmem:[#allocation4 + $0x2] sm:$0x1 pattern:$0x73625140] %v1497_v49  ;;  %1553 = vmatmul.mubr.bf16.vlgmr.msra.gmra.mrb[20].mxu0 %v1519_v7  ;;  %4043 = vmatmul.mubr.bf16.vlgmr.msra.gmra.mrb[16].mxu1 %v1519_v7  ;;  %v5570_v49 = vld [vmem:[#allocation10 + $0x94] ss:$12 sps:$4 sm:$0xff]  }
 0x3c8   : > { %1668 = vmatpush1.bf16.msra.mxu0 %v5135_v54  ;;  %4047 = vmatpush3.bf16.msra.mxu1 %v5144_v60  ;;  %v1518_v60 = vld [vmem:[#allocation3 + $0x12] sm:$0x3f]  ;;  %v5574_v7 = vld [vmem:[#allocation10 + $0x90] ss:$12 sps:$4 sm:$0xff]  }
 0x3c9   : > { %3728 = vst.sshfl [vmem:[#allocation4 + $0x12] sm:$0x1 pattern:$0x73625140] %v1498_v11  ;;  %1669 = vmatprep.subr.bf16.mxu0 %v5139_v58  ;;  %4048 = vmatprep.subr.bf16.mxu1 %v4833_v28  ;;  %v1619_v47 = vrot.slane %v1518_v60, 4 }
 0x3ca   : > { %1699 = vmatprep.mubr.bf16.mxu0 %v4831_v3  ;;  %4062 = vmatprep.mubr.msk.bf16.mxu1 %vm4834_vm1, %v4833_v28  ;;  %v5577_v11 = vld [vmem:[#allocation10 + $0x98] ss:$12 sps:$4 sm:$0xff]  }
 0x3cc   : > { %1670 = vmatpush1.bf16.msra.mxu0 %v5151_v61  ;;  %4049 = vmatpush3.bf16.msra.mxu1 %v5158_v63 }
 0x3cd   : > { %1671 = vmatprep.subr.bf16.mxu0 %v5154_v62  ;;  %4050 = vmatprep.subr.bf16.mxu1 %v4833_v28 }
 0x3d0   : > { %1672 = vmatpush1.bf16.msra.mxu0 %v5165_v1  ;;  %4051 = vmatpush3.bf16.msra.mxu1 %v5177_v6 }
 0x3d1   : > { %1673 = vmatprep.subr.bf16.mxu0 %v5168_v4  ;;  %4052 = vmatprep.subr.bf16.mxu1 %v4833_v28 }
 0x3d4   : > { %1674 = vmatpush1.bf16.msra.mxu0 %v5185_v8  ;;  %4053 = vmatpush3.bf16.msra.mxu1 %v5193_v13 }
 0x3d5   : > { %1675 = vmatprep.subr.bf16.mxu0 %v5189_v12  ;;  %4054 = vmatprep.subr.bf16.mxu1 %v4833_v28 }
 0x3d8   : > { %1676 = vmatpush1.bf16.msra.mxu0 %v5199_v15  ;;  %4055 = vmatpush3.bf16.msra.mxu1 %v5206_v18  ;;  %v1609_v15 = vrot.slane %v1518_v60, 2 }
 0x3d9   : > { %1677 = vmatprep.subr.bf16.mxu0 %v5202_v17  ;;  %4056 = vmatprep.subr.bf16.mxu1 %v4833_v28 }
 0x3dc   : > { %1678 = vmatpush1.bf16.msra.mxu0 %v5212_v20  ;;  %4057 = vmatpush3.bf16.msra.mxu1 %v5219_v23 }
 0x3dd   : > { %1679 = vmatprep.subr.bf16.mxu0 %v5215_v22  ;;  %4058 = vmatprep.subr.bf16.mxu1 %v4833_v28 }
 0x3e0   : > { %1680 = vmatpush1.bf16.msra.mxu0 %v5225_v25  ;;  %4059 = vmatpush3.bf16.msra.mxu1 %v5232_v29 }
 0x3e1   : > { %1681 = vmatprep.subr.bf16.mxu0 %v5228_v27  ;;  %4060 = vmatprep.subr.bf16.mxu1 %v4833_v28 }
 0x3e4   : > { %1682 = vmatpush1.bf16.msra.mxu0 %v5238_v31  ;;  %4061 = vmatpush3.bf16.msra.mxu1 %v5245_v34 }
 0x3e5   : > { %1814 = vmatprep.subr.bf16.mxu0 %v5452_v46  ;;  %4066 = vmatprep.subr.bf16.mxu1 %v4833_v28 }
 0x49a   : > { %v1554_v54 = vpop.f32.mrb[20].mxu0  ;;  %v1595_v58 = vpop.f32.mrb[16].mxu1 }
 0x49b   : > { %v1555_v61 = vadd.f32 %v1554_v54, %v5330_v14  ;;  %v1556_v62 = vpop.f32.mrb[21].mxu0  ;;  %v4044_v63 = vpop.f32.mrb[17].mxu1  ;;  %v1596_v29 = vadd.f32 %v1595_v58, %v5340_v53  ;;  %v5580_v54 = vld [vmem:[#allocation10 + $0xac] ss:$12 sps:$4 sm:$0xff]   ;;  %v5584_v58 = vld [vmem:[#allocation10 + $0xa8] ss:$12 sps:$4 sm:$0xff]  }
 0x49c   : > { %v1557_v1 = vadd.f32 %v1556_v62, %v5334_v55  ;;  %v1558_v4 = vpop.f32.mrb[22].mxu0  ;;  %v1598_v6 = vpop.f32.mrb[18].mxu1  ;;  %v1665_v63 = vld [vmem:[#allocation3 + $0x18] sm:$0x3f] }
 0x49d   : > { %v1601_v8 = vadd.f32 %v1555_v61, %v1518_v60  ;;  %v1559_v12 = vpop.f32.mrb[23].mxu0  ;;  %v4045_v13 = vpop.f32.mrb[19].mxu1  ;;  %v5587_v60 = vld [vmem:[#allocation10 + $0xb0] ss:$12 sps:$4 sm:$0xff]  }
 0x49e   : > { %v1611_v18 = vadd.f32 %v1609_v15, %v1557_v1 }
 0x49f   : > { %v3729_v17 = vmul.f32 -1.442695, %v1601_v8 }
 0x4a0   : > { %v3730_v20 = vmul.f32 -1.442695, %v1611_v18 }
 0x4a1   : > { %4470 = vpow2.f32 %v3729_v17 }
 0x4a2   : > { %4472 = vpow2.f32 %v3730_v20  ;;  %v1756_v20 = vrot.slane %v1665_v63, 2 }
 0x4ab   : > { %v4471_v22 = vpop.eup %4470 }
 0x4ac   : > { %v1605_v23 = vadd.f32 1.0, %v4471_v22  ;;  %v4473_v25 = vpop.eup %4472 }
 0x4ad   : > { %v1615_v27 = vadd.f32 1.0, %v4473_v25 }
 0x4ae   : > { %4474 = vrcp.f32 %v1605_v23 }
 0x4af   : > { %4476 = vrcp.f32 %v1615_v27 }
 0x4b8   : > { %v4475_v31 = vpop.eup %4474 }
 0x4b9   : > { %v1618_v34 = vmul.f32 %v4475_v31, %v1596_v29  ;;  %v4477_v2 = vpop.eup %4476 }
 0x4ba   : > { %v1623_v50 = vsub.f32 1.0, %v4477_v2  ;;  %v1625_v10 = vmul.f32 %v4477_v2, %v5461_v44 }
 0x4bb   : > { %v1621_v16 = vadd.f32 %v1619_v47, %v1618_v34 }
 0x4bd   : > { %4478 = vtanh.f32 %v1621_v16 }
 0x4c7   : > { %v4479_v19 = vpop.eup %4478 }
 0x4c8   : > { %v1624_v26 = vmul.f32 %v4479_v19, %v1623_v50  ;;  %v1766_v50 = vrot.slane %v1665_v63, 4 }
 0x4ca   : > { %v1626_v43 = vadd.f32 %v1625_v10, %v1624_v26 }
 0x4cc   : > { %v5506_v30 = vsel %vm1634_vm6, %v1626_v43, %v5461_v44  ;;  %v1636_v24 = vsel %vm1634_vm6, %v1626_v43, 1.0  ;;  %v5564_v44 = vld [vmem:[#allocation10 + $0x78] ss:$12 sps:$4 sm:$0xff]  }
 0x4cd   : > { %v1644_v33 = vrot.slane %v1636_v24, %v5123_v39  ;;  %v1666_v32 = vpack.c.bf16 %v5506_v30, %v5506_v30 }
 0x4cf   : > { %v1645_v35 = vcombine.high %v1644_v33, %v1644_v33  ;;  %3731 = vst.sshfl [vmem:[#allocation4 + $0x3] sm:$0x1 pattern:$0x73625140] %v1644_v33  ;;  %1700 = vmatmul.mubr.bf16.vlgmr.msra.gmra.mrb[24].mxu0 %v1666_v32  ;;  %4063 = vmatmul.mubr.bf16.vlgmr.msra.gmra.mrb[20].mxu1 %v1666_v32  ;;  %v1780_v33 = vpop.permute.xlu0 %1779 }
 0x4d0   : > { %1815 = vmatpush1.bf16.msra.mxu0 %v5511_v36  ;;  %4067 = vmatpush3.bf16.msra.mxu1 %v5514_v38  ;;  %vm1781_vm7 = vcmp.eq.s32.totalorder %v1780_v33, 1 }
 0x4d1   : > { %3732 = vst.sshfl [vmem:[#allocation4 + $0x13] sm:$0x1 pattern:$0x73625140] %v1645_v35  ;;  %1816 = vmatprep.subr.bf16.mxu0 %v5517_v9  ;;  %4068 = vmatprep.subr.bf16.mxu1 %v4833_v28 }
 0x4d2   : > { %1846 = vmatprep.mubr.bf16.mxu0 %v4831_v3  ;;  %4082 = vmatprep.mubr.msk.bf16.mxu1 %vm4834_vm1, %v4833_v28 }
 0x4d4   : > { %1817 = vmatpush1.bf16.msra.mxu0 %v5524_v40  ;;  %4069 = vmatpush3.bf16.msra.mxu1 %v5527_v42 }
 0x4d5   : > { %1818 = vmatprep.subr.bf16.mxu0 %v5530_v37  ;;  %4070 = vmatprep.subr.bf16.mxu1 %v4833_v28 }
 0x4d8   : > { %1819 = vmatpush1.bf16.msra.mxu0 %v5534_v48  ;;  %4071 = vmatpush3.bf16.msra.mxu1 %v5537_v41 }
 0x4d9   : > { %1820 = vmatprep.subr.bf16.mxu0 %v5540_v21  ;;  %4072 = vmatprep.subr.bf16.mxu1 %v4833_v28 }
 0x4dc   : > { %1821 = vmatpush1.bf16.msra.mxu0 %v5544_v51  ;;  %4073 = vmatpush3.bf16.msra.mxu1 %v5547_v45 }
 0x4dd   : > { %1822 = vmatprep.subr.bf16.mxu0 %v5550_v52  ;;  %4074 = vmatprep.subr.bf16.mxu1 %v4833_v28 }
 0x4e0   : > { %1823 = vmatpush1.bf16.msra.mxu0 %v5554_v56  ;;  %4075 = vmatpush3.bf16.msra.mxu1 %v5557_v57 }
 0x4e1   : > { %1824 = vmatprep.subr.bf16.mxu0 %v5560_v59  ;;  %4076 = vmatprep.subr.bf16.mxu1 %v4833_v28 }
 0x4e4   : > { %1825 = vmatpush1.bf16.msra.mxu0 %v5564_v44  ;;  %4077 = vmatpush3.bf16.msra.mxu1 %v5567_v0 }
 0x4e5   : > { %1826 = vmatprep.subr.bf16.mxu0 %v5570_v49  ;;  %4078 = vmatprep.subr.bf16.mxu1 %v4833_v28 }
 0x4e8   : > { %1827 = vmatpush1.bf16.msra.mxu0 %v5574_v7  ;;  %4079 = vmatpush3.bf16.msra.mxu1 %v5577_v11 }
 0x4e9   : > { %1828 = vmatprep.subr.bf16.mxu0 %v5580_v54  ;;  %4080 = vmatprep.subr.bf16.mxu1 %v4833_v28 }
 0x4ec   : > { %1829 = vmatpush1.bf16.msra.mxu0 %v5584_v58  ;;  %4081 = vmatpush3.bf16.msra.mxu1 %v5587_v60 }
 0x4ed   : > { %1961 = vmatprep.subr.bf16.mxu0 %v5452_v46  ;;  %4086 = vmatprep.subr.bf16.mxu1 %v4833_v28 }
 0x5a2   : > { %v1701_v61 = vpop.f32.mrb[24].mxu0  ;;  %v1742_v62 = vpop.f32.mrb[20].mxu1 }
 0x5a3   : > { %v1702_v1 = vadd.f32 %v1701_v61, %v5330_v14  ;;  %v1703_v4 = vpop.f32.mrb[25].mxu0  ;;  %v4064_v6 = vpop.f32.mrb[21].mxu1  ;;  %v1743_v47 = vadd.f32 %v1742_v62, %v5340_v53 }
 0x5a4   : > { %v1704_v8 = vadd.f32 %v1703_v4, %v5334_v55  ;;  %v1705_v12 = vpop.f32.mrb[26].mxu0  ;;  %v1745_v13 = vpop.f32.mrb[22].mxu1  ;;  %v1812_v6 = vld [vmem:[#allocation3 + $0x1e] sm:$0x3f] }
 0x5a5   : > { %v1748_v15 = vadd.f32 %v1702_v1, %v1665_v63  ;;  %v1706_v17 = vpop.f32.mrb[27].mxu0  ;;  %v4065_v18 = vpop.f32.mrb[23].mxu1 }
 0x5a6   : > { %v1758_v23 = vadd.f32 %v1756_v20, %v1704_v8 }
 0x5a7   : > { %v3733_v22 = vmul.f32 -1.442695, %v1748_v15 }
 0x5a8   : > { %v3734_v25 = vmul.f32 -1.442695, %v1758_v23 }
 0x5a9   : > { %4480 = vpow2.f32 %v3733_v22 }
 0x5aa   : > { %4482 = vpow2.f32 %v3734_v25  ;;  %v1903_v25 = vrot.slane %v1812_v6, 2 }
 0x5b3   : > { %v4481_v27 = vpop.eup %4480 }
 0x5b4   : > { %v1752_v29 = vadd.f32 1.0, %v4481_v27  ;;  %v4483_v31 = vpop.eup %4482 }
 0x5b5   : > { %v1762_v34 = vadd.f32 1.0, %v4483_v31 }
 0x5b6   : > { %4484 = vrcp.f32 %v1752_v29 }
 0x5b7   : > { %4486 = vrcp.f32 %v1762_v34 }
 0x5c0   : > { %v4485_v16 = vpop.eup %4484 }
 0x5c1   : > { %v1765_v2 = vmul.f32 %v4485_v16, %v1743_v47  ;;  %v4487_v26 = vpop.eup %4486 }
 0x5c2   : > { %v1770_v10 = vsub.f32 1.0, %v4487_v26  ;;  %v1772_v24 = vmul.f32 %v4487_v26, %v5506_v30 }
 0x5c3   : > { %v1768_v19 = vadd.f32 %v1766_v50, %v1765_v2 }
 0x5c5   : > { %4488 = vtanh.f32 %v1768_v19 }
 0x5cf   : > { %v4489_v5 = vpop.eup %4488 }
 0x5d0   : > { %v1771_v43 = vmul.f32 %v4489_v5, %v1770_v10  ;;  %v1913_v10 = vrot.slane %v1812_v6, 4 }
 0x5d2   : > { %v1773_v32 = vadd.f32 %v1772_v24, %v1771_v43 }
 0x5d4   : > { %v5597_v35 = vsel %vm1781_vm7, %v1773_v32, %v5506_v30  ;;  %v1783_v61 = vsel %vm1781_vm7, %v1773_v32, 1.0 }
 0x5d5   : > { %v1791_v62 = vrot.slane %v1783_v61, %v5123_v39  ;;  %v1813_v63 = vpack.c.bf16 %v5597_v35, %v5597_v35 }
 0x5d7   : > { %v1792_v1 = vcombine.high %v1791_v62, %v1791_v62  ;;  %3735 = vst.sshfl [vmem:[#allocation4 + $0x4] sm:$0x1 pattern:$0x73625140] %v1791_v62  ;;  %1847 = vmatmul.mubr.bf16.vlgmr.msra.gmra.mrb[28].mxu0 %v1813_v63  ;;  %4083 = vmatmul.mubr.bf16.vlgmr.msra.gmra.mrb[24].mxu1 %v1813_v63  ;;  %v1927_v62 = vpop.permute.xlu1 %1926 }
 0x5d8   : > { %1962 = vmatpush1.bf16.msra.mxu0 %v5511_v36  ;;  %4087 = vmatpush3.bf16.msra.mxu1 %v5514_v38  ;;  %vm1928_vm8 = vcmp.eq.s32.totalorder %v1927_v62, 1 }
 0x5d9   : > { %3736 = vst.sshfl [vmem:[#allocation4 + $0x14] sm:$0x1 pattern:$0x73625140] %v1792_v1  ;;  %1963 = vmatprep.subr.bf16.mxu0 %v5517_v9  ;;  %4088 = vmatprep.subr.bf16.mxu1 %v4833_v28 }
 0x5da   : > { %1993 = vmatprep.mubr.bf16.mxu0 %v4831_v3  ;;  %4102 = vmatprep.mubr.msk.bf16.mxu1 %vm4834_vm1, %v4833_v28 }
 0x5dc   : > { %1964 = vmatpush1.bf16.msra.mxu0 %v5524_v40  ;;  %4089 = vmatpush3.bf16.msra.mxu1 %v5527_v42 }
 0x5dd   : > { %1965 = vmatprep.subr.bf16.mxu0 %v5530_v37  ;;  %4090 = vmatprep.subr.bf16.mxu1 %v4833_v28 }
 0x5e0   : > { %1966 = vmatpush1.bf16.msra.mxu0 %v5534_v48  ;;  %4091 = vmatpush3.bf16.msra.mxu1 %v5537_v41 }
 0x5e1   : > { %1967 = vmatprep.subr.bf16.mxu0 %v5540_v21  ;;  %4092 = vmatprep.subr.bf16.mxu1 %v4833_v28 }
 0x5e4   : > { %1968 = vmatpush1.bf16.msra.mxu0 %v5544_v51  ;;  %4093 = vmatpush3.bf16.msra.mxu1 %v5547_v45 }
 0x5e5   : > { %1969 = vmatprep.subr.bf16.mxu0 %v5550_v52  ;;  %4094 = vmatprep.subr.bf16.mxu1 %v4833_v28 }
 0x5e8   : > { %1970 = vmatpush1.bf16.msra.mxu0 %v5554_v56  ;;  %4095 = vmatpush3.bf16.msra.mxu1 %v5557_v57 }
 0x5e9   : > { %1971 = vmatprep.subr.bf16.mxu0 %v5560_v59  ;;  %4096 = vmatprep.subr.bf16.mxu1 %v4833_v28 }
 0x5ec   : > { %1972 = vmatpush1.bf16.msra.mxu0 %v5564_v44  ;;  %4097 = vmatpush3.bf16.msra.mxu1 %v5567_v0 }
 0x5ed   : > { %1973 = vmatprep.subr.bf16.mxu0 %v5570_v49  ;;  %4098 = vmatprep.subr.bf16.mxu1 %v4833_v28 }
 0x5f0   : > { %1974 = vmatpush1.bf16.msra.mxu0 %v5574_v7  ;;  %4099 = vmatpush3.bf16.msra.mxu1 %v5577_v11 }
 0x5f1   : > { %1975 = vmatprep.subr.bf16.mxu0 %v5580_v54  ;;  %4100 = vmatprep.subr.bf16.mxu1 %v4833_v28 }
 0x5f4   : > { %1976 = vmatpush1.bf16.msra.mxu0 %v5584_v58  ;;  %4101 = vmatpush3.bf16.msra.mxu1 %v5587_v60 }
 0x5f5   : > { %2108 = vmatprep.subr.bf16.mxu0 %v5452_v46  ;;  %4106 = vmatprep.subr.bf16.mxu1 %v4833_v28 }
 0x6aa   : > { %v1848_v30 = vpop.f32.mrb[28].mxu0  ;;  %v1889_v4 = vpop.f32.mrb[24].mxu1 }
 0x6ab   : > { %v1849_v8 = vadd.f32 %v1848_v30, %v5330_v14  ;;  %v1850_v12 = vpop.f32.mrb[29].mxu0  ;;  %v4084_v13 = vpop.f32.mrb[25].mxu1  ;;  %v1890_v50 = vadd.f32 %v1889_v4, %v5340_v53 }
 0x6ac   : > { %v1851_v15 = vadd.f32 %v1850_v12, %v5334_v55  ;;  %v1852_v17 = vpop.f32.mrb[30].mxu0  ;;  %v1892_v18 = vpop.f32.mrb[26].mxu1  ;;  %v1959_v13 = vld [vmem:[#allocation3 + $0x24] sm:$0x3f] }
 0x6ad   : > { %v1895_v20 = vadd.f32 %v1849_v8, %v1812_v6  ;;  %v1853_v22 = vpop.f32.mrb[31].mxu0  ;;  %v4085_v23 = vpop.f32.mrb[27].mxu1 }
 0x6ae   : > { %v1905_v29 = vadd.f32 %v1903_v25, %v1851_v15 }
 0x6af   : > { %v3737_v27 = vmul.f32 -1.442695, %v1895_v20 }
 0x6b0   : > { %v3738_v31 = vmul.f32 -1.442695, %v1905_v29 }
 0x6b1   : > { %4490 = vpow2.f32 %v3737_v27 }
 0x6b2   : > { %4492 = vpow2.f32 %v3738_v31  ;;  %v2050_v31 = vrot.slane %v1959_v13, 2 }
 0x6bb   : > { %v4491_v34 = vpop.eup %4490 }
 0x6bc   : > { %v1899_v47 = vadd.f32 1.0, %v4491_v34  ;;  %v4493_v16 = vpop.eup %4492 }
 0x6bd   : > { %v1909_v2 = vadd.f32 1.0, %v4493_v16 }
 0x6be   : > { %4494 = vrcp.f32 %v1899_v47 }
 0x6bf   : > { %4496 = vrcp.f32 %v1909_v2 }
 0x6c8   : > { %v4495_v19 = vpop.eup %4494 }
 0x6c9   : > { %v1912_v26 = vmul.f32 %v4495_v19, %v1890_v50  ;;  %v4497_v43 = vpop.eup %4496 }
 0x6ca   : > { %v1917_v24 = vsub.f32 1.0, %v4497_v43  ;;  %v1919_v61 = vmul.f32 %v4497_v43, %v5597_v35 }
 0x6cb   : > { %v1915_v5 = vadd.f32 %v1913_v10, %v1912_v26 }
 0x6cd   : > { %4498 = vtanh.f32 %v1915_v5 }
 0x6d7   : > { %v4499_v33 = vpop.eup %4498 }
 0x6d8   : > { %v1918_v32 = vmul.f32 %v4499_v33, %v1917_v24  ;;  %v2060_v24 = vrot.slane %v1959_v13, 4 }
 0x6da   : > { %v1920_v63 = vadd.f32 %v1919_v61, %v1918_v32 }
 0x6dc   : > { %v5642_v1 = vsel %vm1928_vm8, %v1920_v63, %v5597_v35  ;;  %v1930_v30 = vsel %vm1928_vm8, %v1920_v63, 1.0 }
 0x6dd   : > { %v1938_v4 = vrot.slane %v1930_v30, %v5123_v39  ;;  %v1960_v6 = vpack.c.bf16 %v5642_v1, %v5642_v1 }
 0x6df   : > { %v1939_v8 = vcombine.high %v1938_v4, %v1938_v4  ;;  %3739 = vst.sshfl [vmem:[#allocation4 + $0x5] sm:$0x1 pattern:$0x73625140] %v1938_v4  ;;  %1994 = vmatmul.mubr.bf16.vlgmr.msra.gmra.mrb[32].mxu0 %v1960_v6  ;;  %4103 = vmatmul.mubr.bf16.vlgmr.msra.gmra.mrb[28].mxu1 %v1960_v6  ;;  %v2074_v4 = vpop.permute.xlu0 %2073 }
 0x6e0   : > { %2109 = vmatpush1.bf16.msra.mxu0 %v5511_v36  ;;  %4107 = vmatpush3.bf16.msra.mxu1 %v5514_v38  ;;  %vm2075_vm9 = vcmp.eq.s32.totalorder %v2074_v4, 1 }
 0x6e1   : > { %3740 = vst.sshfl [vmem:[#allocation4 + $0x15] sm:$0x1 pattern:$0x73625140] %v1939_v8  ;;  %2110 = vmatprep.subr.bf16.mxu0 %v5517_v9  ;;  %4108 = vmatprep.subr.bf16.mxu1 %v4833_v28 }
 0x6e2   : > { %2140 = vmatprep.mubr.bf16.mxu0 %v4831_v3  ;;  %4122 = vmatprep.mubr.msk.bf16.mxu1 %vm4834_vm1, %v4833_v28 }
 0x6e4   : > { %2111 = vmatpush1.bf16.msra.mxu0 %v5524_v40  ;;  %4109 = vmatpush3.bf16.msra.mxu1 %v5527_v42 }
 0x6e5   : > { %2112 = vmatprep.subr.bf16.mxu0 %v5530_v37  ;;  %4110 = vmatprep.subr.bf16.mxu1 %v4833_v28 }
 0x6e8   : > { %2113 = vmatpush1.bf16.msra.mxu0 %v5534_v48  ;;  %4111 = vmatpush3.bf16.msra.mxu1 %v5537_v41 }
 0x6e9   : > { %2114 = vmatprep.subr.bf16.mxu0 %v5540_v21  ;;  %4112 = vmatprep.subr.bf16.mxu1 %v4833_v28 }
 0x6ec   : > { %2115 = vmatpush1.bf16.msra.mxu0 %v5544_v51  ;;  %4113 = vmatpush3.bf16.msra.mxu1 %v5547_v45 }
 0x6ed   : > { %2116 = vmatprep.subr.bf16.mxu0 %v5550_v52  ;;  %4114 = vmatprep.subr.bf16.mxu1 %v4833_v28 }
 0x6f0   : > { %2117 = vmatpush1.bf16.msra.mxu0 %v5554_v56  ;;  %4115 = vmatpush3.bf16.msra.mxu1 %v5557_v57 }
 0x6f1   : > { %2118 = vmatprep.subr.bf16.mxu0 %v5560_v59  ;;  %4116 = vmatprep.subr.bf16.mxu1 %v4833_v28 }
 0x6f4   : > { %2119 = vmatpush1.bf16.msra.mxu0 %v5564_v44  ;;  %4117 = vmatpush3.bf16.msra.mxu1 %v5567_v0 }
 0x6f5   : > { %2120 = vmatprep.subr.bf16.mxu0 %v5570_v49  ;;  %4118 = vmatprep.subr.bf16.mxu1 %v4833_v28 }
 0x6f8   : > { %2121 = vmatpush1.bf16.msra.mxu0 %v5574_v7  ;;  %4119 = vmatpush3.bf16.msra.mxu1 %v5577_v11 }
 0x6f9   : > { %2122 = vmatprep.subr.bf16.mxu0 %v5580_v54  ;;  %4120 = vmatprep.subr.bf16.mxu1 %v4833_v28 }
 0x6fc   : > { %2123 = vmatpush1.bf16.msra.mxu0 %v5584_v58  ;;  %4121 = vmatpush3.bf16.msra.mxu1 %v5587_v60 }
 0x6fd   : > { %2255 = vmatprep.subr.bf16.mxu0 %v5452_v46  ;;  %4126 = vmatprep.subr.bf16.mxu1 %v4833_v28 }
 0x7b2   : > { %v1995_v35 = vpop.f32.mrb[32].mxu0  ;;  %v2036_v12 = vpop.f32.mrb[28].mxu1 }
 0x7b3   : > { %v1996_v15 = vadd.f32 %v1995_v35, %v5330_v14  ;;  %v1997_v17 = vpop.f32.mrb[33].mxu0  ;;  %v4104_v18 = vpop.f32.mrb[29].mxu1  ;;  %v2037_v10 = vadd.f32 %v2036_v12, %v5340_v53 }
 0x7b4   : > { %v1998_v20 = vadd.f32 %v1997_v17, %v5334_v55  ;;  %v1999_v22 = vpop.f32.mrb[34].mxu0  ;;  %v2039_v23 = vpop.f32.mrb[30].mxu1  ;;  %v2106_v18 = vld [vmem:[#allocation3 + $0x2a] sm:$0x3f] }
 0x7b5   : > { %v2042_v25 = vadd.f32 %v1996_v15, %v1959_v13  ;;  %v2000_v27 = vpop.f32.mrb[35].mxu0  ;;  %v4105_v29 = vpop.f32.mrb[31].mxu1 }
 0x7b6   : > { %v2052_v47 = vadd.f32 %v2050_v31, %v1998_v20 }
 0x7b7   : > { %v3741_v34 = vmul.f32 -1.442695, %v2042_v25 }
 0x7b8   : > { %v3742_v16 = vmul.f32 -1.442695, %v2052_v47 }
 0x7b9   : > { %4500 = vpow2.f32 %v3741_v34 }
 0x7ba   : > { %4502 = vpow2.f32 %v3742_v16  ;;  %v2197_v16 = vrot.slane %v2106_v18, 2 }
 0x7c3   : > { %v4501_v2 = vpop.eup %4500 }
 0x7c4   : > { %v2046_v50 = vadd.f32 1.0, %v4501_v2  ;;  %v4503_v19 = vpop.eup %4502 }
 0x7c5   : > { %v2056_v26 = vadd.f32 1.0, %v4503_v19 }
 0x7c6   : > { %4504 = vrcp.f32 %v2046_v50 }
 0x7c7   : > { %4506 = vrcp.f32 %v2056_v26 }
 0x7d0   : > { %v4505_v5 = vpop.eup %4504 }
 0x7d1   : > { %v2059_v43 = vmul.f32 %v4505_v5, %v2037_v10  ;;  %v4507_v32 = vpop.eup %4506 }
 0x7d2   : > { %v2064_v61 = vsub.f32 1.0, %v4507_v32  ;;  %v2066_v30 = vmul.f32 %v4507_v32, %v5642_v1 }
 0x7d3   : > { %v2062_v33 = vadd.f32 %v2060_v24, %v2059_v43 }
 0x7d5   : > { %4508 = vtanh.f32 %v2062_v33 }
 0x7df   : > { %v4509_v62 = vpop.eup %4508 }
 0x7e0   : > { %v2065_v63 = vmul.f32 %v4509_v62, %v2064_v61  ;;  %v2207_v61 = vrot.slane %v2106_v18, 4 }
 0x7e2   : > { %v2067_v6 = vadd.f32 %v2066_v30, %v2065_v63 }
 0x7e4   : > { %v5687_v8 = vsel %vm2075_vm9, %v2067_v6, %v5642_v1  ;;  %v2077_v35 = vsel %vm2075_vm9, %v2067_v6, 1.0 }
 0x7e5   : > { %v2085_v12 = vrot.slane %v2077_v35, %v5123_v39  ;;  %v2107_v13 = vpack.c.bf16 %v5687_v8, %v5687_v8 }
 0x7e7   : > { %v2086_v15 = vcombine.high %v2085_v12, %v2085_v12  ;;  %3743 = vst.sshfl [vmem:[#allocation4 + $0x6] sm:$0x1 pattern:$0x73625140] %v2085_v12  ;;  %2141 = vmatmul.mubr.bf16.vlgmr.msra.gmra.mrb[36].mxu0 %v2107_v13  ;;  %4123 = vmatmul.mubr.bf16.vlgmr.msra.gmra.mrb[32].mxu1 %v2107_v13  ;;  %v2221_v12 = vpop.permute.xlu1 %2220 }
 0x7e8   : > { %2256 = vmatpush1.bf16.msra.mxu0 %v5511_v36  ;;  %4127 = vmatpush3.bf16.msra.mxu1 %v5514_v38  ;;  %vm2222_vm10 = vcmp.eq.s32.totalorder %v2221_v12, 1 }
 0x7e9   : > { %3744 = vst.sshfl [vmem:[#allocation4 + $0x16] sm:$0x1 pattern:$0x73625140] %v2086_v15  ;;  %2257 = vmatprep.subr.bf16.mxu0 %v5517_v9  ;;  %4128 = vmatprep.subr.bf16.mxu1 %v4833_v28 }
 0x7ea   : > { %2287 = vmatprep.mubr.bf16.mxu0 %v4831_v3  ;;  %4142 = vmatprep.mubr.msk.bf16.mxu1 %vm4834_vm1, %v4833_v28 }
 0x7ec   : > { %2258 = vmatpush1.bf16.msra.mxu0 %v5524_v40  ;;  %4129 = vmatpush3.bf16.msra.mxu1 %v5527_v42 }
 0x7ed   : > { %2259 = vmatprep.subr.bf16.mxu0 %v5530_v37  ;;  %4130 = vmatprep.subr.bf16.mxu1 %v4833_v28 }
 0x7f0   : > { %2260 = vmatpush1.bf16.msra.mxu0 %v5534_v48  ;;  %4131 = vmatpush3.bf16.msra.mxu1 %v5537_v41 }
 0x7f1   : > { %2261 = vmatprep.subr.bf16.mxu0 %v5540_v21  ;;  %4132 = vmatprep.subr.bf16.mxu1 %v4833_v28 }
 0x7f4   : > { %2262 = vmatpush1.bf16.msra.mxu0 %v5544_v51  ;;  %4133 = vmatpush3.bf16.msra.mxu1 %v5547_v45 }
 0x7f5   : > { %2263 = vmatprep.subr.bf16.mxu0 %v5550_v52  ;;  %4134 = vmatprep.subr.bf16.mxu1 %v4833_v28 }
 0x7f8   : > { %2264 = vmatpush1.bf16.msra.mxu0 %v5554_v56  ;;  %4135 = vmatpush3.bf16.msra.mxu1 %v5557_v57 }
 0x7f9   : > { %2265 = vmatprep.subr.bf16.mxu0 %v5560_v59  ;;  %4136 = vmatprep.subr.bf16.mxu1 %v4833_v28 }
 0x7fc   : > { %2266 = vmatpush1.bf16.msra.mxu0 %v5564_v44  ;;  %4137 = vmatpush3.bf16.msra.mxu1 %v5567_v0 }
 0x7fd   : > { %2267 = vmatprep.subr.bf16.mxu0 %v5570_v49  ;;  %4138 = vmatprep.subr.bf16.mxu1 %v4833_v28 }
 0x800   : > { %2268 = vmatpush1.bf16.msra.mxu0 %v5574_v7  ;;  %4139 = vmatpush3.bf16.msra.mxu1 %v5577_v11 }
 0x801   : > { %2269 = vmatprep.subr.bf16.mxu0 %v5580_v54  ;;  %4140 = vmatprep.subr.bf16.mxu1 %v4833_v28 }
 0x804   : > { %2270 = vmatpush1.bf16.msra.mxu0 %v5584_v58  ;;  %4141 = vmatpush3.bf16.msra.mxu1 %v5587_v60 }
 0x805   : > { %2402 = vmatprep.subr.bf16.mxu0 %v5452_v46  ;;  %4146 = vmatprep.subr.bf16.mxu1 %v4833_v28 }
 0x8ba   : > { %v2142_v1 = vpop.f32.mrb[36].mxu0  ;;  %v2183_v17 = vpop.f32.mrb[32].mxu1 }
 0x8bb   : > { %v2143_v20 = vadd.f32 %v2142_v1, %v5330_v14  ;;  %v2144_v22 = vpop.f32.mrb[37].mxu0  ;;  %v4124_v23 = vpop.f32.mrb[33].mxu1  ;;  %v2184_v24 = vadd.f32 %v2183_v17, %v5340_v53 }
 0x8bc   : > { %v2145_v25 = vadd.f32 %v2144_v22, %v5334_v55  ;;  %v2146_v27 = vpop.f32.mrb[38].mxu0  ;;  %v2186_v29 = vpop.f32.mrb[34].mxu1  ;;  %v2253_v23 = vld [vmem:[#allocation3 + $0x30] sm:$0x3f] }
 0x8bd   : > { %v2189_v31 = vadd.f32 %v2143_v20, %v2106_v18  ;;  %v2147_v34 = vpop.f32.mrb[39].mxu0  ;;  %v4125_v47 = vpop.f32.mrb[35].mxu1 }
 0x8be   : > { %v2199_v50 = vadd.f32 %v2197_v16, %v2145_v25 }
 0x8bf   : > { %v3745_v2 = vmul.f32 -1.442695, %v2189_v31 }
 0x8c0   : > { %v3746_v19 = vmul.f32 -1.442695, %v2199_v50 }
 0x8c1   : > { %4510 = vpow2.f32 %v3745_v2 }
 0x8c2   : > { %4512 = vpow2.f32 %v3746_v19  ;;  %v2344_v19 = vrot.slane %v2253_v23, 2 }
 0x8cb   : > { %v4511_v26 = vpop.eup %4510 }
 0x8cc   : > { %v2193_v10 = vadd.f32 1.0, %v4511_v26  ;;  %v4513_v5 = vpop.eup %4512 }
 0x8cd   : > { %v2203_v43 = vadd.f32 1.0, %v4513_v5 }
 0x8ce   : > { %4514 = vrcp.f32 %v2193_v10 }
 0x8cf   : > { %4516 = vrcp.f32 %v2203_v43 }
 0x8d8   : > { %v4515_v33 = vpop.eup %4514 }
 0x8d9   : > { %v2206_v32 = vmul.f32 %v4515_v33, %v2184_v24  ;;  %v4517_v63 = vpop.eup %4516 }
 0x8da   : > { %v2211_v30 = vsub.f32 1.0, %v4517_v63  ;;  %v2213_v35 = vmul.f32 %v4517_v63, %v5687_v8  ;;  %v2354_v63 = vrot.slane %v2253_v23, 4 }
 0x8db   : > { %v2209_v62 = vadd.f32 %v2207_v61, %v2206_v32 }
 0x8dd   : > { %4518 = vtanh.f32 %v2209_v62 }
 0x8e7   : > { %v4519_v4 = vpop.eup %4518 }
 0x8e8   : > { %v2212_v6 = vmul.f32 %v4519_v4, %v2211_v30 }
 0x8ea   : > { %v2214_v13 = vadd.f32 %v2213_v35, %v2212_v6 }
 0x8ec   : > { %v5732_v15 = vsel %vm2222_vm10, %v2214_v13, %v5687_v8  ;;  %v2224_v1 = vsel %vm2222_vm10, %v2214_v13, 1.0 }
 0x8ed   : > { %v2232_v17 = vrot.slane %v2224_v1, %v5123_v39  ;;  %v2254_v18 = vpack.c.bf16 %v5732_v15, %v5732_v15  ;;  %v2368_v1 = vpop.permute.xlu0 %2367 }
 0x8ee   : > { %vm2369_vm11 = vcmp.eq.s32.totalorder %v2368_v1, 1 }
 0x8ef   : > { %v2233_v20 = vcombine.high %v2232_v17, %v2232_v17  ;;  %3747 = vst.sshfl [vmem:[#allocation4 + $0x7] sm:$0x1 pattern:$0x73625140] %v2232_v17  ;;  %2288 = vmatmul.mubr.bf16.vlgmr.msra.gmra.mrb[40].mxu0 %v2254_v18  ;;  %4143 = vmatmul.mubr.bf16.vlgmr.msra.gmra.mrb[36].mxu1 %v2254_v18 }
 0x8f0   : > { %2403 = vmatpush1.bf16.msra.mxu0 %v5511_v36  ;;  %4147 = vmatpush3.bf16.msra.mxu1 %v5514_v38 }
 0x8f1   : > { %3748 = vst.sshfl [vmem:[#allocation4 + $0x17] sm:$0x1 pattern:$0x73625140] %v2233_v20  ;;  %2404 = vmatprep.subr.bf16.mxu0 %v5517_v9  ;;  %4148 = vmatprep.subr.bf16.mxu1 %v4833_v28 }
 0x8f2   : > { %2434 = vmatprep.mubr.bf16.mxu0 %v4831_v3  ;;  %4162 = vmatprep.mubr.msk.bf16.mxu1 %vm4834_vm1, %v4833_v28 }
 0x8f4   : > { %2405 = vmatpush1.bf16.msra.mxu0 %v5524_v40  ;;  %4149 = vmatpush3.bf16.msra.mxu1 %v5527_v42 }
 0x8f5   : > { %2406 = vmatprep.subr.bf16.mxu0 %v5530_v37  ;;  %4150 = vmatprep.subr.bf16.mxu1 %v4833_v28 }
 0x8f8   : > { %2407 = vmatpush1.bf16.msra.mxu0 %v5534_v48  ;;  %4151 = vmatpush3.bf16.msra.mxu1 %v5537_v41 }
 0x8f9   : > { %2408 = vmatprep.subr.bf16.mxu0 %v5540_v21  ;;  %4152 = vmatprep.subr.bf16.mxu1 %v4833_v28 }
 0x8fc   : > { %2409 = vmatpush1.bf16.msra.mxu0 %v5544_v51  ;;  %4153 = vmatpush3.bf16.msra.mxu1 %v5547_v45 }
 0x8fd   : > { %2410 = vmatprep.subr.bf16.mxu0 %v5550_v52  ;;  %4154 = vmatprep.subr.bf16.mxu1 %v4833_v28 }
 0x900   : > { %2411 = vmatpush1.bf16.msra.mxu0 %v5554_v56  ;;  %4155 = vmatpush3.bf16.msra.mxu1 %v5557_v57 }
 0x901   : > { %2412 = vmatprep.subr.bf16.mxu0 %v5560_v59  ;;  %4156 = vmatprep.subr.bf16.mxu1 %v4833_v28 }
 0x904   : > { %2413 = vmatpush1.bf16.msra.mxu0 %v5564_v44  ;;  %4157 = vmatpush3.bf16.msra.mxu1 %v5567_v0 }
 0x905   : > { %2414 = vmatprep.subr.bf16.mxu0 %v5570_v49  ;;  %4158 = vmatprep.subr.bf16.mxu1 %v4833_v28 }
 0x908   : > { %2415 = vmatpush1.bf16.msra.mxu0 %v5574_v7  ;;  %4159 = vmatpush3.bf16.msra.mxu1 %v5577_v11 }
 0x909   : > { %2416 = vmatprep.subr.bf16.mxu0 %v5580_v54  ;;  %4160 = vmatprep.subr.bf16.mxu1 %v4833_v28 }
 0x90c   : > { %2417 = vmatpush1.bf16.msra.mxu0 %v5584_v58  ;;  %4161 = vmatpush3.bf16.msra.mxu1 %v5587_v60 }
 0x90d   : > { %2549 = vmatprep.subr.bf16.mxu0 %v5452_v46  ;;  %4166 = vmatprep.subr.bf16.mxu1 %v4833_v28 }
 0x9c2   : > { %v2289_v8 = vpop.f32.mrb[40].mxu0  ;;  %v2330_v22 = vpop.f32.mrb[36].mxu1 }
 0x9c3   : > { %v2290_v25 = vadd.f32 %v2289_v8, %v5330_v14  ;;  %v2291_v27 = vpop.f32.mrb[41].mxu0  ;;  %v4144_v29 = vpop.f32.mrb[37].mxu1  ;;  %v2331_v32 = vadd.f32 %v2330_v22, %v5340_v53 }
 0x9c4   : > { %v2292_v31 = vadd.f32 %v2291_v27, %v5334_v55  ;;  %v2293_v34 = vpop.f32.mrb[42].mxu0  ;;  %v2333_v47 = vpop.f32.mrb[38].mxu1  ;;  %v2400_v29 = vld [vmem:[#allocation3 + $0x36] sm:$0x3f] }
 0x9c5   : > { %v2336_v16 = vadd.f32 %v2290_v25, %v2253_v23  ;;  %v2294_v2 = vpop.f32.mrb[43].mxu0  ;;  %v4145_v50 = vpop.f32.mrb[39].mxu1 }
 0x9c6   : > { %v2346_v10 = vadd.f32 %v2344_v19, %v2292_v31 }
 0x9c7   : > { %v3749_v26 = vmul.f32 -1.442695, %v2336_v16 }
 0x9c8   : > { %v3750_v46 = vmul.f32 -1.442695, %v2346_v10 }
 0x9c9   : > { %4520 = vpow2.f32 %v3749_v26 }
 0x9ca   : > { %4522 = vpow2.f32 %v3750_v46  ;;  %v2491_v46 = vrot.slane %v2400_v29, 2 }
 0x9d3   : > { %v4521_v5 = vpop.eup %4520 }
 0x9d4   : > { %v2340_v43 = vadd.f32 1.0, %v4521_v5  ;;  %v4523_v24 = vpop.eup %4522 }
 0x9d5   : > { %v2350_v33 = vadd.f32 1.0, %v4523_v24 }
 0x9d6   : > { %4524 = vrcp.f32 %v2340_v43 }
 0x9d7   : > { %4526 = vrcp.f32 %v2350_v33 }
 0x9e0   : > { %v4525_v61 = vpop.eup %4524 }
 0x9e1   : > { %v2353_v62 = vmul.f32 %v4525_v61, %v2331_v32  ;;  %v4527_v4 = vpop.eup %4526 }
 0x9e2   : > { %v2358_v6 = vsub.f32 1.0, %v4527_v4  ;;  %v2360_v13 = vmul.f32 %v4527_v4, %v5732_v15 }
 0x9e3   : > { %v2356_v30 = vadd.f32 %v2354_v63, %v2353_v62 }
 0x9e5   : > { %4528 = vtanh.f32 %v2356_v30 }
 0x9ef   : > { %v4529_v35 = vpop.eup %4528 }
 0x9f0   : > { %v2359_v12 = vmul.f32 %v4529_v35, %v2358_v6  ;;  %v2501_v6 = vrot.slane %v2400_v29, 4 }
 0x9f2   : > { %v2361_v17 = vadd.f32 %v2360_v13, %v2359_v12 }
 0x9f4   : > { %v5777_v18 = vsel %vm2369_vm11, %v2361_v17, %v5732_v15  ;;  %v2371_v20 = vsel %vm2369_vm11, %v2361_v17, 1.0  ;;  %v5815_v15 = vld [vmem:[#allocation10 + $0x4] ss:$12 sps:$4 sm:$0xff]  }
 0x9f5   : > { %v2379_v8 = vrot.slane %v2371_v20, %v5123_v39  ;;  %v2401_v22 = vpack.c.bf16 %v5777_v18, %v5777_v18 }
 0x9f7   : > { %v2380_v23 = vcombine.high %v2379_v8, %v2379_v8  ;;  %3751 = vst.sshfl [vmem:[#allocation4 + $0x8] sm:$0x1 pattern:$0x73625140] %v2379_v8  ;;  %2435 = vmatmul.mubr.bf16.vlgmr.msra.gmra.mrb[44].mxu0 %v2401_v22  ;;  %4163 = vmatmul.mubr.bf16.vlgmr.msra.gmra.mrb[40].mxu1 %v2401_v22  ;;  %v2515_v8 = vpop.permute.xlu1 %2514 }
 0x9f8   : > { %2550 = vmatpush1.bf16.msra.mxu0 %v5511_v36  ;;  %4167 = vmatpush3.bf16.msra.mxu1 %v5514_v38  ;;  %vm2516_vm12 = vcmp.eq.s32.totalorder %v2515_v8, 1  ;;  %v5920_v8 = vld [vmem:[#allocation10 + $0x68] ss:$12 sps:$4 sm:$0xff]  }
 0x9f9   : > { %3752 = vst.sshfl [vmem:[#allocation4 + $0x18] sm:$0x1 pattern:$0x73625140] %v2380_v23  ;;  %2551 = vmatprep.subr.bf16.mxu0 %v5517_v9  ;;  %4168 = vmatprep.subr.bf16.mxu1 %v4833_v28 }
 0x9fa   : > { %2581 = vmatprep.mubr.bf16.mxu0 %v4831_v3  ;;  %4182 = vmatprep.mubr.msk.bf16.mxu1 %vm4834_vm1, %v4833_v28 }
 0x9fc   : > { %2552 = vmatpush1.bf16.msra.mxu0 %v5524_v40  ;;  %4169 = vmatpush3.bf16.msra.mxu1 %v5527_v42 }
 0x9fd   : > { %2553 = vmatprep.subr.bf16.mxu0 %v5530_v37  ;;  %4170 = vmatprep.subr.bf16.mxu1 %v4833_v28 }
 0xa00   : > { %2554 = vmatpush1.bf16.msra.mxu0 %v5534_v48  ;;  %4171 = vmatpush3.bf16.msra.mxu1 %v5537_v41 }
 0xa01   : > { %2555 = vmatprep.subr.bf16.mxu0 %v5540_v21  ;;  %4172 = vmatprep.subr.bf16.mxu1 %v4833_v28 }
 0xa04   : > { %2556 = vmatpush1.bf16.msra.mxu0 %v5544_v51  ;;  %4173 = vmatpush3.bf16.msra.mxu1 %v5547_v45 }
 0xa05   : > { %2557 = vmatprep.subr.bf16.mxu0 %v5550_v52  ;;  %4174 = vmatprep.subr.bf16.mxu1 %v4833_v28 }
 0xa08   : > { %2558 = vmatpush1.bf16.msra.mxu0 %v5554_v56  ;;  %4175 = vmatpush3.bf16.msra.mxu1 %v5557_v57 }
 0xa09   : > { %2559 = vmatprep.subr.bf16.mxu0 %v5560_v59  ;;  %4176 = vmatprep.subr.bf16.mxu1 %v4833_v28 }
 0xa0c   : > { %2560 = vmatpush1.bf16.msra.mxu0 %v5564_v44  ;;  %4177 = vmatpush3.bf16.msra.mxu1 %v5567_v0 }
 0xa0d   : > { %2561 = vmatprep.subr.bf16.mxu0 %v5570_v49  ;;  %4178 = vmatprep.subr.bf16.mxu1 %v4833_v28 }
 0xa10   : > { %2562 = vmatpush1.bf16.msra.mxu0 %v5574_v7  ;;  %4179 = vmatpush3.bf16.msra.mxu1 %v5577_v11 }
 0xa11   : > { %2563 = vmatprep.subr.bf16.mxu0 %v5580_v54  ;;  %4180 = vmatprep.subr.bf16.mxu1 %v4833_v28 }
 0xa14   : > { %2564 = vmatpush1.bf16.msra.mxu0 %v5584_v58  ;;  %4181 = vmatpush3.bf16.msra.mxu1 %v5587_v60 }
 0xa15   : > { %2696 = vmatprep.subr.bf16.mxu0 %v5815_v15  ;;  %4186 = vmatprep.subr.bf16.mxu1 %v4833_v28 }
 0xaca   : > { %v2436_v25 = vpop.f32.mrb[44].mxu0  ;;  %v2477_v27 = vpop.f32.mrb[40].mxu1 }
 0xacb   : > { %v2437_v31 = vadd.f32 %v2436_v25, %v5330_v14  ;;  %v2438_v34 = vpop.f32.mrb[45].mxu0  ;;  %v4164_v47 = vpop.f32.mrb[41].mxu1  ;;  %v2478_v63 = vadd.f32 %v2477_v27, %v5340_v53 }
 0xacc   : > { %v2439_v16 = vadd.f32 %v2438_v34, %v5334_v55  ;;  %v2440_v2 = vpop.f32.mrb[46].mxu0  ;;  %v2480_v50 = vpop.f32.mrb[42].mxu1 }
 0xacd   : > { %v2483_v19 = vadd.f32 %v2437_v31, %v2400_v29  ;;  %v2441_v26 = vpop.f32.mrb[47].mxu0  ;;  %v4165_v10 = vpop.f32.mrb[43].mxu1 }
 0xace   : > { %v2493_v43 = vadd.f32 %v2491_v46, %v2439_v16  ;;  %v2662_v26 = vpop.permute.xlu0 %2661 }
 0xacf   : > { %v3753_v5 = vmul.f32 -1.442695, %v2483_v19  ;;  %vm2663_vm13 = vcmp.eq.s32.totalorder %v2662_v26, 1 }
 0xad0   : > { %v3754_v24 = vmul.f32 -1.442695, %v2493_v43 }
 0xad1   : > { %4530 = vpow2.f32 %v3753_v5 }
 0xad2   : > { %4532 = vpow2.f32 %v3754_v24 }
 0xadb   : > { %v4531_v33 = vpop.eup %4530 }
 0xadc   : > { %v2487_v32 = vadd.f32 1.0, %v4531_v33  ;;  %v4533_v61 = vpop.eup %4532 }
 0xadd   : > { %v2497_v62 = vadd.f32 1.0, %v4533_v61  ;;  %v5877_v61 = vld [vmem:[#allocation10 + $0x8] ss:$12 sps:$4 sm:$0xff]  }
 0xade   : > { %4534 = vrcp.f32 %v2487_v32  ;;  %v5874_v32 = vld [vmem:[#allocation10] ss:$12 sps:$4 sm:$0xff]  }
 0xadf   : > { %4536 = vrcp.f32 %v2497_v62  ;;  %v5880_v62 = vld [vmem:[#allocation10 + $0x1c] ss:$12 sps:$4 sm:$0xff]  }
 0xae8   : > { %v4535_v30 = vpop.eup %4534 }
 0xae9   : > { %v2500_v4 = vmul.f32 %v4535_v30, %v2478_v63  ;;  %v4537_v12 = vpop.eup %4536  ;;  %v5887_v63 = vld [vmem:[#allocation10 + $0x18] ss:$12 sps:$4 sm:$0xff]   ;;  %v5890_v30 = vld [vmem:[#allocation10 + $0x20] ss:$12 sps:$4 sm:$0xff]  }
 0xaea   : > { %v2505_v13 = vsub.f32 1.0, %v4537_v12  ;;  %v2507_v20 = vmul.f32 %v4537_v12, %v5777_v18  ;;  %v5903_v12 = vld [vmem:[#allocation10 + $0x4c] ss:$12 sps:$4 sm:$0xff]  }
 0xaeb   : > { %v2503_v35 = vadd.f32 %v2501_v6, %v2500_v4  ;;  %v5893_v4 = vld [vmem:[#allocation10 + $0x34] ss:$12 sps:$4 sm:$0xff]   ;;  %v5897_v6 = vld [vmem:[#allocation10 + $0x30] ss:$12 sps:$4 sm:$0xff]  }
 0xaed   : > { %4538 = vtanh.f32 %v2503_v35  ;;  %v5900_v35 = vld [vmem:[#allocation10 + $0x38] ss:$12 sps:$4 sm:$0xff]  }
 0xaf7   : > { %v4539_v1 = vpop.eup %4538 }
 0xaf8   : > { %v2506_v17 = vmul.f32 %v4539_v1, %v2505_v13  ;;  %v5907_v13 = vld [vmem:[#allocation10 + $0x48] ss:$12 sps:$4 sm:$0xff]   ;;  %v5910_v1 = vld [vmem:[#allocation10 + $0x50] ss:$12 sps:$4 sm:$0xff]  }
 0xafa   : > { %v2508_v22 = vadd.f32 %v2507_v20, %v2506_v17  ;;  %v5913_v17 = vld [vmem:[#allocation10 + $0x64] ss:$12 sps:$4 sm:$0xff]   ;;  %v5917_v20 = vld [vmem:[#allocation10 + $0x60] ss:$12 sps:$4 sm:$0xff]  }
 0xafc   : > { %v5824_v23 = vsel %vm2516_vm12, %v2508_v22, %v5777_v18  ;;  %v2518_v25 = vsel %vm2516_vm12, %v2508_v22, 1.0  ;;  %v5923_v22 = vld [vmem:[#allocation10 + $0x7c] ss:$12 sps:$4 sm:$0xff]  }
 0xafd   : > { %v2526_v27 = vrot.slane %v2518_v25, %v5123_v39  ;;  %v2548_v29 = vpack.c.bf16 %v5824_v23, %v5824_v23  ;;  %v5930_v25 = vld [vmem:[#allocation10 + $0x80] ss:$12 sps:$4 sm:$0xff]  }
 0xaff   : > { %v2527_v31 = vcombine.high %v2526_v27, %v2526_v27  ;;  %3755 = vst.sshfl [vmem:[#allocation4 + $0x9] sm:$0x1 pattern:$0x73625140] %v2526_v27  ;;  %2582 = vmatmul.mubr.bf16.vlgmr.msra.gmra.mrb[48].mxu0 %v2548_v29  ;;  %4183 = vmatmul.mubr.bf16.vlgmr.msra.gmra.mrb[44].mxu1 %v2548_v29  ;;  %v5933_v27 = vld [vmem:[#allocation10 + $0x94] ss:$12 sps:$4 sm:$0xff]  }
 0xb00   : > { %2697 = vmatpush1.bf16.msra.mxu0 %v5511_v36  ;;  %4187 = vmatpush3.bf16.msra.mxu1 %v5514_v38  ;;  %v5937_v29 = vld [vmem:[#allocation10 + $0x90] ss:$12 sps:$4 sm:$0xff]  }
 0xb01   : > { %3756 = vst.sshfl [vmem:[#allocation4 + $0x19] sm:$0x1 pattern:$0x73625140] %v2527_v31  ;;  %2698 = vmatprep.subr.bf16.mxu0 %v5517_v9  ;;  %4188 = vmatprep.subr.bf16.mxu1 %v4833_v28  ;;  %v2547_v9 = vld [vmem:[#allocation3 + $0x3c] sm:$0x3f] }
 0xb02   : > { %2728 = vmatprep.mubr.bf16.mxu0 %v4831_v3  ;;  %4202 = vmatprep.mubr.msk.bf16.mxu1 %vm4834_vm1, %v4833_v28  ;;  %v2648_v18 = vrot.slane %v2547_v9, 4  ;;  %v5940_v31 = vld [vmem:[#allocation10 + $0x98] ss:$12 sps:$4 sm:$0xff]  }
 0xb04   : > { %2699 = vmatpush1.bf16.msra.mxu0 %v5524_v40  ;;  %4189 = vmatpush3.bf16.msra.mxu1 %v5527_v42 }
 0xb05   : > { %2700 = vmatprep.subr.bf16.mxu0 %v5530_v37  ;;  %4190 = vmatprep.subr.bf16.mxu1 %v4833_v28 }
 0xb08   : > { %2701 = vmatpush1.bf16.msra.mxu0 %v5534_v48  ;;  %4191 = vmatpush3.bf16.msra.mxu1 %v5537_v41 }
 0xb09   : > { %2702 = vmatprep.subr.bf16.mxu0 %v5540_v21  ;;  %4192 = vmatprep.subr.bf16.mxu1 %v4833_v28 }
 0xb0c   : > { %2703 = vmatpush1.bf16.msra.mxu0 %v5544_v51  ;;  %4193 = vmatpush3.bf16.msra.mxu1 %v5547_v45 }
 0xb0d   : > { %2704 = vmatprep.subr.bf16.mxu0 %v5550_v52  ;;  %4194 = vmatprep.subr.bf16.mxu1 %v4833_v28 }
 0xb10   : > { %2705 = vmatpush1.bf16.msra.mxu0 %v5554_v56  ;;  %4195 = vmatpush3.bf16.msra.mxu1 %v5557_v57  ;;  %v2638_v56 = vrot.slane %v2547_v9, 2 }
 0xb11   : > { %2706 = vmatprep.subr.bf16.mxu0 %v5560_v59  ;;  %4196 = vmatprep.subr.bf16.mxu1 %v4833_v28 }
 0xb14   : > { %2707 = vmatpush1.bf16.msra.mxu0 %v5564_v44  ;;  %4197 = vmatpush3.bf16.msra.mxu1 %v5567_v0 }
 0xb15   : > { %2708 = vmatprep.subr.bf16.mxu0 %v5570_v49  ;;  %4198 = vmatprep.subr.bf16.mxu1 %v4833_v28 }
 0xb18   : > { %2709 = vmatpush1.bf16.msra.mxu0 %v5574_v7  ;;  %4199 = vmatpush3.bf16.msra.mxu1 %v5577_v11 }
 0xb19   : > { %2710 = vmatprep.subr.bf16.mxu0 %v5580_v54  ;;  %4200 = vmatprep.subr.bf16.mxu1 %v4833_v28 }
 0xb1c   : > { %2711 = vmatpush1.bf16.msra.mxu0 %v5584_v58  ;;  %4201 = vmatpush3.bf16.msra.mxu1 %v5587_v60 }
 0xb1d   : > { %2843 = vmatprep.subr.bf16.mxu0 %v5815_v15  ;;  %4206 = vmatprep.subr.bf16.mxu1 %v4833_v28 }
 0xbd2   : > { %v2583_v36 = vpop.f32.mrb[48].mxu0  ;;  %v2624_v38 = vpop.f32.mrb[44].mxu1 }
 0xbd3   : > { %v2584_v40 = vadd.f32 %v2583_v36, %v5330_v14  ;;  %v2585_v42 = vpop.f32.mrb[49].mxu0  ;;  %v4184_v37 = vpop.f32.mrb[45].mxu1  ;;  %v2625_v54 = vadd.f32 %v2624_v38, %v5340_v53  ;;  %v5943_v36 = vld [vmem:[#allocation10 + $0xac] ss:$12 sps:$4 sm:$0xff]   ;;  %v5947_v38 = vld [vmem:[#allocation10 + $0xa8] ss:$12 sps:$4 sm:$0xff]  }
 0xbd4   : > { %v2586_v48 = vadd.f32 %v2585_v42, %v5334_v55  ;;  %v2587_v41 = vpop.f32.mrb[50].mxu0  ;;  %v2627_v21 = vpop.f32.mrb[46].mxu1  ;;  %v2694_v37 = vld [vmem:[#allocation3 + $0x42] sm:$0x3f] }
 0xbd5   : > { %v2630_v51 = vadd.f32 %v2584_v40, %v2547_v9  ;;  %v2588_v45 = vpop.f32.mrb[51].mxu0  ;;  %v4185_v52 = vpop.f32.mrb[47].mxu1  ;;  %v5950_v9 = vld [vmem:[#allocation10 + $0xb0] ss:$12 sps:$4 sm:$0xff]  }
 0xbd6   : > { %v2640_v59 = vadd.f32 %v2638_v56, %v2586_v48 }
 0xbd7   : > { %v3757_v57 = vmul.f32 -1.442695, %v2630_v51 }
 0xbd8   : > { %v3758_v44 = vmul.f32 -1.442695, %v2640_v59 }
 0xbd9   : > { %4540 = vpow2.f32 %v3757_v57 }
 0xbda   : > { %4542 = vpow2.f32 %v3758_v44  ;;  %v2785_v44 = vrot.slane %v2694_v37, 2 }
 0xbe3   : > { %v4541_v0 = vpop.eup %4540 }
 0xbe4   : > { %v2634_v49 = vadd.f32 1.0, %v4541_v0  ;;  %v4543_v7 = vpop.eup %4542 }
 0xbe5   : > { %v2644_v11 = vadd.f32 1.0, %v4543_v7 }
 0xbe6   : > { %4544 = vrcp.f32 %v2634_v49 }
 0xbe7   : > { %4546 = vrcp.f32 %v2644_v11 }
 0xbf0   : > { %v4545_v58 = vpop.eup %4544 }
 0xbf1   : > { %v2647_v60 = vmul.f32 %v4545_v58, %v2625_v54  ;;  %v4547_v47 = vpop.eup %4546 }
 0xbf2   : > { %v2652_v16 = vsub.f32 1.0, %v4547_v47  ;;  %v2654_v19 = vmul.f32 %v4547_v47, %v5824_v23 }
 0xbf3   : > { %v2650_v34 = vadd.f32 %v2648_v18, %v2647_v60 }
 0xbf5   : > { %4548 = vtanh.f32 %v2650_v34 }
 0xbff   : > { %v4549_v2 = vpop.eup %4548 }
 0xc00   : > { %v2653_v50 = vmul.f32 %v4549_v2, %v2652_v16  ;;  %v2795_v16 = vrot.slane %v2694_v37, 4 }
 0xc02   : > { %v2655_v10 = vadd.f32 %v2654_v19, %v2653_v50 }
 0xc04   : > { %v5869_v46 = vsel %vm2663_vm13, %v2655_v10, %v5824_v23  ;;  %v2665_v5 = vsel %vm2663_vm13, %v2655_v10, 1.0  ;;  %v5927_v23 = vld [vmem:[#allocation10 + $0x78] ss:$12 sps:$4 sm:$0xff]  }
 0xc05   : > { %v2673_v43 = vrot.slane %v2665_v5, %v5123_v39  ;;  %v2695_v24 = vpack.c.bf16 %v5869_v46, %v5869_v46 }
 0xc07   : > { %v2674_v33 = vcombine.high %v2673_v43, %v2673_v43  ;;  %3759 = vst.sshfl [vmem:[#allocation4 + $0xa] sm:$0x1 pattern:$0x73625140] %v2673_v43  ;;  %2729 = vmatmul.mubr.bf16.vlgmr.msra.gmra.mrb[52].mxu0 %v2695_v24  ;;  %4203 = vmatmul.mubr.bf16.vlgmr.msra.gmra.mrb[48].mxu1 %v2695_v24  ;;  %v2809_v43 = vpop.permute.xlu1 %2808 }
 0xc08   : > { %2844 = vmatpush1.bf16.msra.mxu0 %v5874_v32  ;;  %4207 = vmatpush3.bf16.msra.mxu1 %v5877_v61  ;;  %vm2810_vm14 = vcmp.eq.s32.totalorder %v2809_v43, 1 }
 0xc09   : > { %3760 = vst.sshfl [vmem:[#allocation4 + $0x1a] sm:$0x1 pattern:$0x73625140] %v2674_v33  ;;  %2845 = vmatprep.subr.bf16.mxu0 %v5880_v62  ;;  %4208 = vmatprep.subr.bf16.mxu1 %v4833_v28 }
 0xc0a   : > { %2875 = vmatprep.mubr.bf16.mxu0 %v4831_v3  ;;  %4222 = vmatprep.mubr.msk.bf16.mxu1 %vm4834_vm1, %v4833_v28 }
 0xc0c   : > { %2846 = vmatpush1.bf16.msra.mxu0 %v5887_v63  ;;  %4209 = vmatpush3.bf16.msra.mxu1 %v5890_v30 }
 0xc0d   : > { %2847 = vmatprep.subr.bf16.mxu0 %v5893_v4  ;;  %4210 = vmatprep.subr.bf16.mxu1 %v4833_v28 }
 0xc10   : > { %2848 = vmatpush1.bf16.msra.mxu0 %v5897_v6  ;;  %4211 = vmatpush3.bf16.msra.mxu1 %v5900_v35 }
 0xc11   : > { %2849 = vmatprep.subr.bf16.mxu0 %v5903_v12  ;;  %4212 = vmatprep.subr.bf16.mxu1 %v4833_v28 }
 0xc14   : > { %2850 = vmatpush1.bf16.msra.mxu0 %v5907_v13  ;;  %4213 = vmatpush3.bf16.msra.mxu1 %v5910_v1 }
 0xc15   : > { %2851 = vmatprep.subr.bf16.mxu0 %v5913_v17  ;;  %4214 = vmatprep.subr.bf16.mxu1 %v4833_v28 }
 0xc18   : > { %2852 = vmatpush1.bf16.msra.mxu0 %v5917_v20  ;;  %4215 = vmatpush3.bf16.msra.mxu1 %v5920_v8 }
 0xc19   : > { %2853 = vmatprep.subr.bf16.mxu0 %v5923_v22  ;;  %4216 = vmatprep.subr.bf16.mxu1 %v4833_v28 }
 0xc1c   : > { %2854 = vmatpush1.bf16.msra.mxu0 %v5927_v23  ;;  %4217 = vmatpush3.bf16.msra.mxu1 %v5930_v25 }
 0xc1d   : > { %2855 = vmatprep.subr.bf16.mxu0 %v5933_v27  ;;  %4218 = vmatprep.subr.bf16.mxu1 %v4833_v28 }
 0xc20   : > { %2856 = vmatpush1.bf16.msra.mxu0 %v5937_v29  ;;  %4219 = vmatpush3.bf16.msra.mxu1 %v5940_v31 }
 0xc21   : > { %2857 = vmatprep.subr.bf16.mxu0 %v5943_v36  ;;  %4220 = vmatprep.subr.bf16.mxu1 %v4833_v28 }
 0xc24   : > { %2858 = vmatpush1.bf16.msra.mxu0 %v5947_v38  ;;  %4221 = vmatpush3.bf16.msra.mxu1 %v5950_v9 }
 0xc25   : > { %2990 = vmatprep.subr.bf16.mxu0 %v5815_v15  ;;  %4226 = vmatprep.subr.bf16.mxu1 %v4833_v28 }
 0xcda   : > { %v2730_v40 = vpop.f32.mrb[52].mxu0  ;;  %v2771_v42 = vpop.f32.mrb[48].mxu1 }
 0xcdb   : > { %v2731_v48 = vadd.f32 %v2730_v40, %v5330_v14  ;;  %v2732_v41 = vpop.f32.mrb[53].mxu0  ;;  %v4204_v21 = vpop.f32.mrb[49].mxu1  ;;  %v2772_v18 = vadd.f32 %v2771_v42, %v5340_v53 }
 0xcdc   : > { %v2733_v51 = vadd.f32 %v2732_v41, %v5334_v55  ;;  %v2734_v45 = vpop.f32.mrb[54].mxu0  ;;  %v2774_v52 = vpop.f32.mrb[50].mxu1  ;;  %v2841_v21 = vld [vmem:[#allocation3 + $0x48] sm:$0x3f] }
 0xcdd   : > { %v2777_v56 = vadd.f32 %v2731_v48, %v2694_v37  ;;  %v2735_v57 = vpop.f32.mrb[55].mxu0  ;;  %v4205_v59 = vpop.f32.mrb[51].mxu1 }
 0xcde   : > { %v2787_v49 = vadd.f32 %v2785_v44, %v2733_v51 }
 0xcdf   : > { %v3761_v0 = vmul.f32 -1.442695, %v2777_v56 }
 0xce0   : > { %v3762_v7 = vmul.f32 -1.442695, %v2787_v49 }
 0xce1   : > { %4550 = vpow2.f32 %v3761_v0 }
 0xce2   : > { %4552 = vpow2.f32 %v3762_v7  ;;  %v2932_v7 = vrot.slane %v2841_v21, 2 }
 0xceb   : > { %v4551_v11 = vpop.eup %4550 }
 0xcec   : > { %v2781_v54 = vadd.f32 1.0, %v4551_v11  ;;  %v4553_v58 = vpop.eup %4552 }
 0xced   : > { %v2791_v60 = vadd.f32 1.0, %v4553_v58 }
 0xcee   : > { %4554 = vrcp.f32 %v2781_v54 }
 0xcef   : > { %4556 = vrcp.f32 %v2791_v60 }
 0xcf8   : > { %v4555_v34 = vpop.eup %4554 }
 0xcf9   : > { %v2794_v47 = vmul.f32 %v4555_v34, %v2772_v18  ;;  %v4557_v50 = vpop.eup %4556 }
 0xcfa   : > { %v2799_v19 = vsub.f32 1.0, %v4557_v50  ;;  %v2801_v5 = vmul.f32 %v4557_v50, %v5869_v46 }
 0xcfb   : > { %v2797_v2 = vadd.f32 %v2795_v16, %v2794_v47 }
 0xcfd   : > { %4558 = vtanh.f32 %v2797_v2 }
 0xd07   : > { %v4559_v26 = vpop.eup %4558 }
 0xd08   : > { %v2800_v10 = vmul.f32 %v4559_v26, %v2799_v19  ;;  %v2942_v19 = vrot.slane %v2841_v21, 4 }
 0xd0a   : > { %v2802_v24 = vadd.f32 %v2801_v5, %v2800_v10 }
 0xd0c   : > { %v5960_v33 = vsel %vm2810_vm14, %v2802_v24, %v5869_v46  ;;  %v2812_v40 = vsel %vm2810_vm14, %v2802_v24, 1.0 }
 0xd0d   : > { %v2820_v42 = vrot.slane %v2812_v40, %v5123_v39  ;;  %v2842_v37 = vpack.c.bf16 %v5960_v33, %v5960_v33 }
 0xd0f   : > { %v2821_v48 = vcombine.high %v2820_v42, %v2820_v42  ;;  %3763 = vst.sshfl [vmem:[#allocation4 + $0xb] sm:$0x1 pattern:$0x73625140] %v2820_v42  ;;  %2876 = vmatmul.mubr.bf16.vlgmr.msra.gmra.mrb[56].mxu0 %v2842_v37  ;;  %4223 = vmatmul.mubr.bf16.vlgmr.msra.gmra.mrb[52].mxu1 %v2842_v37  ;;  %v2956_v42 = vpop.permute.xlu0 %2955 }
 0xd10   : > { %2991 = vmatpush1.bf16.msra.mxu0 %v5874_v32  ;;  %4227 = vmatpush3.bf16.msra.mxu1 %v5877_v61  ;;  %vm2957_vm15 = vcmp.eq.s32.totalorder %v2956_v42, 1 }
 0xd11   : > { %3764 = vst.sshfl [vmem:[#allocation4 + $0x1b] sm:$0x1 pattern:$0x73625140] %v2821_v48  ;;  %2992 = vmatprep.subr.bf16.mxu0 %v5880_v62  ;;  %4228 = vmatprep.subr.bf16.mxu1 %v4833_v28 }
 0xd12   : > { %3022 = vmatprep.mubr.bf16.mxu0 %v4831_v3  ;;  %4242 = vmatprep.mubr.msk.bf16.mxu1 %vm4834_vm1, %v4833_v28 }
 0xd14   : > { %2993 = vmatpush1.bf16.msra.mxu0 %v5887_v63  ;;  %4229 = vmatpush3.bf16.msra.mxu1 %v5890_v30 }
 0xd15   : > { %2994 = vmatprep.subr.bf16.mxu0 %v5893_v4  ;;  %4230 = vmatprep.subr.bf16.mxu1 %v4833_v28 }
 0xd18   : > { %2995 = vmatpush1.bf16.msra.mxu0 %v5897_v6  ;;  %4231 = vmatpush3.bf16.msra.mxu1 %v5900_v35 }
 0xd19   : > { %2996 = vmatprep.subr.bf16.mxu0 %v5903_v12  ;;  %4232 = vmatprep.subr.bf16.mxu1 %v4833_v28 }
 0xd1c   : > { %2997 = vmatpush1.bf16.msra.mxu0 %v5907_v13  ;;  %4233 = vmatpush3.bf16.msra.mxu1 %v5910_v1 }
 0xd1d   : > { %2998 = vmatprep.subr.bf16.mxu0 %v5913_v17  ;;  %4234 = vmatprep.subr.bf16.mxu1 %v4833_v28 }
 0xd20   : > { %2999 = vmatpush1.bf16.msra.mxu0 %v5917_v20  ;;  %4235 = vmatpush3.bf16.msra.mxu1 %v5920_v8 }
 0xd21   : > { %3000 = vmatprep.subr.bf16.mxu0 %v5923_v22  ;;  %4236 = vmatprep.subr.bf16.mxu1 %v4833_v28 }
 0xd24   : > { %3001 = vmatpush1.bf16.msra.mxu0 %v5927_v23  ;;  %4237 = vmatpush3.bf16.msra.mxu1 %v5930_v25 }
 0xd25   : > { %3002 = vmatprep.subr.bf16.mxu0 %v5933_v27  ;;  %4238 = vmatprep.subr.bf16.mxu1 %v4833_v28 }
 0xd28   : > { %3003 = vmatpush1.bf16.msra.mxu0 %v5937_v29  ;;  %4239 = vmatpush3.bf16.msra.mxu1 %v5940_v31 }
 0xd29   : > { %3004 = vmatprep.subr.bf16.mxu0 %v5943_v36  ;;  %4240 = vmatprep.subr.bf16.mxu1 %v4833_v28 }
 0xd2c   : > { %3005 = vmatpush1.bf16.msra.mxu0 %v5947_v38  ;;  %4241 = vmatpush3.bf16.msra.mxu1 %v5950_v9 }
 0xd2d   : > { %3137 = vmatprep.subr.bf16.mxu0 %v5815_v15  ;;  %4246 = vmatprep.subr.bf16.mxu1 %v4833_v28 }
 0xde2   : > { %v2877_v46 = vpop.f32.mrb[56].mxu0  ;;  %v2918_v41 = vpop.f32.mrb[52].mxu1 }
 0xde3   : > { %v2878_v51 = vadd.f32 %v2877_v46, %v5330_v14  ;;  %v2879_v45 = vpop.f32.mrb[57].mxu0  ;;  %v4224_v52 = vpop.f32.mrb[53].mxu1  ;;  %v2919_v16 = vadd.f32 %v2918_v41, %v5340_v53 }
 0xde4   : > { %v2880_v56 = vadd.f32 %v2879_v45, %v5334_v55  ;;  %v2881_v57 = vpop.f32.mrb[58].mxu0  ;;  %v2921_v59 = vpop.f32.mrb[54].mxu1  ;;  %v2988_v52 = vld [vmem:[#allocation3 + $0x4e] sm:$0x3f] }
 0xde5   : > { %v2924_v44 = vadd.f32 %v2878_v51, %v2841_v21  ;;  %v2882_v0 = vpop.f32.mrb[59].mxu0  ;;  %v4225_v49 = vpop.f32.mrb[55].mxu1 }
 0xde6   : > { %v2934_v54 = vadd.f32 %v2932_v7, %v2880_v56 }
 0xde7   : > { %v3765_v11 = vmul.f32 -1.442695, %v2924_v44 }
 0xde8   : > { %v3766_v58 = vmul.f32 -1.442695, %v2934_v54 }
 0xde9   : > { %4560 = vpow2.f32 %v3765_v11 }
 0xdea   : > { %4562 = vpow2.f32 %v3766_v58  ;;  %v3079_v58 = vrot.slane %v2988_v52, 2 }
 0xdf3   : > { %v4561_v60 = vpop.eup %4560 }
 0xdf4   : > { %v2928_v18 = vadd.f32 1.0, %v4561_v60  ;;  %v4563_v34 = vpop.eup %4562 }
 0xdf5   : > { %v2938_v47 = vadd.f32 1.0, %v4563_v34 }
 0xdf6   : > { %4564 = vrcp.f32 %v2928_v18 }
 0xdf7   : > { %4566 = vrcp.f32 %v2938_v47 }
 0xe00   : > { %v4565_v2 = vpop.eup %4564 }
 0xe01   : > { %v2941_v50 = vmul.f32 %v4565_v2, %v2919_v16  ;;  %v4567_v10 = vpop.eup %4566 }
 0xe02   : > { %v2946_v5 = vsub.f32 1.0, %v4567_v10  ;;  %v2948_v40 = vmul.f32 %v4567_v10, %v5960_v33  ;;  %v3089_v10 = vrot.slane %v2988_v52, 4 }
 0xe03   : > { %v2944_v26 = vadd.f32 %v2942_v19, %v2941_v50 }
 0xe05   : > { %4568 = vtanh.f32 %v2944_v26 }
 0xe0f   : > { %v4569_v43 = vpop.eup %4568 }
 0xe10   : > { %v2947_v24 = vmul.f32 %v4569_v43, %v2946_v5 }
 0xe12   : > { %v2949_v37 = vadd.f32 %v2948_v40, %v2947_v24 }
 0xe14   : > { %v6005_v48 = vsel %vm2957_vm15, %v2949_v37, %v5960_v33  ;;  %v2959_v46 = vsel %vm2957_vm15, %v2949_v37, 1.0 }
 0xe15   : > { %v2967_v41 = vrot.slane %v2959_v46, %v5123_v39  ;;  %v2989_v21 = vpack.c.bf16 %v6005_v48, %v6005_v48  ;;  %v3103_v46 = vpop.permute.xlu1 %3102 }
 0xe16   : > { %vm3104_vm0 = vcmp.eq.s32.totalorder %v3103_v46, 1 }
 0xe17   : > { %v2968_v51 = vcombine.high %v2967_v41, %v2967_v41  ;;  %3767 = vst.sshfl [vmem:[#allocation4 + $0xc] sm:$0x1 pattern:$0x73625140] %v2967_v41  ;;  %3023 = vmatmul.mubr.bf16.vlgmr.msra.gmra.mrb[60].mxu0 %v2989_v21  ;;  %4243 = vmatmul.mubr.bf16.vlgmr.msra.gmra.mrb[56].mxu1 %v2989_v21 }
 0xe18   : > { %3138 = vmatpush1.bf16.msra.mxu0 %v5874_v32  ;;  %4247 = vmatpush3.bf16.msra.mxu1 %v5877_v61 }
 0xe19   : > { %3768 = vst.sshfl [vmem:[#allocation4 + $0x1c] sm:$0x1 pattern:$0x73625140] %v2968_v51  ;;  %3139 = vmatprep.subr.bf16.mxu0 %v5880_v62  ;;  %4248 = vmatprep.subr.bf16.mxu1 %v4833_v28 }
 0xe1a   : > { %3169 = vmatprep.mubr.bf16.mxu0 %v4831_v3  ;;  %4262 = vmatprep.mubr.msk.bf16.mxu1 %vm4834_vm1, %v4833_v28 }
 0xe1c   : > { %3140 = vmatpush1.bf16.msra.mxu0 %v5887_v63  ;;  %4249 = vmatpush3.bf16.msra.mxu1 %v5890_v30 }
 0xe1d   : > { %3141 = vmatprep.subr.bf16.mxu0 %v5893_v4  ;;  %4250 = vmatprep.subr.bf16.mxu1 %v4833_v28 }
 0xe20   : > { %3142 = vmatpush1.bf16.msra.mxu0 %v5897_v6  ;;  %4251 = vmatpush3.bf16.msra.mxu1 %v5900_v35 }
 0xe21   : > { %3143 = vmatprep.subr.bf16.mxu0 %v5903_v12  ;;  %4252 = vmatprep.subr.bf16.mxu1 %v4833_v28 }
 0xe24   : > { %3144 = vmatpush1.bf16.msra.mxu0 %v5907_v13  ;;  %4253 = vmatpush3.bf16.msra.mxu1 %v5910_v1 }
 0xe25   : > { %3145 = vmatprep.subr.bf16.mxu0 %v5913_v17  ;;  %4254 = vmatprep.subr.bf16.mxu1 %v4833_v28 }
 0xe28   : > { %3146 = vmatpush1.bf16.msra.mxu0 %v5917_v20  ;;  %4255 = vmatpush3.bf16.msra.mxu1 %v5920_v8 }
 0xe29   : > { %3147 = vmatprep.subr.bf16.mxu0 %v5923_v22  ;;  %4256 = vmatprep.subr.bf16.mxu1 %v4833_v28 }
 0xe2c   : > { %3148 = vmatpush1.bf16.msra.mxu0 %v5927_v23  ;;  %4257 = vmatpush3.bf16.msra.mxu1 %v5930_v25 }
 0xe2d   : > { %3149 = vmatprep.subr.bf16.mxu0 %v5933_v27  ;;  %4258 = vmatprep.subr.bf16.mxu1 %v4833_v28 }
 0xe30   : > { %3150 = vmatpush1.bf16.msra.mxu0 %v5937_v29  ;;  %4259 = vmatpush3.bf16.msra.mxu1 %v5940_v31 }
 0xe31   : > { %3151 = vmatprep.subr.bf16.mxu0 %v5943_v36  ;;  %4260 = vmatprep.subr.bf16.mxu1 %v4833_v28 }
 0xe34   : > { %3152 = vmatpush1.bf16.msra.mxu0 %v5947_v38  ;;  %4261 = vmatpush3.bf16.msra.mxu1 %v5950_v9 }
 0xe35   : > { %3284 = vmatprep.subr.bf16.mxu0 %v5815_v15  ;;  %4266 = vmatprep.subr.bf16.mxu1 %v4833_v28 }
 0xeea   : > { %v3024_v33 = vpop.f32.mrb[60].mxu0  ;;  %v3065_v45 = vpop.f32.mrb[56].mxu1 }
 0xeeb   : > { %v3025_v56 = vadd.f32 %v3024_v33, %v5330_v14  ;;  %v3026_v57 = vpop.f32.mrb[61].mxu0  ;;  %v4244_v59 = vpop.f32.mrb[57].mxu1  ;;  %v3066_v50 = vadd.f32 %v3065_v45, %v5340_v53 }
 0xeec   : > { %v3027_v44 = vadd.f32 %v3026_v57, %v5334_v55  ;;  %v3028_v0 = vpop.f32.mrb[62].mxu0  ;;  %v3068_v49 = vpop.f32.mrb[58].mxu1 }
 0xeed   : > { %v3071_v7 = vadd.f32 %v3025_v56, %v2988_v52  ;;  %v3029_v11 = vpop.f32.mrb[63].mxu0  ;;  %v4245_v54 = vpop.f32.mrb[59].mxu1 }
 0xeee   : > { %v3081_v18 = vadd.f32 %v3079_v58, %v3027_v44  ;;  %v3250_v59 = vpop.permute.xlu0 %3249 }
 0xeef   : > { %v3769_v60 = vmul.f32 -1.442695, %v3071_v7 }
 0xef0   : > { %v3770_v15 = vmul.f32 -1.442695, %v3081_v18 }
 0xef1   : > { %4570 = vpow2.f32 %v3769_v60 }
 0xef2   : > { %4572 = vpow2.f32 %v3770_v15 }
 0xefb   : > { %v4571_v34 = vpop.eup %4570 }
 0xefc   : > { %v3075_v47 = vadd.f32 1.0, %v4571_v34  ;;  %v4573_v16 = vpop.eup %4572  ;;  %v3282_v34 = vld [vmem:[#allocation3 + $0x5a] sm:$0x3f] }
 0xefd   : > { %v3085_v2 = vadd.f32 1.0, %v4573_v16 }
 0xefe   : > { %4574 = vrcp.f32 %v3075_v47 }
 0xeff   : > { %4576 = vrcp.f32 %v3085_v2 }
 0xf08   : > { %v4575_v19 = vpop.eup %4574 }
 0xf09   : > { %v3088_v26 = vmul.f32 %v4575_v19, %v3066_v50  ;;  %v4577_v43 = vpop.eup %4576 }
 0xf0a   : > { %v3093_v24 = vsub.f32 1.0, %v4577_v43  ;;  %v3095_v37 = vmul.f32 %v4577_v43, %v6005_v48 }
 0xf0b   : > { %v3091_v5 = vadd.f32 %v3089_v10, %v3088_v26 }
 0xf0d   : > { %4578 = vtanh.f32 %v3091_v5 }
 0xf17   : > { %v4579_v40 = vpop.eup %4578 }
 0xf18   : > { %v3094_v42 = vmul.f32 %v4579_v40, %v3093_v24  ;;  %v3373_v24 = vrot.slane %v3282_v34, 2 }
 0xf1a   : > { %v3096_v41 = vadd.f32 %v3095_v37, %v3094_v42 }
 0xf1c   : > { %v6050_v21 = vsel %vm3104_vm0, %v3096_v41, %v6005_v48  ;;  %v3106_v51 = vsel %vm3104_vm0, %v3096_v41, 1.0 }
 0xf1d   : > { %v3114_v33 = vrot.slane %v3106_v51, %v5123_v39  ;;  %v3136_v45 = vpack.c.bf16 %v6050_v21, %v6050_v21 }
 0xf1f   : > { %v3115_v52 = vcombine.high %v3114_v33, %v3114_v33  ;;  %3771 = vst.sshfl [vmem:[#allocation4 + $0xd] sm:$0x1 pattern:$0x73625140] %v3114_v33  ;;  %3170 = vmatmul.mubr.bf16.vlgmr.msra.gmra.mrb[64].mxu0 %v3136_v45  ;;  %4263 = vmatmul.mubr.bf16.vlgmr.msra.gmra.mrb[60].mxu1 %v3136_v45  ;;  %v3383_v45 = vrot.slane %v3282_v34, 4 }
 0xf20   : > { %3285 = vmatpush1.bf16.msra.mxu0 %v5874_v32  ;;  %4267 = vmatpush3.bf16.msra.mxu1 %v5877_v61  ;;  %v3135_v61 = vld [vmem:[#allocation3 + $0x54] sm:$0x3f] }
 0xf21   : > { %3772 = vst.sshfl [vmem:[#allocation4 + $0x1d] sm:$0x1 pattern:$0x73625140] %v3115_v52  ;;  %3286 = vmatprep.subr.bf16.mxu0 %v5880_v62  ;;  %4268 = vmatprep.subr.bf16.mxu1 %v4833_v28 }
 0xf22   : > { %3316 = vmatprep.mubr.bf16.mxu0 %v4831_v3  ;;  %4282 = vmatprep.mubr.msk.bf16.mxu1 %vm4834_vm1, %v4833_v28  ;;  %vm3251_vm1 = vcmp.eq.s32.totalorder %v3250_v59, 1 }
 0xf24   : > { %3287 = vmatpush1.bf16.msra.mxu0 %v5887_v63  ;;  %4269 = vmatpush3.bf16.msra.mxu1 %v5890_v30 }
 0xf25   : > { %3288 = vmatprep.subr.bf16.mxu0 %v5893_v4  ;;  %4270 = vmatprep.subr.bf16.mxu1 %v4833_v28 }
 0xf28   : > { %3289 = vmatpush1.bf16.msra.mxu0 %v5897_v6  ;;  %4271 = vmatpush3.bf16.msra.mxu1 %v5900_v35 }
 0xf29   : > { %3290 = vmatprep.subr.bf16.mxu0 %v5903_v12  ;;  %4272 = vmatprep.subr.bf16.mxu1 %v4833_v28 }
 0xf2c   : > { %3291 = vmatpush1.bf16.msra.mxu0 %v5907_v13  ;;  %4273 = vmatpush3.bf16.msra.mxu1 %v5910_v1 }
 0xf2d   : > { %3292 = vmatprep.subr.bf16.mxu0 %v5913_v17  ;;  %4274 = vmatprep.subr.bf16.mxu1 %v4833_v28  ;;  %v3226_v17 = vrot.slane %v3135_v61, 2 }
 0xf30   : > { %3293 = vmatpush1.bf16.msra.mxu0 %v5917_v20  ;;  %4275 = vmatpush3.bf16.msra.mxu1 %v5920_v8 }
 0xf31   : > { %3294 = vmatprep.subr.bf16.mxu0 %v5923_v22  ;;  %4276 = vmatprep.subr.bf16.mxu1 %v4833_v28 }
 0xf34   : > { %3295 = vmatpush1.bf16.msra.mxu0 %v5927_v23  ;;  %4277 = vmatpush3.bf16.msra.mxu1 %v5930_v25 }
 0xf35   : > { %3296 = vmatprep.subr.bf16.mxu0 %v5933_v27  ;;  %4278 = vmatprep.subr.bf16.mxu1 %v4833_v28 }
 0xf38   : > { %3297 = vmatpush1.bf16.msra.mxu0 %v5937_v29  ;;  %4279 = vmatpush3.bf16.msra.mxu1 %v5940_v31 }
 0xf39   : > { %3298 = vmatprep.subr.bf16.mxu0 %v5943_v36  ;;  %4280 = vmatprep.subr.bf16.mxu1 %v4833_v28 }
 0xf3c   : > { %3299 = vmatpush1.bf16.msra.mxu0 %v5947_v38  ;;  %4281 = vmatpush3.bf16.msra.mxu1 %v5950_v9  ;;  %v3236_v38 = vrot.slane %v3135_v61, 4 }
 0xff2   : > { %v3171_v3 = vpop.f32.mrb[64].mxu0  ;;  %v3212_v32 = vpop.f32.mrb[60].mxu1 }
 0xff3   : > { %v3172_v62 = vadd.f32 %v3171_v3, %v5330_v14  ;;  %v3173_v63 = vpop.f32.mrb[65].mxu0  ;;  %v4264_v30 = vpop.f32.mrb[61].mxu1  ;;  %v3213_v29 = vadd.f32 %v3212_v32, %v5340_v53 }
 0xff4   : > { %v3174_v4 = vadd.f32 %v3173_v63, %v5334_v55  ;;  %v3175_v6 = vpop.f32.mrb[66].mxu0  ;;  %v3215_v35 = vpop.f32.mrb[62].mxu1 }
 0xff5   : > { %v3218_v12 = vadd.f32 %v3172_v62, %v3135_v61  ;;  %v3176_v13 = vpop.f32.mrb[67].mxu0  ;;  %v4265_v1 = vpop.f32.mrb[63].mxu1 }
 0xff6   : > { %v3228_v20 = vadd.f32 %v3226_v17, %v3174_v4  ;;  %v3397_v62 = vpop.permute.xlu1 %3396  ;;  %v3429_v13 = vld [vmem:[#allocation4] sm:$0xff] }
 0xff7   : > { %v3773_v28 = vmul.f32 -1.442695, %v3218_v12  ;;  %vm3398_vm2 = vcmp.eq.s32.totalorder %v3397_v62, 1 }
 0xff8   : > { %v3774_v8 = vmul.f32 -1.442695, %v3228_v20 }
 0xff9   : > { %4580 = vpow2.f32 %v3773_v28  ;;  %v3431_v28 = vld [vmem:[#allocation4 + $0x10] sm:$0xff] }
 0xffa   : > { %4582 = vpow2.f32 %v3774_v8 }
0x1003   : > { %v4581_v22 = vpop.eup %4580 }
0x1004   : > { %v3222_v23 = vadd.f32 1.0, %v4581_v22  ;;  %v4583_v25 = vpop.eup %4582 }
0x1005   : > { %v3232_v27 = vadd.f32 1.0, %v4583_v25 }
0x1006   : > { %4584 = vrcp.f32 %v3222_v23 }
0x1007   : > { %4586 = vrcp.f32 %v3232_v27 }
0x1010   : > { %v4585_v31 = vpop.eup %4584 }
0x1011   : > { %v3235_v36 = vmul.f32 %v4585_v31, %v3213_v29  ;;  %v4587_v48 = vpop.eup %4586 }
0x1012   : > { %v3240_v56 = vsub.f32 1.0, %v4587_v48  ;;  %v3242_v0 = vmul.f32 %v4587_v48, %v6050_v21 }
0x1013   : > { %v3238_v9 = vadd.f32 %v3236_v38, %v3235_v36 }
0x1015   : > { %4588 = vtanh.f32 %v3238_v9 }
0x101f   : > { %v4589_v57 = vpop.eup %4588 }
0x1020   : > { %v3241_v44 = vmul.f32 %v4589_v57, %v3240_v56 }
0x1022   : > { %v3243_v49 = vadd.f32 %v3242_v0, %v3241_v44 }
0x1024   : > { %v3252_v7 = vsel %vm3251_vm1, %v3243_v49, %v6050_v21  ;;  %v3253_v11 = vsel %vm3251_vm1, %v3243_v49, 1.0 }
0x1025   : > { %v3261_v54 = vrot.slane %v3253_v11, %v5123_v39  ;;  %v3283_v58 = vpack.c.bf16 %v3252_v7, %v3252_v7 }
0x1027   : > { %v3262_v60 = vcombine.high %v3261_v54, %v3261_v54  ;;  %3775 = vst.sshfl [vmem:[#allocation4 + $0xe] sm:$0x1 pattern:$0x73625140] %v3261_v54  ;;  %3317 = vmatmul.mubr.bf16.vlgmr.msra.gmra.mrb[68].mxu0 %v3283_v58  ;;  %4283 = vmatmul.mubr.bf16.vlgmr.msra.gmra.mrb[64].mxu1 %v3283_v58 }
0x1029   : > { %3776 = vst.sshfl [vmem:[#allocation4 + $0x1e] sm:$0x1 pattern:$0x73625140] %v3262_v60 }
0x10fa   : > { %v3318_v18 = vpop.f32.mrb[68].mxu0  ;;  %v3359_v15 = vpop.f32.mrb[64].mxu1 }
0x10fb   : > { %v3319_v47 = vadd.f32 %v3318_v18, %v5330_v14  ;;  %v3320_v16 = vpop.f32.mrb[69].mxu0  ;;  %v4284_v2 = vpop.f32.mrb[65].mxu1  ;;  %v3360_v51 = vadd.f32 %v3359_v15, %v5340_v53 }
0x10fc   : > { %v3321_v50 = vadd.f32 %v3320_v16, %v5334_v55  ;;  %v3322_v19 = vpop.f32.mrb[70].mxu0  ;;  %v3362_v26 = vpop.f32.mrb[66].mxu1 }
0x10fd   : > { %v3365_v10 = vadd.f32 %v3319_v47, %v3282_v34  ;;  %v3323_v5 = vpop.f32.mrb[71].mxu0  ;;  %v4285_v43 = vpop.f32.mrb[67].mxu1 }
0x10fe   : > { %v3375_v42 = vadd.f32 %v3373_v24, %v3321_v50 }
0x10ff   : > { %v3777_v40 = vmul.f32 -1.442695, %v3365_v10 }
0x1100   : > { %v3778_v37 = vmul.f32 -1.442695, %v3375_v42 }
0x1101   : > { %4590 = vpow2.f32 %v3777_v40 }
0x1102   : > { %4592 = vpow2.f32 %v3778_v37 }
0x110b   : > { %v4591_v46 = vpop.eup %4590 }
0x110c   : > { %v3369_v41 = vadd.f32 1.0, %v4591_v46  ;;  %v4593_v21 = vpop.eup %4592 }
0x110d   : > { %v3379_v14 = vadd.f32 1.0, %v4593_v21 }
0x110e   : > { %4594 = vrcp.f32 %v3369_v41 }
0x110f   : > { %4596 = vrcp.f32 %v3379_v14 }
0x1118   : > { %v4595_v33 = vpop.eup %4594 }
0x1119   : > { %v3382_v55 = vmul.f32 %v4595_v33, %v3360_v51  ;;  %v4597_v3 = vpop.eup %4596 }
0x111a   : > { %v3387_v32 = vsub.f32 1.0, %v4597_v3  ;;  %v3389_v30 = vmul.f32 %v4597_v3, %v3252_v7 }
0x111b   : > { %v3385_v52 = vadd.f32 %v3383_v45, %v3382_v55 }
0x111d   : > { %4598 = vtanh.f32 %v3385_v52 }
0x1127   : > { %v4599_v61 = vpop.eup %4598 }
0x1128   : > { %v3388_v63 = vmul.f32 %v4599_v61, %v3387_v32 }
0x112a   : > { %v3390_v4 = vadd.f32 %v3389_v30, %v3388_v63 }
0x112c   : > { %v3399_v6 = vsel %vm3398_vm2, %v3390_v4, %v3252_v7  ;;  %v3400_v35 = vsel %vm3398_vm2, %v3390_v4, 1.0 }
0x112d   : > { %v3408_v53 = vrot.slane %v3400_v35, %v5123_v39  ;;  %3428 = vst [vmem:[#allocation2] sm:$0x3] %v3399_v6  ;;  %3457 = vst [vmem:[#allocation12] sm:$0x3] (!%p3785_p11), %v3399_v6 }
0x112f   : > { %v3409_v12 = vcombine.high %v3408_v53, %v3408_v53  ;;  %3779 = vst.sshfl [vmem:[#allocation4 + $0xf] sm:$0x1 pattern:$0x73625140] %v3408_v53 }
0x1131   : > { %3780 = vst.sshfl [vmem:[#allocation4 + $0x1f] sm:$0x1 pattern:$0x73625140] %v3409_v12 }
0x1135   : > { %3456 = sbr.rel (%p3785_p11) target bundleno = 4412 (0x113c), region = 68 }
0x1136   : > { %v3430_v1 = vld [vmem:[#allocation4 + $0x8] sm:$0xff] }
0x1137   : > { %v3802_v17 = vpack.c.bf16 %v3430_v1, %v3429_v13 }
0x1138   : > { %v3432_v20 = vld [vmem:[#allocation4 + $0x18] sm:$0xff] }
0x1139   : > { %3803 = vst [vmem:[%s5091_s17] sm:$0xff] %v3802_v17   ;;  %v3807_v8 = vpack.c.bf16 %v3432_v20, %v3431_v28 }
0x113b   : > { %3809 = vst [vmem:[%s5091_s17 + $0x8] sm:$0xff] %v3807_v8  }
0x113c PF: > { %s3459_s13 = scalar_lea.sflag [#allocation7], %s5077_s19 }
0x113d   : > { %s3798_s8 = sshll.u32 %s4814_s30, 7  ;;  %s3491_s15 = sshll.u32 %s5091_s17, 4  ;;  %s3492_s15 = int_to_ptr.vmem [resolvable:$true] %s3491_s15 }
0x113e   : > { %s3474_s18 = scalar_lea.hbm %s6173_s7, %s3798_s8  ;;  %s4836_s26 = smov 128  }
0x113f   : > { %p6197_p0 = scmp.ne.s32.totalorder %s6193_s20, 0  ;;  %s4837_s19 = smov 256  }
0x1140   : > { %s4838_s12 = smov 2   ;;  %s4839_s11 = smov 64  }
0x1141   : > { %4296 = sst [smem:[#allocation15]] (%p6197_p0), %s4836_s26  ;;  %s4840_s30 = smov 4  }
0x1142   : > { %4297 = sst [smem:[#allocation15 + $0x1]] (%p6197_p0), %s4837_s19  ;;  %s4841_s17 = smov [#allocation14]  }
0x1143   : > { %4298 = sst [smem:[#allocation15 + $0x2]] (%p6197_p0), %s4838_s12  ;;  %s4842_s22 = smov 0  }
0x1144   : > { %4299 = sst [smem:[#allocation15 + $0x3]] (%p6197_p0), %s4839_s11  ;;  %s4843_s23 = smov [#allocation12]  }
0x1145   : > { %4300 = sst [smem:[#allocation15 + $0x4]] (%p6197_p0), %s4839_s11  ;;  %s3520_s21 = sshll.u32 %s4843_s23, 4  ;;  %s3521_s21 = int_to_ptr.vmem [resolvable:$true] %s3520_s21 }
0x1146   : > { %4301 = sst [smem:[#allocation15 + $0x5]] (%p6197_p0), %s4840_s30  ;;  %s4734_s8 = scalar_lea.vmem %s3521_s21, 32 }
0x1147   : > { %4302 = dma.general (%p6197_p0), %s3492_s15, 256, %s3474_s18, %s3459_s13, %s4841_s17, [#allocation15], %s4842_s22, 0  }
0x1148   : > { %p4735_p4 = scmp.ne.s32.totalorder %s3521_s21, %s4734_s8  ;;  %p6198_p3 = scmp.ne.s32.totalorder %s6187_s14, 0 }
0x1149   : > { %p4741_p12 = scmp.lt.s32.totalorder %s3521_s21, %s3521_s21  ;;  %p4742_p1 = scmp.lt.s32.totalorder %s4734_s8, %s4734_s8 }
0x114a   : > { %p4736_p5 = pnand %p4735_p4, %p6198_p3 }
0x114b   : > { %p4743_p13 = por %p4742_p1, %p4741_p12 }
0x114c   : > { %p4737_p9 = pneg %p4736_p5 }
0x114e   : > { %p4744_p6 = pnand %p4743_p13, %p4737_p9 }
0x1150   : > { %4747 = shalt.err (!%p4744_p6)
}
0x1151   : > { %s6199_s26 = sld [smem:[#allocation22_spill]] }
0x1157   : > { %s4748_s20 = scalar_lea.hbm %s6199_s26, 32 }
0x1158   : > { %p4749_p10 = scmp.ne.s32.totalorder %s6199_s26, %s4748_s20  ;;  %p4754_p8 = scmp.lt.u32.totalorder %s4748_s20, %s6199_s26 }
0x115a   : > { %p4750_p2 = pnand %p4749_p10, %p6198_p3 }
0x115c   : > { %p4751_p7 = pneg %p4750_p2 }
0x115e   : > { %p4756_p11 = pnand %p4754_p8, %p4751_p7 }
0x1160   : > { %4759 = shalt.err (!%p4756_p11)
}
0x1161   : > { %4304 = dma.vmem_to_hbm [thread:$0]  (%p6198_p3), %s3521_s21, 32, %s6199_s26, [#allocation13]  }
0x1162   : > { %4793 = dma.done.wait (%p6198_p3), [#allocation13], 32  }
0x1163   : > { %4795 = vsyncadd (%p6198_p3), [#allocation13], 4294967264 }
0x1164 PF: > { %s6200_s30 = sld [smem:[#allocation20_spill]]  ;;  %s6201_s17 = sld [smem:[#allocation21_spill]] }
0x1165   : > { %p6203_p4 = scmp.ge.s32.totalorder %s4822_s10, 2 }
0x116a   : > { %s3536_s22 = sand.u32 1, %s6200_s30   ;;  %p6202_p0 = scmp.ne.s32.totalorder %s6201_s17, 0 }
0x116b   : > { %s3537_s23 = scalar_lea.sflag [#allocation7], %s3536_s22 }
0x116c   : > { %p4320_p5 = pnand %p6203_p4, %p6202_p0 }
0x116e   : > { %4797 = dma.done.wait (!%p4320_p5), %s3537_s23, 256  }
0x116f   : > { %4799 = vsyncadd (!%p4320_p5), %s3537_s23, 4294967040  ;;  %s27_s10 = sadd.s32 1, %s4822_s10   ;;  %s6204_s27 = smov %s4806_s28 }
0x1170   : > { %p24_p9 = scmp.ge.s32.totalorder %s27_s10, 4   ;;  %s6205_s28 = smov %s4810_s29 }
0x1171   : > { %s6206_s29 = smov %s5031_s24  ;;  %s6207_s30 = smov %s4818_s9 }
0x1172   : > { %s6208_s9 = smov %s6210_s16  ;;  %26 = sbr.rel (!%p24_p9) target bundleno = 10 (0xa), region = 144 }
0x1179   :  { %3542 = vsyncpa [#allocation6], 1 }
0x117a   :  { %3544 = vsyncpa [#allocation6 + $0x1], 1 }
0x117b   :  { %3545 = vsyncpa [#allocation9], 1 }
0x117c   :  { %3546 = vsyncpa [#allocation7], 1 }
0x117d   :  { %3548 = vsyncpa [#allocation7 + $0x1], 1 }
0x117e   :  { %3549 = vsyncpa [#allocation13], 1 }

</bundles_post_ra>
